<compile_context>
chip_gen: v7x
topology: tpu7x:2x2x1
jax: 0.10.0
libtpu: 0.0.40
codegen_flags: <defaults>
</compile_context>

<pallas_src>
import functools

import jax
import jax.numpy as jnp
from jax import lax
from jax.experimental import pallas as pl
from jax.experimental.pallas import tpu as pltpu


# ------------------------------ Pallas kernel ------------------------------ #
def _wcmf_kernel(rgb_ref, dep_ref,
                 wr_ref, br_ref, wd_ref, bd_ref,
                 wc1_ref, bc1_ref, wc2_ref, bc2_ref,
                 out_ref,
                 padrd_ref, pad2_ref,
                 *, fuse_ky_c1):
    """One batch element per grid step; all convs + fusion fused in-kernel."""
    _, H, W, C = rgb_ref.shape
    HW = H * W
    f32 = jnp.float32

    # Zero only the top/bottom halo rows of the H-padded scratch buffers
    # (interior rows are fully overwritten below).  Done every step: a
    # program_id(0)==0 guard would be wrong if the parallel batch axis is
    # sharded across TensorCores (per-core scratch, non-zero starting id).
    padrd_ref[0:1] = jnp.zeros((1, W, 2 * C), padrd_ref.dtype)
    padrd_ref[H + 1:H + 2] = jnp.zeros((1, W, 2 * C), padrd_ref.dtype)
    pad2_ref[0:1] = jnp.zeros((1, W, C), pad2_ref.dtype)
    pad2_ref[H + 1:H + 2] = jnp.zeros((1, W, C), pad2_ref.dtype)

    # In-kernel border masks for the dx = +-1 taps (iota + compare; no HBM I/O).
    col = lax.broadcasted_iota(jnp.int32, (HW, 1), 0) % W
    lmask = (col > 0).astype(f32)          # 0 where x == 0
    rmask = (col < W - 1).astype(f32)      # 0 where x == W - 1

    # ---- conv_r1 / conv_d1: 1x1 conv == per-pixel matmul (+folded BN, ReLU) --
    rgb = rgb_ref[0].reshape(HW, C)                       # bf16
    dep = dep_ref[0].reshape(HW, C)                       # bf16
    Fr = jnp.maximum(
        jnp.dot(rgb, wr_ref[...], preferred_element_type=f32) + br_ref[...], 0.0)
    Fd = jnp.maximum(
        jnp.dot(dep, wd_ref[...], preferred_element_type=f32) + bd_ref[...], 0.0)

    # Stage [Fr | Fd] as one bf16 slab in the merged H-padded scratch.  This IS
    # the channel concat, keeps conv_c1's K at 2C, and is what the final fusion
    # re-reads (no long-lived f32 Fr/Fd held across both 3x3 convs).
    padrd_ref[1:H + 1, :, 0:C] = Fr.reshape(H, W, C).astype(padrd_ref.dtype)
    padrd_ref[1:H + 1, :, C:2 * C] = Fd.reshape(H, W, C).astype(padrd_ref.dtype)
    del Fr, Fd

    def conv3x3(pad_ref, w_ref, n_out, fuse_ky):
        # Per ky, the three kx taps are fused along N (one (K, 3*n_out) matmul).
        # If fuse_ky, the three ky row-slabs are also fused along K (one issue).
        if fuse_ky:
            lhs = jnp.concatenate(
                [pad_ref[ky:ky + H].reshape(HW, -1) for ky in range(3)], axis=-1)
            acc = jnp.dot(lhs, w_ref[...], preferred_element_type=f32)
        else:
            acc = None
            for ky in range(3):
                rows = pad_ref[ky:ky + H].reshape(HW, -1)      # bf16 rows
                d = jnp.dot(rows, w_ref[ky], preferred_element_type=f32)
                acc = d if acc is None else acc + d
        t0 = acc[:, 0:n_out]               # kx=0 taps: out[x] += t0[x-1]
        t1 = acc[:, n_out:2 * n_out]       # kx=1 taps
        t2 = acc[:, 2 * n_out:3 * n_out]   # kx=2 taps: out[x] += t2[x+1]
        # Rows are W-major, so rolling along the flattened HW axis realizes the
        # dx shift; every wrapped / cross-row element lands in a masked column.
        s0 = pltpu.roll(t0, shift=1, axis=0) * lmask
        s2 = pltpu.roll(t2, shift=HW - 1, axis=0) * rmask
        return t1 + s0 + s2

    # ---- conv_c1: 3x3, 2C -> C (+folded BN, ReLU) ----------------------------
    f1 = jnp.maximum(conv3x3(padrd_ref, wc1_ref, C, fuse_ky_c1) + bc1_ref[...], 0.0)
    pad2_ref[1:H + 1] = f1.reshape(H, W, C).astype(pad2_ref.dtype)
    del f1

    # ---- conv_c2: 3x3, C -> 2 (+folded BN, ReLU); single K=3C, N=6 matmul ----
    fvec = jnp.maximum(conv3x3(pad2_ref, wc2_ref, 2, True) + bc2_ref[...], 0.0)

    # ---- fusion: w1*Fr + w2*Fd + (w1*Fr)*(w2*Fd) -----------------------------
    frd = padrd_ref[1:H + 1].reshape(HW, 2 * C)            # bf16 [Fr | Fd]
    Fr_b = frd[:, 0:C].astype(f32)
    Fd_b = frd[:, C:2 * C].astype(f32)
    w1 = fvec[:, 0:1]
    w2 = fvec[:, 1:2]
    a = w1 * Fr_b
    b = w2 * Fd_b
    out = a + b + a * b
    out_ref[...] = out.reshape(1, H, W, C).astype(out_ref.dtype)


# --------------------------------- Wrapper --------------------------------- #
def wcmf_forward(rgb_nhwc, dep_nhwc, kparams, *, out_dtype=jnp.float32):
    N, H, W, C = rgb_nhwc.shape
    HW = H * W
    wr, br, wd, bd, wc1, bc1, wc2, bc2 = kparams
    fuse_ky_c1 = (wc1.ndim == 2)   # small-C config: ky taps pre-fused along K

    def _full(arr):
        shape = tuple(arr.shape)
        return pl.BlockSpec(shape, lambda n, _nd=len(shape): (0,) * _nd)

    weights = (wr, br, wd, bd, wc1, bc1, wc2, bc2)
    wbytes = sum(int(a.size) * int(a.dtype.itemsize) for a in weights)
    out_isz = jnp.dtype(out_dtype).itemsize
    flops = 2 * N * HW * (2 * C * C + 9 * (2 * C) * C + 9 * C * 2)
    bytes_accessed = int(2 * rgb_nhwc.size * rgb_nhwc.dtype.itemsize   # rgb + dep
                         + N * HW * C * out_isz                        # output
                         + wbytes)

    # Explicit VMEM budget (defaults are 16/32 MiB scoped): double-buffered
    # inputs/outputs + scratch + a rough bound on the live f32 temporaries.
    in_bytes = 2 * 2 * H * W * C * 2                       # rgb+dep, 2 bufs, bf16
    out_bytes = 2 * H * W * C * out_isz                    # output, 2 bufs
    scratch_bytes = (H + 2) * W * (2 * C) * 2 + (H + 2) * W * C * 2
    temp_bytes = HW * C * 4 * 12                           # f32 Fr/Fd/acc/fusion
    vmem_bytes = int(1.5 * (in_bytes + out_bytes + scratch_bytes
                            + 2 * wbytes + temp_bytes))
    vmem_bytes = max(vmem_bytes, 16 << 20)
    vmem_bytes = min(vmem_bytes, 64 << 20)   # stay within v7x physical VMEM/TC
    # TODO(synk): at production C=256 / H=W>=64 switch to the H-tile grid axis
    # (2-row halo) instead of relying on the raised limit alone.

    kernel = functools.partial(_wcmf_kernel, fuse_ky_c1=fuse_ky_c1)

    return pl.pallas_call(
        kernel,
        out_shape=jax.ShapeDtypeStruct((N, H, W, C), out_dtype),
        grid_spec=pltpu.PrefetchScalarGridSpec(
            num_scalar_prefetch=0,
            grid=(N,),
            in_specs=[
                pl.BlockSpec((1, H, W, C), lambda n: (n, 0, 0, 0)),   # rgb (bf16)
                pl.BlockSpec((1, H, W, C), lambda n: (n, 0, 0, 0)),   # depth (bf16)
                _full(wr), _full(br),                                 # conv_r1 (+BN)
                _full(wd), _full(bd),                                 # conv_d1 (+BN)
                _full(wc1), _full(bc1),                               # conv_c1 (+BN)
                _full(wc2), _full(bc2),                               # conv_c2 (+BN)
            ],
            out_specs=pl.BlockSpec((1, H, W, C), lambda n: (n, 0, 0, 0)),
            scratch_shapes=[
                pltpu.VMEM((H + 2, W, 2 * C), jnp.bfloat16),   # [Fr|Fd], H-halo pad
                pltpu.VMEM((H + 2, W, C), jnp.bfloat16),       # conv_c1 out, padded
            ],
        ),
        compiler_params=pltpu.CompilerParams(
            dimension_semantics=("parallel",),
            vmem_limit_bytes=vmem_bytes),
        cost_estimate=pl.CostEstimate(flops=int(flops), transcendentals=0,
                                      bytes_accessed=bytes_accessed),
    )(rgb_nhwc, dep_nhwc, wr, br, wd, bd, wc1, bc1, wc2, bc2)


# ---------------------- Parameter init + BN folding ------------------------ #
def _fold_bn(w, b, gamma, beta, mean, var, eps=1e-5):
    s = gamma / jnp.sqrt(var + eps)          # per output channel (last dim of w)
    return w * s, (b - mean) * s + beta


def _make_branch(key, cin, cout, ksize):
    kw, kb, kg, kbe, km, kv = jax.random.split(key, 6)
    if ksize == 1:
        w = jax.random.normal(kw, (cin, cout), jnp.float32) * 0.1
    else:
        w = jax.random.normal(kw, (ksize, ksize, cin, cout), jnp.float32) * 0.1
    b = jax.random.normal(kb, (cout,), jnp.float32) * 0.1
    gamma = jax.random.uniform(kg, (cout,), jnp.float32, 0.5, 1.5)
    beta = jax.random.normal(kbe, (cout,), jnp.float32) * 0.1
    mean = jax.random.normal(km, (cout,), jnp.float32) * 0.1
    var = jax.random.uniform(kv, (cout,), jnp.float32, 0.5, 1.5)
    wf, bfold = _fold_bn(w, b, gamma, beta, mean, var)
    return wf, bfold.reshape(1, cout)


def _prepare_kernel_params(params, C):
    """Restructure folded f32 params for the kernel: bf16 weights, fused taps.

    conv_c1: per ky the three kx taps are fused along N -> (2C, 3C); at small C
    (2C < 128) the three ky matrices are additionally fused along K -> (6C, 3C).
    conv_c2: kx fused along N and ky along K -> (3C, 6).
    Note: lane-dense production configs (C a multiple of 128) make every slice /
    staging store 128-aligned; the small demo C is intentionally kept as-is.
    """
    wr, br, wd, bd, wc1, bc1, wc2, bc2 = params
    bf = jnp.bfloat16
    wc1_ky = [jnp.concatenate([wc1[ky, kx] for kx in range(3)], axis=-1)
              for ky in range(3)]                              # 3 x (2C, 3C)
    if 2 * C < 128:
        wc1k = jnp.concatenate(wc1_ky, axis=0)                 # (6C, 3C)
    else:
        wc1k = jnp.stack(wc1_ky)                               # (3, 2C, 3C)
    wc2_ky = [jnp.concatenate([wc2[ky, kx] for kx in range(3)], axis=-1)
              for ky in range(3)]                              # 3 x (C, 6)
    wc2k = jnp.concatenate(wc2_ky, axis=0)                     # (3C, 6)
    return (wr.astype(bf), br, wd.astype(bf), bd,
            wc1k.astype(bf), bc1, wc2k.astype(bf), bc2)


# ---------------------------- Pure-JAX reference ---------------------------- #
def wcmf_reference(rgb, dep, params):
    """Structurally identical to the PyTorch module's forward; matmul operands
    in bf16 with f32 accumulation (mirrors the kernel's conv numerics)."""
    wr, br, wd, bd, wc1, bc1, wc2, bc2 = params
    bf = jnp.bfloat16

    def conv1x1(x, w, b):
        y = jnp.einsum('nhwc,cd->nhwd', x.astype(bf), w.astype(bf),
                       preferred_element_type=jnp.float32)
        return jax.nn.relu(y + b.reshape(-1))

    def conv3x3(x, w, b):
        y = lax.conv_general_dilated(
            x.astype(bf), w.astype(bf), (1, 1), 'SAME',
            dimension_numbers=('NHWC', 'HWIO', 'NHWC'),
            preferred_element_type=jnp.float32)
        return jax.nn.relu(y + b.reshape(-1))

    Fr = conv1x1(rgb, wr, br)
    Fd = conv1x1(dep, wd, bd)
    f = jnp.concatenate([Fr, Fd], axis=-1)
    f = conv3x3(f, wc1, bc1)
    f = conv3x3(f, wc2, bc2)
    w1 = f[..., 0:1]
    w2 = f[..., 1:2]
    a = w1 * Fr
    b = w2 * Fd
    return a + b + a * b


# ------------------------------------ Main ----------------------------------- #
if __name__ == "__main__":
    N, C, H, W = 2, 32, 16, 16   # small stand-in for channel=256

    key = jax.random.PRNGKey(0)
    k_rgb, k_dep, k_p = jax.random.split(key, 3)
    # PyTorch-style NCHW inputs.
    rgb_nchw = jax.random.normal(k_rgb, (N, C, H, W), jnp.float32)
    dep_nchw = jax.random.normal(k_dep, (N, C, H, W), jnp.float32)

    kp = jax.random.split(k_p, 4)
    params = (*_make_branch(kp[0], C, C, 1),        # conv_r1 + BN
              *_make_branch(kp[1], C, C, 1),        # conv_d1 + BN
              *_make_branch(kp[2], 2 * C, C, 3),    # conv_c1 + BN
              *_make_branch(kp[3], C, 2, 3))        # conv_c2 + BN

    # NCHW -> NHWC and bf16 at the kernel boundary (halves input DMA traffic).
    rgb = jnp.transpose(rgb_nchw, (0, 2, 3, 1)).astype(jnp.bfloat16)
    dep = jnp.transpose(dep_nchw, (0, 2, 3, 1)).astype(jnp.bfloat16)

    kparams = _prepare_kernel_params(params, C)
    out = jax.block_until_ready(wcmf_forward(rgb, dep, kparams))

    ref = jax.block_until_ready(wcmf_reference(rgb, dep, params))
    assert out.shape == (N, H, W, C)
    # Tolerance 1e-2: the fusion re-reads Fr/Fd from the bf16 staging scratch
    # (<= 2^-8 relative rounding) while the reference keeps them in f32; all
    # quantities in the fusion are non-negative so the error stays << 1e-2*|ref|.
    if not bool(jnp.allclose(out, ref, rtol=1e-2, atol=1e-2)):
        raise AssertionError(
            f"kernel mismatch, max abs err = {float(jnp.max(jnp.abs(out - ref)))}")

    # Output in PyTorch layout if needed: NHWC -> NCHW.
    out_nchw = jnp.transpose(out, (0, 3, 1, 2))
    jax.block_until_ready(out_nchw)
    print("KERNEL_OK")
</pallas_src>

<mosaic_0001>
module attributes {stable_mosaic.version = 11 : i64} {
  func.func @_wcmf_kernel(%arg0: i32, %arg1: memref<1x16x16x32xbf16, #tpu.memory_space<vmem>>, %arg2: memref<1x16x16x32xbf16, #tpu.memory_space<vmem>>, %arg3: memref<32x32xbf16, #tpu.memory_space<vmem>>, %arg4: memref<1x32xf32, #tpu.memory_space<vmem>>, %arg5: memref<32x32xbf16, #tpu.memory_space<vmem>>, %arg6: memref<1x32xf32, #tpu.memory_space<vmem>>, %arg7: memref<192x96xbf16, #tpu.memory_space<vmem>>, %arg8: memref<1x32xf32, #tpu.memory_space<vmem>>, %arg9: memref<96x6xbf16, #tpu.memory_space<vmem>>, %arg10: memref<1x2xf32, #tpu.memory_space<vmem>>, %arg11: memref<1x16x16x32xf32, #tpu.memory_space<vmem>>, %arg12: memref<18x16x64xbf16, #tpu.memory_space<vmem>>, %arg13: memref<18x16x32xbf16, #tpu.memory_space<vmem>>) attributes {dimension_semantics = [#tpu.dimension_semantics<parallel>], iteration_bounds = array<i64: 2>, scalar_prefetch = 0 : i64, scratch_operands = 2 : i64, tpu.core_type = #tpu.core_type<tc>, window_params = [{transform_indices = @transform_0, window_bounds = array<i64: 1, 16, 16, 32>}, {transform_indices = @transform_1, window_bounds = array<i64: 1, 16, 16, 32>}, {pipeline_mode = #tpu.pipeline_mode<synchronous>, transform_indices = @transform_2, window_bounds = array<i64: 32, 32>}, {pipeline_mode = #tpu.pipeline_mode<synchronous>, transform_indices = @transform_3, window_bounds = array<i64: 1, 32>}, {pipeline_mode = #tpu.pipeline_mode<synchronous>, transform_indices = @transform_4, window_bounds = array<i64: 32, 32>}, {pipeline_mode = #tpu.pipeline_mode<synchronous>, transform_indices = @transform_5, window_bounds = array<i64: 1, 32>}, {pipeline_mode = #tpu.pipeline_mode<synchronous>, transform_indices = @transform_6, window_bounds = array<i64: 192, 96>}, {pipeline_mode = #tpu.pipeline_mode<synchronous>, transform_indices = @transform_7, window_bounds = array<i64: 1, 32>}, {pipeline_mode = #tpu.pipeline_mode<synchronous>, transform_indices = @transform_8, window_bounds = array<i64: 96, 6>}, {pipeline_mode = #tpu.pipeline_mode<synchronous>, transform_indices = @transform_9, window_bounds = array<i64: 1, 2>}, {transform_indices = @transform_10, window_bounds = array<i64: 1, 16, 16, 32>}]} {
    %cst = arith.constant 0.000000e+00 : bf16
    %0 = vector.broadcast %cst : bf16 to vector<1x16x64xbf16>
    %c0 = arith.constant 0 : index
    %c0_0 = arith.constant 0 : index
    %c0_1 = arith.constant 0 : index
    %1 = vector.load %arg12[%c0, %c0_0, %c0_1] : memref<18x16x64xbf16, #tpu.memory_space<vmem>>, vector<1x16x64xbf16>
    tpu.vector_store %arg12[%c0, %c0_0, %c0_1], %0 {strides = array<i32>} : memref<18x16x64xbf16, #tpu.memory_space<vmem>>, vector<1x16x64xbf16>,
    %cst_2 = arith.constant 0.000000e+00 : bf16
    %2 = vector.broadcast %cst_2 : bf16 to vector<1x16x64xbf16>
    %c17 = arith.constant 17 : index
    %c0_3 = arith.constant 0 : index
    %c0_4 = arith.constant 0 : index
    %3 = vector.load %arg12[%c17, %c0_3, %c0_4] : memref<18x16x64xbf16, #tpu.memory_space<vmem>>, vector<1x16x64xbf16>
    tpu.vector_store %arg12[%c17, %c0_3, %c0_4], %2 {strides = array<i32>} : memref<18x16x64xbf16, #tpu.memory_space<vmem>>, vector<1x16x64xbf16>,
    %cst_5 = arith.constant 0.000000e+00 : bf16
    %4 = vector.broadcast %cst_5 : bf16 to vector<1x16x32xbf16>
    %c0_6 = arith.constant 0 : index
    %c0_7 = arith.constant 0 : index
    %c0_8 = arith.constant 0 : index
    %5 = vector.load %arg13[%c0_6, %c0_7, %c0_8] : memref<18x16x32xbf16, #tpu.memory_space<vmem>>, vector<1x16x32xbf16>
    tpu.vector_store %arg13[%c0_6, %c0_7, %c0_8], %4 {strides = array<i32>} : memref<18x16x32xbf16, #tpu.memory_space<vmem>>, vector<1x16x32xbf16>,
    %cst_9 = arith.constant 0.000000e+00 : bf16
    %6 = vector.broadcast %cst_9 : bf16 to vector<1x16x32xbf16>
    %c17_10 = arith.constant 17 : index
    %c0_11 = arith.constant 0 : index
    %c0_12 = arith.constant 0 : index
    %7 = vector.load %arg13[%c17_10, %c0_11, %c0_12] : memref<18x16x32xbf16, #tpu.memory_space<vmem>>, vector<1x16x32xbf16>
    tpu.vector_store %arg13[%c17_10, %c0_11, %c0_12], %6 {strides = array<i32>} : memref<18x16x32xbf16, #tpu.memory_space<vmem>>, vector<1x16x32xbf16>,
    %8 = tpu.iota {dimensions = array<i32: 0>} : vector<256x1xi32>
    %c16_i32 = arith.constant 16 : i32
    %c0_i32 = arith.constant 0 : i32
    %9 = arith.cmpi eq, %c16_i32, %c0_i32 : i32
    %c1_i32 = arith.constant 1 : i32
    %10 = arith.select %9, %c1_i32, %c16_i32 : i32
    %11 = vector.broadcast %10 : i32 to vector<256x1xi32>
    %12 = arith.remsi %8, %11 : vector<256x1xi32>
    %c0_i32_13 = arith.constant 0 : i32
    %13 = vector.broadcast %c0_i32_13 : i32 to vector<256x1xi32>
    %14 = arith.cmpi ne, %12, %13 : vector<256x1xi32>
    %c0_i32_14 = arith.constant 0 : i32
    %15 = vector.broadcast %c0_i32_14 : i32 to vector<256x1xi32>
    %16 = arith.cmpi slt, %12, %15 : vector<256x1xi32>
    %c0_i32_15 = arith.constant 0 : i32
    %17 = arith.cmpi slt, %10, %c0_i32_15 : i32
    %18 = vector.broadcast %17 : i1 to vector<256x1xi1>
    %19 = vector.broadcast %18 : vector<256x1xi1> to vector<256x1xi1>
    %20 = arith.xori %16, %19 : vector<256x1xi1>
    %21 = arith.andi %20, %14 : vector<256x1xi1>
    %22 = vector.broadcast %10 : i32 to vector<256x1xi32>
    %23 = arith.addi %12, %22 : vector<256x1xi32>
    %24 = arith.select %21, %23, %12 : vector<256x1xi1>, vector<256x1xi32>
    %c0_i32_16 = arith.constant 0 : i32
    %25 = vector.broadcast %c0_i32_16 : i32 to vector<256x1xi32>
    %26 = arith.cmpi sgt, %24, %25 : vector<256x1xi32>
    %27 = arith.extui %26 : vector<256x1xi1> to vector<256x1xi32>
    %28 = arith.sitofp %27 : vector<256x1xi32> to vector<256x1xf32>
    %c15_i32 = arith.constant 15 : i32
    %29 = vector.broadcast %c15_i32 : i32 to vector<256x1xi32>
    %30 = arith.cmpi slt, %24, %29 : vector<256x1xi32>
    %31 = arith.extui %30 : vector<256x1xi1> to vector<256x1xi32>
    %32 = arith.sitofp %31 : vector<256x1xi32> to vector<256x1xf32>
    %c0_17 = arith.constant 0 : index
    %c0_18 = arith.constant 0 : index
    %c0_19 = arith.constant 0 : index
    %c0_20 = arith.constant 0 : index
    %33 = vector.load %arg1[%c0_17, %c0_18, %c0_19, %c0_20] : memref<1x16x16x32xbf16, #tpu.memory_space<vmem>>, vector<1x16x16x32xbf16>
    %34 = vector.shape_cast %33 : vector<1x16x16x32xbf16> to vector<16x16x32xbf16>
    %35 = vector.shape_cast %34 : vector<16x16x32xbf16> to vector<256x32xbf16>
    %c0_21 = arith.constant 0 : index
    %c0_22 = arith.constant 0 : index
    %c0_23 = arith.constant 0 : index
    %c0_24 = arith.constant 0 : index
    %36 = vector.load %arg2[%c0_21, %c0_22, %c0_23, %c0_24] : memref<1x16x16x32xbf16, #tpu.memory_space<vmem>>, vector<1x16x16x32xbf16>
    %37 = vector.shape_cast %36 : vector<1x16x16x32xbf16> to vector<16x16x32xbf16>
    %38 = vector.shape_cast %37 : vector<16x16x32xbf16> to vector<256x32xbf16>
    %c0_25 = arith.constant 0 : index
    %c0_26 = arith.constant 0 : index
    %39 = vector.load %arg3[%c0_25, %c0_26] : memref<32x32xbf16, #tpu.memory_space<vmem>>, vector<32x32xbf16>
    %cst_27 = arith.constant dense<0.000000e+00> : vector<256x32xf32>
    %40 = tpu.matmul %35, %39, %cst_27 {dimension_numbers = #tpu.dot_dimension_numbers<[1], [0], [0], [1], [0, 0, 1, 1], [], []>} : vector<256x32xbf16>, vector<32x32xbf16>, vector<256x32xf32> -> vector<256x32xf32>
    %c0_28 = arith.constant 0 : index
    %c0_29 = arith.constant 0 : index
    %41 = vector.load %arg4[%c0_28, %c0_29] : memref<1x32xf32, #tpu.memory_space<vmem>>, vector<1x32xf32>
    %42 = vector.broadcast %41 : vector<1x32xf32> to vector<256x32xf32>
    %43 = arith.addf %40, %42 : vector<256x32xf32>
    %cst_30 = arith.constant 0.000000e+00 : f32
    %44 = vector.broadcast %cst_30 : f32 to vector<256x32xf32>
    %45 = arith.maximumf %43, %44 : vector<256x32xf32>
    %c0_31 = arith.constant 0 : index
    %c0_32 = arith.constant 0 : index
    %46 = vector.load %arg5[%c0_31, %c0_32] : memref<32x32xbf16, #tpu.memory_space<vmem>>, vector<32x32xbf16>
    %cst_33 = arith.constant dense<0.000000e+00> : vector<256x32xf32>
    %47 = tpu.matmul %38, %46, %cst_33 {dimension_numbers = #tpu.dot_dimension_numbers<[1], [0], [0], [1], [0, 0, 1, 1], [], []>} : vector<256x32xbf16>, vector<32x32xbf16>, vector<256x32xf32> -> vector<256x32xf32>
    %c0_34 = arith.constant 0 : index
    %c0_35 = arith.constant 0 : index
    %48 = vector.load %arg6[%c0_34, %c0_35] : memref<1x32xf32, #tpu.memory_space<vmem>>, vector<1x32xf32>
    %49 = vector.broadcast %48 : vector<1x32xf32> to vector<256x32xf32>
    %50 = arith.addf %47, %49 : vector<256x32xf32>
    %cst_36 = arith.constant 0.000000e+00 : f32
    %51 = vector.broadcast %cst_36 : f32 to vector<256x32xf32>
    %52 = arith.maximumf %50, %51 : vector<256x32xf32>
    %53 = vector.shape_cast %45 : vector<256x32xf32> to vector<16x16x32xf32>
    %54 = arith.truncf %53 : vector<16x16x32xf32> to vector<16x16x32xbf16>
    %c1 = arith.constant 1 : index
    %c0_37 = arith.constant 0 : index
    %c0_38 = arith.constant 0 : index
    %55 = vector.load %arg12[%c1, %c0_37, %c0_38] : memref<18x16x64xbf16, #tpu.memory_space<vmem>>, vector<16x16x32xbf16>
    tpu.vector_store %arg12[%c1, %c0_37, %c0_38], %54 {strides = array<i32>} : memref<18x16x64xbf16, #tpu.memory_space<vmem>>, vector<16x16x32xbf16>,
    %56 = vector.shape_cast %52 : vector<256x32xf32> to vector<16x16x32xf32>
    %57 = arith.truncf %56 : vector<16x16x32xf32> to vector<16x16x32xbf16>
    %c1_39 = arith.constant 1 : index
    %c0_40 = arith.constant 0 : index
    %c32 = arith.constant 32 : index
    %58 = vector.load %arg12[%c1_39, %c0_40, %c32] : memref<18x16x64xbf16, #tpu.memory_space<vmem>>, vector<16x16x32xbf16>
    tpu.vector_store %arg12[%c1_39, %c0_40, %c32], %57 {strides = array<i32>} : memref<18x16x64xbf16, #tpu.memory_space<vmem>>, vector<16x16x32xbf16>,
    %c0_41 = arith.constant 0 : index
    %c0_42 = arith.constant 0 : index
    %c0_43 = arith.constant 0 : index
    %59 = vector.load %arg12[%c0_41, %c0_42, %c0_43] : memref<18x16x64xbf16, #tpu.memory_space<vmem>>, vector<16x16x64xbf16>
    %60 = vector.shape_cast %59 : vector<16x16x64xbf16> to vector<256x64xbf16>
    %c1_44 = arith.constant 1 : index
    %c0_45 = arith.constant 0 : index
    %c0_46 = arith.constant 0 : index
    %61 = vector.load %arg12[%c1_44, %c0_45, %c0_46] : memref<18x16x64xbf16, #tpu.memory_space<vmem>>, vector<16x16x64xbf16>
    %62 = vector.shape_cast %61 : vector<16x16x64xbf16> to vector<256x64xbf16>
    %c2 = arith.constant 2 : index
    %c0_47 = arith.constant 0 : index
    %c0_48 = arith.constant 0 : index
    %63 = vector.load %arg12[%c2, %c0_47, %c0_48] : memref<18x16x64xbf16, #tpu.memory_space<vmem>>, vector<16x16x64xbf16>
    %64 = vector.shape_cast %63 : vector<16x16x64xbf16> to vector<256x64xbf16>
    %65 = tpu.concatenate %60, %62, %64 in 1 : vector<256x64xbf16>, vector<256x64xbf16>, vector<256x64xbf16> -> vector<256x192xbf16>
    %c0_49 = arith.constant 0 : index
    %c0_50 = arith.constant 0 : index
    %66 = vector.load %arg7[%c0_49, %c0_50] : memref<192x96xbf16, #tpu.memory_space<vmem>>, vector<192x96xbf16>
    %cst_51 = arith.constant dense<0.000000e+00> : vector<256x96xf32>
    %67 = tpu.matmul %65, %66, %cst_51 {dimension_numbers = #tpu.dot_dimension_numbers<[1], [0], [0], [1], [0, 0, 1, 1], [], []>} : vector<256x192xbf16>, vector<192x96xbf16>, vector<256x96xf32> -> vector<256x96xf32>
    %68 = vector.extract_strided_slice %67 {offsets = [0, 0], sizes = [256, 32], strides = [1, 1]} : vector<256x96xf32> to vector<256x32xf32>
    %69 = vector.extract_strided_slice %67 {offsets = [0, 32], sizes = [256, 32], strides = [1, 1]} : vector<256x96xf32> to vector<256x32xf32>
    %70 = vector.extract_strided_slice %67 {offsets = [0, 64], sizes = [256, 32], strides = [1, 1]} : vector<256x96xf32> to vector<256x32xf32>
    %c1_i32_52 = arith.constant 1 : i32
    %71 = tpu.dynamic_rotate %68 by %c1_i32_52 dim 0 : vector<256x32xf32>, i32 -> vector<256x32xf32>
    %72 = vector.broadcast %28 : vector<256x1xf32> to vector<256x32xf32>
    %73 = arith.mulf %71, %72 : vector<256x32xf32>
    %c255_i32 = arith.constant 255 : i32
    %74 = tpu.dynamic_rotate %70 by %c255_i32 dim 0 : vector<256x32xf32>, i32 -> vector<256x32xf32>
    %75 = vector.broadcast %32 : vector<256x1xf32> to vector<256x32xf32>
    %76 = arith.mulf %74, %75 : vector<256x32xf32>
    %77 = arith.addf %69, %73 : vector<256x32xf32>
    %78 = arith.addf %77, %76 : vector<256x32xf32>
    %c0_53 = arith.constant 0 : index
    %c0_54 = arith.constant 0 : index
    %79 = vector.load %arg8[%c0_53, %c0_54] : memref<1x32xf32, #tpu.memory_space<vmem>>, vector<1x32xf32>
    %80 = vector.broadcast %79 : vector<1x32xf32> to vector<256x32xf32>
    %81 = arith.addf %78, %80 : vector<256x32xf32>
    %cst_55 = arith.constant 0.000000e+00 : f32
    %82 = vector.broadcast %cst_55 : f32 to vector<256x32xf32>
    %83 = arith.maximumf %81, %82 : vector<256x32xf32>
    %84 = vector.shape_cast %83 : vector<256x32xf32> to vector<16x16x32xf32>
    %85 = arith.truncf %84 : vector<16x16x32xf32> to vector<16x16x32xbf16>
    %c1_56 = arith.constant 1 : index
    %c0_57 = arith.constant 0 : index
    %c0_58 = arith.constant 0 : index
    %86 = vector.load %arg13[%c1_56, %c0_57, %c0_58] : memref<18x16x32xbf16, #tpu.memory_space<vmem>>, vector<16x16x32xbf16>
    tpu.vector_store %arg13[%c1_56, %c0_57, %c0_58], %85 {strides = array<i32>} : memref<18x16x32xbf16, #tpu.memory_space<vmem>>, vector<16x16x32xbf16>,
    %c0_59 = arith.constant 0 : index
    %c0_60 = arith.constant 0 : index
    %c0_61 = arith.constant 0 : index
    %87 = vector.load %arg13[%c0_59, %c0_60, %c0_61] : memref<18x16x32xbf16, #tpu.memory_space<vmem>>, vector<16x16x32xbf16>
    %88 = vector.shape_cast %87 : vector<16x16x32xbf16> to vector<256x32xbf16>
    %c1_62 = arith.constant 1 : index
    %c0_63 = arith.constant 0 : index
    %c0_64 = arith.constant 0 : index
    %89 = vector.load %arg13[%c1_62, %c0_63, %c0_64] : memref<18x16x32xbf16, #tpu.memory_space<vmem>>, vector<16x16x32xbf16>
    %90 = vector.shape_cast %89 : vector<16x16x32xbf16> to vector<256x32xbf16>
    %c2_65 = arith.constant 2 : index
    %c0_66 = arith.constant 0 : index
    %c0_67 = arith.constant 0 : index
    %91 = vector.load %arg13[%c2_65, %c0_66, %c0_67] : memref<18x16x32xbf16, #tpu.memory_space<vmem>>, vector<16x16x32xbf16>
    %92 = vector.shape_cast %91 : vector<16x16x32xbf16> to vector<256x32xbf16>
    %93 = tpu.concatenate %88, %90, %92 in 1 : vector<256x32xbf16>, vector<256x32xbf16>, vector<256x32xbf16> -> vector<256x96xbf16>
    %c0_68 = arith.constant 0 : index
    %c0_69 = arith.constant 0 : index
    %94 = vector.load %arg9[%c0_68, %c0_69] : memref<96x6xbf16, #tpu.memory_space<vmem>>, vector<96x6xbf16>
    %cst_70 = arith.constant dense<0.000000e+00> : vector<256x6xf32>
    %95 = tpu.matmul %93, %94, %cst_70 {dimension_numbers = #tpu.dot_dimension_numbers<[1], [0], [0], [1], [0, 0, 1, 1], [], []>} : vector<256x96xbf16>, vector<96x6xbf16>, vector<256x6xf32> -> vector<256x6xf32>
    %96 = vector.extract_strided_slice %95 {offsets = [0, 0], sizes = [256, 2], strides = [1, 1]} : vector<256x6xf32> to vector<256x2xf32>
    %97 = vector.extract_strided_slice %95 {offsets = [0, 2], sizes = [256, 2], strides = [1, 1]} : vector<256x6xf32> to vector<256x2xf32>
    %98 = vector.extract_strided_slice %95 {offsets = [0, 4], sizes = [256, 2], strides = [1, 1]} : vector<256x6xf32> to vector<256x2xf32>
    %c1_i32_71 = arith.constant 1 : i32
    %99 = tpu.dynamic_rotate %96 by %c1_i32_71 dim 0 : vector<256x2xf32>, i32 -> vector<256x2xf32>
    %100 = vector.broadcast %28 : vector<256x1xf32> to vector<256x2xf32>
    %101 = arith.mulf %99, %100 : vector<256x2xf32>
    %c255_i32_72 = arith.constant 255 : i32
    %102 = tpu.dynamic_rotate %98 by %c255_i32_72 dim 0 : vector<256x2xf32>, i32 -> vector<256x2xf32>
    %103 = vector.broadcast %32 : vector<256x1xf32> to vector<256x2xf32>
    %104 = arith.mulf %102, %103 : vector<256x2xf32>
    %105 = arith.addf %97, %101 : vector<256x2xf32>
    %106 = arith.addf %105, %104 : vector<256x2xf32>
    %c0_73 = arith.constant 0 : index
    %c0_74 = arith.constant 0 : index
    %107 = vector.load %arg10[%c0_73, %c0_74] : memref<1x2xf32, #tpu.memory_space<vmem>>, vector<1x2xf32>
    %108 = vector.broadcast %107 : vector<1x2xf32> to vector<256x2xf32>
    %109 = arith.addf %106, %108 : vector<256x2xf32>
    %cst_75 = arith.constant 0.000000e+00 : f32
    %110 = vector.broadcast %cst_75 : f32 to vector<256x2xf32>
    %111 = arith.maximumf %109, %110 : vector<256x2xf32>
    %c1_76 = arith.constant 1 : index
    %c0_77 = arith.constant 0 : index
    %c0_78 = arith.constant 0 : index
    %112 = vector.load %arg12[%c1_76, %c0_77, %c0_78] : memref<18x16x64xbf16, #tpu.memory_space<vmem>>, vector<16x16x64xbf16>
    %113 = vector.shape_cast %112 : vector<16x16x64xbf16> to vector<256x64xbf16>
    %114 = vector.extract_strided_slice %113 {offsets = [0, 0], sizes = [256, 32], strides = [1, 1]} : vector<256x64xbf16> to vector<256x32xbf16>
    %115 = arith.extf %114 : vector<256x32xbf16> to vector<256x32xf32>
    %116 = vector.extract_strided_slice %113 {offsets = [0, 32], sizes = [256, 32], strides = [1, 1]} : vector<256x64xbf16> to vector<256x32xbf16>
    %117 = arith.extf %116 : vector<256x32xbf16> to vector<256x32xf32>
    %118 = vector.extract_strided_slice %111 {offsets = [0, 0], sizes = [256, 1], strides = [1, 1]} : vector<256x2xf32> to vector<256x1xf32>
    %119 = vector.extract_strided_slice %111 {offsets = [0, 1], sizes = [256, 1], strides = [1, 1]} : vector<256x2xf32> to vector<256x1xf32>
    %120 = vector.broadcast %118 : vector<256x1xf32> to vector<256x32xf32>
    %121 = arith.mulf %120, %115 : vector<256x32xf32>
    %122 = vector.broadcast %119 : vector<256x1xf32> to vector<256x32xf32>
    %123 = arith.mulf %122, %117 : vector<256x32xf32>
    %124 = arith.addf %121, %123 : vector<256x32xf32>
    %125 = arith.mulf %121, %123 : vector<256x32xf32>
    %126 = arith.addf %124, %125 : vector<256x32xf32>
    %127 = vector.shape_cast %126 : vector<256x32xf32> to vector<1x16x16x32xf32>
    %c0_79 = arith.constant 0 : index
    %c0_80 = arith.constant 0 : index
    %c0_81 = arith.constant 0 : index
    %c0_82 = arith.constant 0 : index
    %128 = vector.load %arg11[%c0_79, %c0_80, %c0_81, %c0_82] : memref<1x16x16x32xf32, #tpu.memory_space<vmem>>, vector<1x16x16x32xf32>
    tpu.vector_store %arg11[%c0_79, %c0_80, %c0_81, %c0_82], %127 {strides = array<i32>} : memref<1x16x16x32xf32, #tpu.memory_space<vmem>>, vector<1x16x16x32xf32>,
    return
  }
  func.func @transform_0(%arg0: i32) -> (i32, i32, i32, i32) {
    %c0_i32 = arith.constant 0 : i32
    %c0_i32_0 = arith.constant 0 : i32
    %c0_i32_1 = arith.constant 0 : i32
    %c0_i32_2 = arith.constant 0 : i32
    return %arg0, %c0_i32, %c0_i32_0, %c0_i32_1 : i32, i32, i32, i32
  }
  func.func @transform_1(%arg0: i32) -> (i32, i32, i32, i32) {
    %c0_i32 = arith.constant 0 : i32
    %c0_i32_0 = arith.constant 0 : i32
    %c0_i32_1 = arith.constant 0 : i32
    %c0_i32_2 = arith.constant 0 : i32
    return %arg0, %c0_i32, %c0_i32_0, %c0_i32_1 : i32, i32, i32, i32
  }
  func.func @transform_2(%arg0: i32) -> (i32, i32) {
    %c0_i32 = arith.constant 0 : i32
    %c0_i32_0 = arith.constant 0 : i32
    %c0_i32_1 = arith.constant 0 : i32
    return %c0_i32, %c0_i32_0 : i32, i32
  }
  func.func @transform_3(%arg0: i32) -> (i32, i32) {
    %c0_i32 = arith.constant 0 : i32
    %c0_i32_0 = arith.constant 0 : i32
    %c0_i32_1 = arith.constant 0 : i32
    return %c0_i32, %c0_i32_0 : i32, i32
  }
  func.func @transform_4(%arg0: i32) -> (i32, i32) {
    %c0_i32 = arith.constant 0 : i32
    %c0_i32_0 = arith.constant 0 : i32
    %c0_i32_1 = arith.constant 0 : i32
    return %c0_i32, %c0_i32_0 : i32, i32
  }
  func.func @transform_5(%arg0: i32) -> (i32, i32) {
    %c0_i32 = arith.constant 0 : i32
    %c0_i32_0 = arith.constant 0 : i32
    %c0_i32_1 = arith.constant 0 : i32
    return %c0_i32, %c0_i32_0 : i32, i32
  }
  func.func @transform_6(%arg0: i32) -> (i32, i32) {
    %c0_i32 = arith.constant 0 : i32
    %c0_i32_0 = arith.constant 0 : i32
    %c0_i32_1 = arith.constant 0 : i32
    return %c0_i32, %c0_i32_0 : i32, i32
  }
  func.func @transform_7(%arg0: i32) -> (i32, i32) {
    %c0_i32 = arith.constant 0 : i32
    %c0_i32_0 = arith.constant 0 : i32
    %c0_i32_1 = arith.constant 0 : i32
    return %c0_i32, %c0_i32_0 : i32, i32
  }
  func.func @transform_8(%arg0: i32) -> (i32, i32) {
    %c0_i32 = arith.constant 0 : i32
    %c0_i32_0 = arith.constant 0 : i32
    %c0_i32_1 = arith.constant 0 : i32
    return %c0_i32, %c0_i32_0 : i32, i32
  }
  func.func @transform_9(%arg0: i32) -> (i32, i32) {
    %c0_i32 = arith.constant 0 : i32
    %c0_i32_0 = arith.constant 0 : i32
    %c0_i32_1 = arith.constant 0 : i32
    return %c0_i32, %c0_i32_0 : i32, i32
  }
  func.func @transform_10(%arg0: i32) -> (i32, i32, i32, i32) {
    %c0_i32 = arith.constant 0 : i32
    %c0_i32_0 = arith.constant 0 : i32
    %c0_i32_1 = arith.constant 0 : i32
    %c0_i32_2 = arith.constant 0 : i32
    return %arg0, %c0_i32, %c0_i32_0, %c0_i32_1 : i32, i32, i32, i32
  }
}

</mosaic_0001>

<bundles_post_ra>
// kernel: tpu_custom_call.1
= control target key start
LH: loop header
LB: loop body
LE: loop exit
PB: predicated region body
PF: predicated region fallthrough
CT: control target
= control target key end

     0   :  { %s8389_s0 = inlined_call_operand.hbm [shape: bf16[2,16,16,32], index: 0, kind: input, shape index: {}]   ;;  %s8390_s1 = inlined_call_operand.hbm [shape: bf16[2,16,16,32], index: 1, kind: input, shape index: {}]   ;;  %s8391_s2 = inlined_call_operand.vmem [shape: bf16[32,32], index: 2, kind: input, shape index: {}]   ;;  %s8392_s3 = inlined_call_operand.vmem [shape: f32[1,32], index: 3, kind: input, shape index: {}]   ;;  %s8393_s4 = inlined_call_operand.vmem [shape: bf16[32,32], index: 4, kind: input, shape index: {}]   ;;  %s8394_s5 = inlined_call_operand.vmem [shape: f32[1,32], index: 5, kind: input, shape index: {}]   ;;  %s8395_s6 = inlined_call_operand.hbm [shape: bf16[192,96], index: 6, kind: input, shape index: {}]   ;;  %s8396_s7 = inlined_call_operand.vmem [shape: f32[1,32], index: 7, kind: input, shape index: {}]   ;;  %s8397_s8 = inlined_call_operand.vmem [shape: bf16[96,6], index: 8, kind: input, shape index: {}]   ;;  %s8398_s9 = inlined_call_operand.vmem [shape: f32[1,2], index: 9, kind: input, shape index: {}]   ;;  %s8399_s10 = inlined_call_operand.hbm [shape: f32[2,16,16,32], index: 10, kind: output, shape index: {}]  }
   0x1   :  { %8476 = sst [smem:[#allocation68_spill]] %s8389_s0 }
   0x2   :  { %8477 = sst [smem:[#allocation69_spill]] %s8395_s6 }
   0x3   :  { %8478 = sst [smem:[#allocation70_spill]] %s8399_s10 }
   0x4   :  { %15 = vsyncpa [#allocation5], 0 }
   0x5   :  { %17 = vsyncpa [#allocation5 + $0x1], 0 }
   0x6   :  { %18 = vsyncpa [#allocation8], 0 }
   0x7   :  { %20 = vsyncpa [#allocation8 + $0x1], 0 }
   0x8   :  { %21 = vsyncpa [#allocation6], 0 }
   0x9   :  { %23 = vsyncpa [#allocation6 + $0x1], 0  ;;  %s5951_s13 = smov 0   ;;  %s5953_s14 = smov 0  }
   0xa   :  { %s5955_s15 = smov 0   ;;  %s5957_s16 = smov 0  }
   0xb LB: > { %8479 = sst [smem:[#allocation15_spill]] %s5865_s13  ;;  %s5972_s17 = sadd.s32 4294967295, %s5877_s16   ;;  %s5877_s16 = sphi %s5957_s16, %s8638_s16   ;;  %s5873_s15 = sphi %s5955_s15, %s8640_s15   ;;  %s5869_s14 = sphi %s5953_s14, %s8642_s14   ;;  %s5865_s13 = sphi %s5951_s13, %s8641_s13  }
   0xc   : > { %8480 = sst [smem:[#allocation16_spill]] %s5873_s15  ;;  %s5165_s18 = sadd.s32 4294967294, %s5877_s16  }
   0xd   : > { %p49_p0 = scmp.ne.s32.totalorder %s5869_s14, %s5865_s13  ;;  %p8402_p1 = scmp.eq.s32.totalorder %s5972_s17, 0 }
   0xe   : > { %p273_p3 = scmp.eq.s32.totalorder %s5165_s18, 1  ;;  %p5166_p5 = scmp.ge.s32.totalorder %s5877_s16, 1 }
   0xf   : > { %p5981_p4 = por %p8402_p1, %p49_p0  ;;  %p280_p7 = scmp.lt.s32.totalorder %s5877_s16, 3 }
  0x10   : > { %p5986_p6 = por %p273_p3, %p49_p0  ;;  %s5879_s22 = smov [#allocation9]  }
  0x11   : > { %s8481_s19 = scalar_select %p5981_p4, 1, 0 }
  0x12   : > { %s8482_s20 = scalar_select %p5986_p6, 1, 0 }
  0x13   : > { %p5991_p8 = pnand %p5166_p5, %p280_p7  ;;  %s304_s23 = sshll.u32 %s5879_s22, 4  ;;  %s5995_s23 = int_to_ptr.vmem [resolvable:$true] %s304_s23 }
  0x14   : > { %8483 = sst [smem:[#allocation17_spill]] %s8482_s20  ;;  %s6007_s25 = sadd.s32 1, %s5877_s16  }
  0x15   : > { %s8484_s21 = scalar_select %p5991_p8, 1, 0 }
  0x16   : > { %p5550_p9 = pneg %p5991_p8  ;;  %8486 = sst [smem:[#allocation18_spill]] %s6007_s25 }
  0x17   : > { %s36_s26 = sadd.s32 1, %s5873_s15  ;;  %s33_s27 = ssub.s32 %s5877_s16, %s6007_s25 }
  0x18   : > { %p6002_p11 = pnand %p5550_p9, %p8402_p1  ;;  %s8487_s6 = sld [smem:[#allocation69_spill]] }
  0x1a   : > { %p5717_p13 = pneg %p6002_p11 }
  0x1e   : > { %s5715_s30 = scalar_lea.hbm %s8487_s6, 1536 }
  0x1f   : > { %p5716_p12 = scmp.ne.s32.totalorder %s8487_s6, %s5715_s30  ;;  %p5722_p5 = scmp.lt.u32.totalorder %s5715_s30, %s8487_s6 }
  0x21   : > { %p5718_p0 = pnand %p5717_p13, %p5716_p12 }
  0x23   : > { %p5719_p3 = pneg %p5718_p0 }
  0x25   : > { %p5724_p7 = pnand %p5722_p5, %p5719_p3 }
  0x27   : > { %5727 = shalt.err (!%p5724_p7)
}
  0x28   : > { %s5728_s25 = scalar_lea.vmem %s5995_s23, 1536  ;;  %p5736_p2 = scmp.lt.s32.totalorder %s5995_s23, %s5995_s23 }
  0x29   : > { %p5729_p9 = scmp.ne.s32.totalorder %s5995_s23, %s5728_s25  ;;  %p5737_p6 = scmp.lt.s32.totalorder %s5728_s25, %s5728_s25 }
  0x2b   : > { %p5731_p10 = pnand %p5729_p9, %p5717_p13  ;;  %p5738_p4 = por %p5737_p6, %p5736_p2 }
  0x2d   : > { %p5732_p1 = pneg %p5731_p10 }
  0x2f   : > { %p5739_p8 = pnand %p5738_p4, %p5732_p1 }
  0x31   : > { %5742 = shalt.err (!%p5739_p8)
}
  0x32   : > { %s8407_s28 = smov 64   ;;  %s8409_s29 = smov 4  }
  0x33   : > { %5553 = dma.hbm_to_vmem [thread:$0]  (!%p6002_p11), %s8487_s6, 1536, %s5995_s23, [#allocation8], %s8407_s28, %s8407_s28, %s8409_s29  }
  0x34   : > { %p34_p1 = scmp.eq.s32.totalorder %s33_s27, 0  ;;  %p43_p2 = scmp.ne.s32.totalorder %s5873_s15, %s5869_s14 }
  0x35   : > { %p44_p4 = scmp.eq.s32.totalorder %s5877_s16, 0  ;;  %p5566_p6 = scmp.lt.s32.totalorder %s5877_s16, 2 }
  0x36   : > { %s6041_s11 = scalar_select %p34_p1, %s5873_s15, %s36_s26  }
  0x37   : > { %p45_p8 = por %p44_p4, %p43_p2  ;;  %p8489_p10 = scmp.eq.s32.totalorder %s5972_s17, 1 }
  0x38   : > { %8488 = sst [smem:[#allocation19_spill]] %s6041_s11  ;;  %s327_s24 = sand.u32 1, %s5873_s15  }
  0x39   : > { %p6045_p12 = por %p8489_p10, %p43_p2  ;;  %s5339_s18 = sshll.u32 %s5877_s16, 11 }
  0x3a   : > { %s6051_s22 = sshll.u32 %s327_s24, 7  ;;  %s8492_s0 = sld [smem:[#allocation68_spill]] }
  0x3b   : > { %s8490_s12 = scalar_select %p6045_p12, 1, 0 }
  0x3c   : > { %s331_s26 = scalar_lea.vmem [#allocation4], %s6051_s22  ;;  %p6059_p11 = pnand %p5566_p6, %p45_p8 }
  0x3d   : > { %8491 = sst [smem:[#allocation20_spill]] %s8490_s12  ;;  %s338_s27 = sshll.u32 %s331_s26, 4  ;;  %s6063_s27 = int_to_ptr.vmem [resolvable:$true] %s338_s27 }
  0x3e   : > { %s6068_s13 = scalar_lea.hbm %s8390_s1, %s5339_s18  ;;  %s6070_s20 = scalar_lea.sflag [#allocation5], %s327_s24 }
  0x3f   : > { %p5745_p0 = pneg %p6059_p11 }
  0x40   : > { %s6056_s23 = scalar_lea.hbm %s8492_s0, %s5339_s18  ;;  %s5748_s11 = scalar_lea.hbm %s8492_s0, 4096 }
  0x41   : > { %s5743_s29 = scalar_lea.hbm %s6056_s23, 2048  ;;  %p5749_p7 = scmp.lt.u32.totalorder %s6056_s23, %s8492_s0 }
  0x42   : > { %p5744_p13 = scmp.ne.s32.totalorder %s6056_s23, %s5743_s29  ;;  %p5750_p9 = scmp.lt.u32.totalorder %s5748_s11, %s5743_s29 }
  0x43   : > { %p5752_p2 = scmp.lt.u32.totalorder %s5743_s29, %s6056_s23 }
  0x44   : > { %p5746_p3 = pnand %p5745_p0, %p5744_p13  ;;  %p5751_p1 = por %p5750_p9, %p5749_p7 }
  0x46   : > { %p5747_p5 = pneg %p5746_p3  ;;  %p5753_p4 = por %p5752_p2, %p5751_p1 }
  0x48   : > { %p5754_p6 = pnand %p5753_p4, %p5747_p5 }
  0x4a   : > { %5757 = shalt.err (!%p5754_p6)
}
  0x4b   : > { %s5758_s28 = scalar_lea.vmem %s6063_s27, 2048  ;;  %s5882_s6 = smov [#allocation4]  }
  0x4c   : > { %p5759_p8 = scmp.ne.s32.totalorder %s6063_s27, %s5758_s28  ;;  %s5763_s24 = sshll.u32 %s5882_s6, 4  ;;  %s5764_s24 = int_to_ptr.vmem [resolvable:$false] %s5763_s24 }
  0x4d   : > { %s5765_s10 = scalar_lea.vmem %s5764_s24, 4096  ;;  %p5766_p3 = scmp.lt.s32.totalorder %s6063_s27, %s5764_s24 }
  0x4e   : > { %p5761_p10 = pnand %p5759_p8, %p5745_p0  ;;  %p5767_p7 = scmp.lt.s32.totalorder %s5765_s10, %s5758_s28 }
  0x50   : > { %p5762_p13 = pneg %p5761_p10  ;;  %p5768_p9 = por %p5767_p7, %p5766_p3 }
  0x52   : > { %p5769_p1 = pnand %p5768_p9, %p5762_p13 }
  0x54   : > { %5772 = shalt.err (!%p5769_p1)
}
  0x55   : > { %s8494_s15 = smov 4   ;;  %s8495_s29 = smov 64  }
  0x56   : > { %5557 = dma.hbm_to_vmem [thread:$0]  (!%p6059_p11), %s6056_s23, 2048, %s6063_s27, %s6070_s20, %s8495_s29, %s8495_s29, %s8494_s15  }
  0x57   : > { %s352_s11 = scalar_lea.vmem [#allocation7], %s6051_s22  ;;  %s348_s30 = sand.u32 1, %s5877_s16  }
  0x58   : > { %s359_s18 = sshll.u32 %s352_s11, 4  ;;  %s6105_s26 = scalar_lea.sflag [#allocation8], %s348_s30  ;;  %s6103_s18 = int_to_ptr.vmem [resolvable:$true] %s359_s18 }
  0x59   : > { %s5773_s28 = scalar_lea.hbm %s6068_s13, 2048  ;;  %s5778_s10 = scalar_lea.hbm %s8390_s1, 4096 }
  0x5a   : > { %p5774_p5 = scmp.ne.s32.totalorder %s6068_s13, %s5773_s28  ;;  %p5779_p6 = scmp.lt.u32.totalorder %s6068_s13, %s8390_s1 }
  0x5b   : > { %p5780_p8 = scmp.lt.u32.totalorder %s5778_s10, %s5773_s28  ;;  %p5782_p13 = scmp.lt.u32.totalorder %s5773_s28, %s6068_s13 }
  0x5c   : > { %p5776_p2 = pnand %p5774_p5, %p5745_p0 }
  0x5d   : > { %p5781_p10 = por %p5780_p8, %p5779_p6 }
  0x5e   : > { %p5777_p4 = pneg %p5776_p2 }
  0x5f   : > { %p5783_p3 = por %p5782_p13, %p5781_p10 }
  0x61   : > { %p5784_p7 = pnand %p5783_p3, %p5777_p4 }
  0x63   : > { %5787 = shalt.err (!%p5784_p7)
}
  0x64   : > { %s5788_s22 = scalar_lea.vmem %s6103_s18, 2048  ;;  %s5883_s23 = smov [#allocation7]  }
  0x65   : > { %p5789_p9 = scmp.ne.s32.totalorder %s6103_s18, %s5788_s22  ;;  %s5793_s27 = sshll.u32 %s5883_s23, 4  ;;  %s5794_s27 = int_to_ptr.vmem [resolvable:$false] %s5793_s27 }
  0x66   : > { %s5795_s0 = scalar_lea.vmem %s5794_s27, 4096  ;;  %p5796_p2 = scmp.lt.s32.totalorder %s6103_s18, %s5794_s27 }
  0x67   : > { %p5791_p1 = pnand %p5789_p9, %p5745_p0  ;;  %p5797_p6 = scmp.lt.s32.totalorder %s5795_s0, %s5788_s22 }
  0x69   : > { %p5792_p5 = pneg %p5791_p1  ;;  %p5798_p8 = por %p5797_p6, %p5796_p2 }
  0x6b   : > { %p5799_p10 = pnand %p5798_p8, %p5792_p5 }
  0x6d   : > { %5802 = shalt.err (!%p5799_p10)
}
  0x6e   : > { %5560 = dma.hbm_to_vmem [thread:$0]  (!%p6059_p11), %s6068_s13, 2048, %s6103_s18, %s6105_s26, %s8495_s29, %s8495_s29, %s8494_s15  }
  0x6f   : > { %p8496_p0 = scmp.ne.s32.totalorder %s8484_s21, 0 }
  0x71   : > { %371 = sbr.rel (%p8496_p0) target bundleno = 2316 (0x90c), region = 60 }
  0x78   : > { %s6137_s12 = sand.u32 1, %s5869_s14   ;;  %p8497_p4 = scmp.ne.s32.totalorder %s8481_s19, 0 }
  0x79   : > { %s5176_s20 = sshll.u32 %s6137_s12, 7  ;;  %s374_s11 = scalar_lea.sflag [#allocation5], %s6137_s12 }
  0x7a   : > { %s6141_s30 = scalar_lea.vmem [#allocation4], %s5176_s20 }
  0x7b   : > { %5848 = dma.done.wait (%p8497_p4), %s374_s11, 2048  }
  0x7c   : > { %5850 = vsyncadd (%p8497_p4), %s374_s11, 4294965248  ;;  %s382_s25 = sand.u32 1, %s5972_s17   ;;  %s6148_s13 = scalar_lea.vmem [#allocation7], %s5176_s20 }
  0x7d   : > { %s383_s21 = scalar_lea.sflag [#allocation8], %s382_s25 }
  0x7e   : > { %5852 = dma.done.wait (%p8497_p4), %s383_s21, 2048  }
  0x7f   : > { %5854 = vsyncadd (%p8497_p4), %s383_s21, 4294965248  ;;  %p8498_p11 = scmp.eq.s32.totalorder %s5972_s17, 0 }
  0x81   : > { %5856 = dma.done.wait (%p8498_p11), [#allocation8], 1536   ;;  %p8499_p13 = pmov %p8498_p11 }
  0x82   : > { %v5661_v0 = vld [vmem:[%s8393_s4] sm:$0xff]   ;;  %v5662_v1 = vld [vmem:[%s8393_s4 + $0x8] sm:$0xff]   ;;  %vm437_vm0 = vcmask 261120   ;;  %v5665_v4 = vld [vmem:[%s6148_s13 + $0x10] sm:$0xff]   ;;  %s5884_s23 = smov 32   ;;  %vm433_vm1 = vcmask 523264  }
  0x83   : > { %5858 = vsyncadd (%p8499_p13), [#allocation8], 4294965760  ;;  %5436 = vmatprep.subr.bf16.mxu1 %v5661_v0  ;;  %v5663_v2 = vld [vmem:[%s6148_s13] sm:$0xff]   ;;  %v5664_v3 = vld [vmem:[%s6148_s13 + $0x8] sm:$0xff]   ;;  %vm1915_vm2 = vcmask 523520   ;;  %s5886_s20 = smov 64  }
  0x84   : > { %5437 = vmatpush3.bf16.msra.mxu1 %v5661_v0  ;;  %5440 = vmatprep.mubr.msk.bf16.mxu1 %vm437_vm0, %v5663_v2  ;;  %v5666_v5 = vld [vmem:[%s6148_s13 + $0x18] sm:$0xff]   ;;  %v5667_v6 = vld [vmem:[%s6148_s13 + $0x20] sm:$0xff]   ;;  %v5676_v8 = vld [vmem:[%s8391_s2 + $0x8] sm:$0xff]   ;;  %s5888_s25 = smov 96   ;;  %s5889_s11 = smov 2  }
  0x85   : > { %5438 = vmatprep.subr.bf16.mxu1 %v5662_v1  ;;  %v5675_v7 = vld [vmem:[%s8391_s2] sm:$0xff]   ;;  %v5678_v10 = vld [vmem:[%s6141_s30 + $0x8] sm:$0xff]   ;;  %v5679_v11 = vld [vmem:[%s6141_s30 + $0x10] sm:$0xff]   ;;  %s5341_s21 = sshll.u32 %s5972_s17, 12  ;;  %s8633_s18 = sld [smem:[#allocation70_spill]] }
  0x86   : > { %5400 = vmatprep.subr.bf16.mxu0 %v5675_v7  ;;  %v5677_v9 = vld [vmem:[%s6141_s30] sm:$0xff]   ;;  %v5668_v12 = vld [vmem:[%s6148_s13 + $0x28] sm:$0xff]   ;;  %v5669_v13 = vld [vmem:[%s6148_s13 + $0x30] sm:$0xff]   ;;  %s5047_s17 = scalar_lea.sflag [#allocation6], %s6137_s12  ;;  %s5893_s28 = smov [#allocation10]  }
  0x87   : > { %5401 = vmatpush3.bf16.msra.mxu0 %v5675_v7  ;;  %5404 = vmatprep.mubr.msk.bf16.mxu0 %vm437_vm0, %v5677_v9  ;;  %v5680_v14 = vld [vmem:[%s6141_s30 + $0x18] sm:$0xff]   ;;  %v5683_v15 = vld [vmem:[%s6141_s30 + $0x20] sm:$0xff]   ;;  %v5684_v18 = vld [vmem:[%s6141_s30 + $0x28] sm:$0xff]   ;;  %s5807_s6 = sshll.u32 %s5893_s28, 4  ;;  %s5808_s6 = int_to_ptr.vmem [resolvable:$false] %s5807_s6 }
  0x88   : > { %5439 = vmatpush3.bf16.msra.mxu1 %v5662_v1  ;;  %5402 = vmatprep.subr.bf16.mxu0 %v5676_v8  ;;  %v5670_v16 = vld [vmem:[%s6148_s13 + $0x38] sm:$0xff]   ;;  %v5671_v17 = vld [vmem:[%s6148_s13 + $0x40] sm:$0xff]   ;;  %v5685_v19 = vld [vmem:[%s6141_s30 + $0x30] sm:$0xff]   ;;  %s5809_s24 = scalar_lea.vmem %s5808_s6, 8192 }
  0x89   : > { %v5672_v20 = vld [vmem:[%s6148_s13 + $0x48] sm:$0xff]   ;;  %v5673_v21 = vld [vmem:[%s6148_s13 + $0x50] sm:$0xff]   ;;  %v5686_v22 = vld [vmem:[%s6141_s30 + $0x38] sm:$0xff]  }
  0x8a   : > { %v5689_v23 = vld [vmem:[%s6141_s30 + $0x40] sm:$0xff]   ;;  %v5674_v24 = vld [vmem:[%s6148_s13 + $0x58] sm:$0xff]   ;;  %v5690_v26 = vld [vmem:[%s6141_s30 + $0x48] sm:$0xff]  }
  0x8b   : > { %5441 = vmatmul.mubr.msk.bf16.vlgmr.msra.gmra.mrb[0].mxu1 %vm437_vm0, %v5664_v3  ;;  %5403 = vmatpush3.bf16.msra.mxu0 %v5676_v8  ;;  %v5681_v25 = vld [vmem:[%s6148_s13 + $0x60] sm:$0xff]   ;;  %v5691_v27 = vld [vmem:[%s6141_s30 + $0x50] sm:$0xff]   ;;  %v5682_v28 = vld [vmem:[%s6148_s13 + $0x68] sm:$0xff]   ;;  %s8341_s26 = scalar_lea.hbm %s8633_s18, %s5341_s21 }
  0x8c   : > { %5444 = vmatprep.mubr.msk.bf16.mxu1 %vm437_vm0, %v5665_v4  ;;  %v5687_v29 = vld [vmem:[%s6148_s13 + $0x70] sm:$0xff]   ;;  %v5692_v30 = vld [vmem:[%s6141_s30 + $0x58] sm:$0xff]   ;;  %v5693_v32 = vld [vmem:[%s6141_s30 + $0x60] sm:$0xff]  }
  0x8d   : > { %v5688_v31 = vld [vmem:[%s6148_s13 + $0x78] sm:$0xff]   ;;  %v5694_v33 = vld [vmem:[%s6141_s30 + $0x68] sm:$0xff]   ;;  %v5695_v34 = vld [vmem:[%s6141_s30 + $0x70] sm:$0xff]  }
  0x8e   : > { %5405 = vmatmul.mubr.msk.bf16.vlgmr.msra.gmra.mrb[0].mxu0 %vm437_vm0, %v5678_v10  ;;  %v5696_v35 = vld [vmem:[%s6141_s30 + $0x78] sm:$0xff]   ;;  %v6237_v36 = vld [vmem:[%s8394_s5] ss:$0 sm:$0xff] }
  0x8f   : > { %5408 = vmatprep.mubr.msk.bf16.mxu0 %vm437_vm0, %v5679_v11  ;;  %v6251_v61 = vld [vmem:[%s8392_s3] ss:$0 sm:$0xff] }
  0x93   : > { %5445 = vmatmul.mubr.msk.bf16.gmra.mrb[4].mxu1 %vm437_vm0, %v5666_v5 }
  0x94   : > { %5448 = vmatprep.mubr.msk.bf16.mxu1 %vm437_vm0, %v5667_v6 }
  0x96   : > { %5409 = vmatmul.mubr.msk.bf16.gmra.mrb[4].mxu0 %vm437_vm0, %v5680_v14 }
  0x97   : > { %5412 = vmatprep.mubr.msk.bf16.mxu0 %vm437_vm0, %v5683_v15 }
  0x9b   : > { %5449 = vmatmul.mubr.msk.bf16.gmra.mrb[8].mxu1 %vm437_vm0, %v5668_v12 }
  0x9c   : > { %5452 = vmatprep.mubr.msk.bf16.mxu1 %vm437_vm0, %v5669_v13 }
  0x9e   : > { %5413 = vmatmul.mubr.msk.bf16.gmra.mrb[8].mxu0 %vm437_vm0, %v5684_v18 }
  0x9f   : > { %5416 = vmatprep.mubr.msk.bf16.mxu0 %vm437_vm0, %v5685_v19 }
  0xa3   : > { %5453 = vmatmul.mubr.msk.bf16.gmra.mrb[12].mxu1 %vm437_vm0, %v5670_v16 }
  0xa4   : > { %5456 = vmatprep.mubr.msk.bf16.mxu1 %vm437_vm0, %v5671_v17 }
  0xa6   : > { %5417 = vmatmul.mubr.msk.bf16.gmra.mrb[12].mxu0 %vm437_vm0, %v5686_v22 }
  0xa7   : > { %5420 = vmatprep.mubr.msk.bf16.mxu0 %vm437_vm0, %v5689_v23 }
  0xab   : > { %5457 = vmatmul.mubr.msk.bf16.gmra.mrb[16].mxu1 %vm437_vm0, %v5672_v20 }
  0xac   : > { %5460 = vmatprep.mubr.msk.bf16.mxu1 %vm437_vm0, %v5673_v21 }
  0xae   : > { %5421 = vmatmul.mubr.msk.bf16.gmra.mrb[16].mxu0 %vm437_vm0, %v5690_v26 }
  0xaf   : > { %5424 = vmatprep.mubr.msk.bf16.mxu0 %vm437_vm0, %v5691_v27 }
  0xb3   : > { %5461 = vmatmul.mubr.msk.bf16.gmra.mrb[20].mxu1 %vm437_vm0, %v5674_v24 }
  0xb4   : > { %5464 = vmatprep.mubr.msk.bf16.mxu1 %vm437_vm0, %v5681_v25 }
  0xb6   : > { %5425 = vmatmul.mubr.msk.bf16.gmra.mrb[20].mxu0 %vm437_vm0, %v5692_v30 }
  0xb7   : > { %5428 = vmatprep.mubr.msk.bf16.mxu0 %vm437_vm0, %v5693_v32 }
  0xbb   : > { %5465 = vmatmul.mubr.msk.bf16.gmra.mrb[24].mxu1 %vm437_vm0, %v5682_v28 }
  0xbc   : > { %5468 = vmatprep.mubr.msk.bf16.mxu1 %vm437_vm0, %v5687_v29 }
  0xbe   : > { %5429 = vmatmul.mubr.msk.bf16.gmra.mrb[24].mxu0 %vm437_vm0, %v5694_v33 }
  0xbf   : > { %5432 = vmatprep.mubr.msk.bf16.mxu0 %vm437_vm0, %v5695_v34 }
  0xc3   : > { %5469 = vmatmul.mubr.msk.bf16.gmra.mrb[28].mxu1 %vm437_vm0, %v5688_v31 }
  0xc6   : > { %5433 = vmatmul.mubr.msk.bf16.gmra.mrb[28].mxu0 %vm437_vm0, %v5696_v35 }
 0x15e   : > { %v5442_v37 = vpop.f32.mrb[0].mxu1 }
 0x15f   : > { %v1652_v38 = vadd.f32 %v5442_v37, %v6237_v36  ;;  %v1643_v39 = vpop.f32.mrb[1].mxu1 }
 0x160   : > { %v1644_v40 = vadd.f32 %v6237_v36, %v1643_v39  ;;  %v5443_v41 = vpop.f32.mrb[2].mxu1 }
 0x161   : > { %v1655_v42 = vadd.f32 %v5443_v41, %v6237_v36  ;;  %v1646_v43 = vpop.f32.mrb[3].mxu1  ;;  %v1772_v45 = vmax.f32 %v1652_v38, 0.0  ;;  %v5406_v0 = vpop.f32.mrb[0].mxu0 }
 0x162   : > { %v1647_v44 = vadd.f32 %v6237_v36, %v1646_v43  ;;  %v1770_v47 = vmax.f32 %v1644_v40, 0.0  ;;  %v1308_v2 = vadd.f32 %v5406_v0, %v6251_v61  ;;  %v1299_v3 = vpop.f32.mrb[1].mxu0 }
 0x163   : > { %v1773_v46 = vmax.f32 %v1655_v42, 0.0  ;;  %v1300_v6 = vadd.f32 %v6251_v61, %v1299_v3  ;;  %v5407_v7 = vpop.f32.mrb[2].mxu0 }
 0x164   : > { %v1771_v48 = vmax.f32 %v1647_v44, 0.0  ;;  %v1428_v10 = vmax.f32 %v1308_v2, 0.0  ;;  %v1311_v11 = vadd.f32 %v5407_v7, %v6251_v61  ;;  %v1302_v12 = vpop.f32.mrb[3].mxu0 }
 0x165   : > { %v1836_v49 = vpack.c.bf16 %v1773_v46, %v1772_v45  ;;  %v1426_v15 = vmax.f32 %v1300_v6, 0.0  ;;  %v1303_v16 = vadd.f32 %v6251_v61, %v1302_v12 }
 0x166   : > { %v5446_v50 = vpop.f32.mrb[4].mxu1  ;;  %v1835_v51 = vpack.c.bf16 %v1771_v48, %v1770_v47  ;;  %v1429_v20 = vmax.f32 %v1311_v11, 0.0 }
 0x167   : > { %v1668_v52 = vadd.f32 %v5446_v50, %v6237_v36  ;;  %v1659_v53 = vpop.f32.mrb[5].mxu1  ;;  %v1427_v23 = vmax.f32 %v1303_v16, 0.0 }
 0x168   : > { %v1660_v54 = vadd.f32 %v6237_v36, %v1659_v53  ;;  %v5447_v55 = vpop.f32.mrb[6].mxu1  ;;  %1867 = vrot.lane.b32.xlu0 %v1835_v51, %s5884_s23  ;;  %v1803_v25 = vpack.c.bf16 %v1429_v20, %v1428_v10 }
 0x169   : > { %v1776_v56 = vmax.f32 %v1668_v52, 0.0  ;;  %v1671_v57 = vadd.f32 %v5447_v55, %v6237_v36  ;;  %v1662_v58 = vpop.f32.mrb[7].mxu1  ;;  %v1802_v27 = vpack.c.bf16 %v1427_v23, %v1426_v15  ;;  %v5410_v28 = vpop.f32.mrb[4].mxu0 }
 0x16a   : > { %v1774_v59 = vmax.f32 %v1660_v54, 0.0  ;;  %v1663_v60 = vadd.f32 %v6237_v36, %v1662_v58  ;;  %1820 = vst.msk [vmem:[#allocation2 + $0x10] sm:$0xff] %vm437_vm0, %v1803_v25  ;;  %v1324_v30 = vadd.f32 %v5410_v28, %v6251_v61  ;;  %v1315_v31 = vpop.f32.mrb[5].mxu0 }
 0x16b   : > { %v1777_v62 = vmax.f32 %v1671_v57, 0.0  ;;  %1819 = vst.msk [vmem:[#allocation2 + $0x8] sm:$0xff] %vm437_vm0, %v1802_v27  ;;  %v1316_v34 = vadd.f32 %v6251_v61, %v1315_v31  ;;  %v5411_v35 = vpop.f32.mrb[6].mxu0 }
 0x16c   : > { %v1775_v63 = vmax.f32 %v1663_v60, 0.0  ;;  %1869 = vrot.lane.b32.xlu0 %v1836_v49, %s5884_s23  ;;  %v1432_v39 = vmax.f32 %v1324_v30, 0.0  ;;  %v1327_v40 = vadd.f32 %v5411_v35, %v6251_v61  ;;  %v1318_v41 = vpop.f32.mrb[7].mxu0 }
 0x16d   : > { %v1838_v1 = vpack.c.bf16 %v1777_v62, %v1776_v56  ;;  %v1430_v44 = vmax.f32 %v1316_v34, 0.0  ;;  %v1319_v45 = vadd.f32 %v6251_v61, %v1318_v41 }
 0x16e   : > { %v1837_v4 = vpack.c.bf16 %v1775_v63, %v1774_v59  ;;  %v5450_v5 = vpop.f32.mrb[8].mxu1  ;;  %v1433_v49 = vmax.f32 %v1327_v40, 0.0 }
 0x16f   : > { %v1684_v8 = vadd.f32 %v5450_v5, %v6237_v36  ;;  %v1675_v9 = vpop.f32.mrb[9].mxu1  ;;  %v1431_v52 = vmax.f32 %v1319_v45, 0.0 }
 0x170   : > { %1871 = vrot.lane.b32.xlu1 %v1837_v4, %s5884_s23  ;;  %v1676_v13 = vadd.f32 %v6237_v36, %v1675_v9  ;;  %v5451_v14 = vpop.f32.mrb[10].mxu1  ;;  %v1805_v54 = vpack.c.bf16 %v1433_v49, %v1432_v39  ;;  %v5697_v49 = vld [vmem:[#allocation9] sm:$0xff]  }
 0x171   : > { %v1780_v17 = vmax.f32 %v1684_v8, 0.0  ;;  %v1687_v18 = vadd.f32 %v5451_v14, %v6237_v36  ;;  %v1678_v19 = vpop.f32.mrb[11].mxu1  ;;  %v1804_v56 = vpack.c.bf16 %v1431_v52, %v1430_v44  ;;  %v5414_v57 = vpop.f32.mrb[8].mxu0 }
 0x172   : > { %v1778_v21 = vmax.f32 %v1676_v13, 0.0  ;;  %v1679_v22 = vadd.f32 %v6237_v36, %v1678_v19  ;;  %1822 = vst.msk [vmem:[#allocation2 + $0x20] sm:$0xff] %vm437_vm0, %v1805_v54  ;;  %v1340_v59 = vadd.f32 %v5414_v57, %v6251_v61  ;;  %v1331_v60 = vpop.f32.mrb[9].mxu0  ;;  %v5698_v57 = vld [vmem:[#allocation9 + $0x8] sm:$0xff]  }
 0x173   : > { %v1781_v24 = vmax.f32 %v1687_v18, 0.0  ;;  %1821 = vst.msk [vmem:[#allocation2 + $0x18] sm:$0xff] %vm437_vm0, %v1804_v56  ;;  %v1332_v0 = vadd.f32 %v6251_v61, %v1331_v60 }
 0x174   : > { %v1779_v26 = vmax.f32 %v1679_v22, 0.0  ;;  %1873 = vrot.lane.b32.xlu1 %v1838_v1, %s5884_s23  ;;  %v5415_v1 = vpop.f32.mrb[10].mxu0  ;;  %v1436_v4 = vmax.f32 %v1340_v59, 0.0 }
 0x175   : > { %v1840_v29 = vpack.c.bf16 %v1781_v24, %v1780_v17  ;;  %v1343_v5 = vadd.f32 %v5415_v1, %v6251_v61  ;;  %v1334_v6 = vpop.f32.mrb[11].mxu0  ;;  %v1434_v9 = vmax.f32 %v1332_v0, 0.0 }
 0x176   : > { %v1839_v32 = vpack.c.bf16 %v1779_v26, %v1778_v21  ;;  %v5454_v33 = vpop.f32.mrb[12].mxu1  ;;  %v1335_v10 = vadd.f32 %v6251_v61, %v1334_v6 }
 0x177   : > { %v1700_v37 = vadd.f32 %v5454_v33, %v6237_v36  ;;  %v1691_v38 = vpop.f32.mrb[13].mxu1  ;;  %v1437_v14 = vmax.f32 %v1343_v5, 0.0 }
 0x178   : > { %v1692_v42 = vadd.f32 %v6237_v36, %v1691_v38  ;;  %v5455_v43 = vpop.f32.mrb[14].mxu1  ;;  %1875 = vrot.lane.b32.xlu0 %v1839_v32, %s5884_s23  ;;  %1877 = vrot.lane.b32.xlu1 %v1840_v29, %s5884_s23  ;;  %v1435_v17 = vmax.f32 %v1335_v10, 0.0 }
 0x179   : > { %v1784_v46 = vmax.f32 %v1700_v37, 0.0  ;;  %v1703_v47 = vadd.f32 %v5455_v43, %v6237_v36  ;;  %v1694_v48 = vpop.f32.mrb[15].mxu1  ;;  %v1807_v19 = vpack.c.bf16 %v1437_v14, %v1436_v4  ;;  %v5418_v22 = vpop.f32.mrb[12].mxu0 }
 0x17a   : > { %v1782_v50 = vmax.f32 %v1692_v42, 0.0  ;;  %v1695_v51 = vadd.f32 %v6237_v36, %v1694_v48  ;;  %v1806_v21 = vpack.c.bf16 %v1435_v17, %v1434_v9  ;;  %v1356_v24 = vadd.f32 %v5418_v22, %v6251_v61  ;;  %v1347_v25 = vpop.f32.mrb[13].mxu0 }
 0x17b   : > { %v1785_v53 = vmax.f32 %v1703_v47, 0.0  ;;  %1824 = vst.msk [vmem:[#allocation2 + $0x30] sm:$0xff] %vm437_vm0, %v1807_v19  ;;  %v1348_v28 = vadd.f32 %v6251_v61, %v1347_v25  ;;  %v5419_v29 = vpop.f32.mrb[14].mxu0 }
 0x17c   : > { %v1783_v55 = vmax.f32 %v1695_v51, 0.0  ;;  %1823 = vst.msk [vmem:[#allocation2 + $0x28] sm:$0xff] %vm437_vm0, %v1806_v21  ;;  %v1440_v32 = vmax.f32 %v1356_v24, 0.0  ;;  %v1359_v33 = vadd.f32 %v5419_v29, %v6251_v61  ;;  %v1350_v34 = vpop.f32.mrb[15].mxu0  ;;  %v5700_v24 = vld [vmem:[#allocation9 + $0x18] sm:$0xff]  }
 0x17d   : > { %v1842_v58 = vpack.c.bf16 %v1785_v53, %v1784_v46  ;;  %v1438_v38 = vmax.f32 %v1348_v28, 0.0  ;;  %v1351_v39 = vadd.f32 %v6251_v61, %v1350_v34  ;;  %v5885_v53 = vmov 0  }
 0x17e   : > { %v1841_v62 = vpack.c.bf16 %v1783_v55, %v1782_v50  ;;  %v5458_v63 = vpop.f32.mrb[16].mxu1  ;;  %v1441_v43 = vmax.f32 %v1359_v33, 0.0  ;;  %2237 = vmatprep.subr.bf16.mxu0 %v5885_v53  ;;  %434 = vst.msk [vmem:[#allocation2] sm:$0xff] %vm433_vm1, %v5885_v53  ;;  %436 = vst.msk [vmem:[#allocation2 + $0x88] sm:$0xff] %vm433_vm1, %v5885_v53  ;;  %5516 = vmatprep.subr.bf16.mxu1 %v5885_v53 }
 0x17f   : > { %v1716_v2 = vadd.f32 %v5458_v63, %v6237_v36  ;;  %v1707_v3 = vpop.f32.mrb[17].mxu1  ;;  %1881 = vrot.lane.b32.xlu1 %v1842_v58, %s5884_s23  ;;  %v1439_v46 = vmax.f32 %v1351_v39, 0.0  ;;  %438 = vst.msk [vmem:[#allocation3] sm:$0xff] %vm437_vm0, %v5885_v53  ;;  %440 = vst.msk [vmem:[#allocation3 + $0x88] sm:$0xff] %vm437_vm0, %v5885_v53  ;;  %2238 = vmatpush1.bf16.msra.mxu0 %v5697_v49 }
 0x180   : > { %v1708_v7 = vadd.f32 %v6237_v36, %v1707_v3  ;;  %v5459_v8 = vpop.f32.mrb[18].mxu1  ;;  %1879 = vrot.lane.b32.xlu0 %v1841_v62, %s5884_s23  ;;  %v1809_v48 = vpack.c.bf16 %v1441_v43, %v1440_v32  ;;  %2239 = vmatprep.subr.bf16.mxu0 %v5885_v53  ;;  %v5701_v43 = vld [vmem:[#allocation9 + $0x20] sm:$0xff]  }
 0x181   : > { %v1788_v11 = vmax.f32 %v1716_v2, 0.0  ;;  %v1719_v12 = vadd.f32 %v5459_v8, %v6237_v36  ;;  %v1710_v13 = vpop.f32.mrb[19].mxu1  ;;  %v1808_v51 = vpack.c.bf16 %v1439_v46, %v1438_v38  ;;  %v5422_v52 = vpop.f32.mrb[16].mxu0  ;;  %5528 = vmatpush1.bf16.msra.mxu1 %v5697_v49 }
 0x182   : > { %v1786_v15 = vmax.f32 %v1708_v7, 0.0  ;;  %v1711_v16 = vadd.f32 %v6237_v36, %v1710_v13  ;;  %1826 = vst.msk [vmem:[#allocation2 + $0x40] sm:$0xff] %vm437_vm0, %v1809_v48  ;;  %v1372_v55 = vadd.f32 %v5422_v52, %v6251_v61  ;;  %v1363_v56 = vpop.f32.mrb[17].mxu0  ;;  %5517 = vmatprep.subr.bf16.mxu1 %v5885_v53  ;;  %v5702_v52 = vld [vmem:[#allocation9 + $0x28] sm:$0xff]  }
 0x183   : > { %v1789_v18 = vmax.f32 %v1719_v12, 0.0  ;;  %1825 = vst.msk [vmem:[#allocation2 + $0x38] sm:$0xff] %vm437_vm0, %v1808_v51  ;;  %v1364_v60 = vadd.f32 %v6251_v61, %v1363_v56  ;;  %v5423_v62 = vpop.f32.mrb[18].mxu0  ;;  %2240 = vmatpush1.bf16.msra.mxu0 %v5698_v57  ;;  %v5699_v12 = vld [vmem:[#allocation9 + $0x10] sm:$0xff]   ;;  %v5704_v56 = vld [vmem:[#allocation9 + $0x38] sm:$0xff]  }
 0x184   : > { %v1787_v20 = vmax.f32 %v1711_v16, 0.0  ;;  %v1444_v1 = vmax.f32 %v1372_v55, 0.0  ;;  %v1375_v2 = vadd.f32 %v5423_v62, %v6251_v61  ;;  %v1366_v3 = vpop.f32.mrb[19].mxu0  ;;  %2241 = vmatprep.subr.bf16.mxu0 %v5885_v53 }
 0x185   : > { %v1844_v23 = vpack.c.bf16 %v1789_v18, %v1788_v11  ;;  %v1442_v6 = vmax.f32 %v1364_v60, 0.0  ;;  %v1367_v7 = vadd.f32 %v6251_v61, %v1366_v3  ;;  %5529 = vmatpush1.bf16.msra.mxu1 %v5698_v57  ;;  %v5705_v57 = vld [vmem:[#allocation9 + $0x40] sm:$0xff]   ;;  %v5708_v60 = vld [vmem:[#allocation9 + $0x58] sm:$0xff]  }
 0x186   : > { %v1843_v26 = vpack.c.bf16 %v1787_v20, %v1786_v15  ;;  %v5462_v27 = vpop.f32.mrb[20].mxu1  ;;  %v1445_v11 = vmax.f32 %v1375_v2, 0.0  ;;  %5518 = vmatprep.subr.bf16.mxu1 %v5885_v53 }
 0x187   : > { %v1732_v30 = vadd.f32 %v5462_v27, %v6237_v36  ;;  %v1723_v31 = vpop.f32.mrb[21].mxu1  ;;  %v1443_v15 = vmax.f32 %v1367_v7, 0.0  ;;  %2242 = vmatpush1.bf16.msra.mxu0 %v5699_v12 }
 0x188   : > { %v1724_v35 = vadd.f32 %v6237_v36, %v1723_v31  ;;  %v5463_v37 = vpop.f32.mrb[22].mxu1  ;;  %1883 = vrot.lane.b32.xlu0 %v1843_v26, %s5884_s23  ;;  %v1811_v17 = vpack.c.bf16 %v1445_v11, %v1444_v1  ;;  %2243 = vmatprep.subr.bf16.mxu0 %v5885_v53 }
 0x189   : > { %v1792_v40 = vmax.f32 %v1732_v30, 0.0  ;;  %v1735_v41 = vadd.f32 %v5463_v37, %v6237_v36  ;;  %v1726_v42 = vpop.f32.mrb[23].mxu1  ;;  %v1810_v19 = vpack.c.bf16 %v1443_v15, %v1442_v6  ;;  %v5426_v20 = vpop.f32.mrb[20].mxu0  ;;  %5530 = vmatpush1.bf16.msra.mxu1 %v5699_v12 }
 0x18a   : > { %v1790_v44 = vmax.f32 %v1724_v35, 0.0  ;;  %v1727_v45 = vadd.f32 %v6237_v36, %v1726_v42  ;;  %1828 = vst.msk [vmem:[#allocation2 + $0x50] sm:$0xff] %vm437_vm0, %v1811_v17  ;;  %v1388_v22 = vadd.f32 %v5426_v20, %v6251_v61  ;;  %5519 = vmatprep.subr.bf16.mxu1 %v5885_v53 }
 0x18b   : > { %v1793_v47 = vmax.f32 %v1735_v41, 0.0  ;;  %1827 = vst.msk [vmem:[#allocation2 + $0x48] sm:$0xff] %vm437_vm0, %v1810_v19  ;;  %2244 = vmatpush1.bf16.msra.mxu0 %v5700_v24 }
 0x18c   : > { %v1791_v50 = vmax.f32 %v1727_v45, 0.0  ;;  %1885 = vrot.lane.b32.xlu0 %v1844_v23, %s5884_s23  ;;  %v1379_v23 = vpop.f32.mrb[21].mxu0  ;;  %v1448_v31 = vmax.f32 %v1388_v22, 0.0  ;;  %2245 = vmatprep.subr.bf16.mxu0 %v5885_v53 }
 0x18d   : > { %v6309_v54 = vpack.c.bf16 %v1793_v47, %v1792_v40  ;;  %v1380_v27 = vadd.f32 %v6251_v61, %v1379_v23  ;;  %v5427_v28 = vpop.f32.mrb[22].mxu0  ;;  %5531 = vmatpush1.bf16.msra.mxu1 %v5700_v24 }
 0x18e   : > { %v1845_v58 = vpack.c.bf16 %v1791_v50, %v1790_v44  ;;  %v5466_v59 = vpop.f32.mrb[24].mxu1  ;;  %v1391_v32 = vadd.f32 %v5427_v28, %v6251_v61  ;;  %v1382_v33 = vpop.f32.mrb[23].mxu0  ;;  %5520 = vmatprep.subr.bf16.mxu1 %v5885_v53 }
 0x18f   : > { %v1748_v63 = vadd.f32 %v5466_v59, %v6237_v36  ;;  %v1739_v0 = vpop.f32.mrb[25].mxu1  ;;  %v1446_v37 = vmax.f32 %v1380_v27, 0.0  ;;  %v1383_v38 = vadd.f32 %v6251_v61, %v1382_v33  ;;  %2246 = vmatpush1.bf16.msra.mxu0 %v5701_v43  ;;  %v5707_v59 = vld [vmem:[#allocation9 + $0x50] sm:$0xff]  }
 0x190   : > { %1887 = vrot.lane.b32.xlu0 %v1845_v58, %s5884_s23  ;;  %v1740_v4 = vadd.f32 %v6237_v36, %v1739_v0  ;;  %v5467_v5 = vpop.f32.mrb[26].mxu1  ;;  %v1449_v42 = vmax.f32 %v1391_v32, 0.0  ;;  %2247 = vmatprep.subr.bf16.mxu0 %v5885_v53  ;;  %v5706_v58 = vld [vmem:[#allocation9 + $0x48] sm:$0xff]  }
 0x191   : > { %v1796_v8 = vmax.f32 %v1748_v63, 0.0  ;;  %v1751_v9 = vadd.f32 %v5467_v5, %v6237_v36  ;;  %v1742_v10 = vpop.f32.mrb[27].mxu1  ;;  %v1447_v46 = vmax.f32 %v1383_v38, 0.0  ;;  %5532 = vmatpush1.bf16.msra.mxu1 %v5701_v43  ;;  %v5430_v62 = vpop.f32.mrb[24].mxu0 }
 0x192   : > { %v1794_v13 = vmax.f32 %v1740_v4, 0.0  ;;  %v1743_v14 = vadd.f32 %v6237_v36, %v1742_v10  ;;  %v1813_v48 = vpack.c.bf16 %v1449_v42, %v1448_v31  ;;  %5521 = vmatprep.subr.bf16.mxu1 %v5885_v53  ;;  %v1404_v63 = vadd.f32 %v5430_v62, %v6251_v61  ;;  %v1395_v0 = vpop.f32.mrb[25].mxu0 }
 0x193   : > { %v1797_v16 = vmax.f32 %v1751_v9, 0.0  ;;  %v1812_v50 = vpack.c.bf16 %v1447_v46, %v1446_v37  ;;  %2248 = vmatpush1.bf16.msra.mxu0 %v5702_v52  ;;  %v1396_v1 = vadd.f32 %v6251_v61, %v1395_v0  ;;  %v5431_v2 = vpop.f32.mrb[26].mxu0  ;;  %v1932_v46 = vld [vmem:[#allocation2] sm:$0xff] }
 0x194   : > { %v1795_v18 = vmax.f32 %v1743_v14, 0.0  ;;  %1830 = vst.msk [vmem:[#allocation2 + $0x60] sm:$0xff] %vm437_vm0, %v1813_v48  ;;  %2249 = vmatprep.subr.bf16.mxu0 %v5885_v53  ;;  %v1452_v3 = vmax.f32 %v1404_v63, 0.0  ;;  %v1407_v4 = vadd.f32 %v5431_v2, %v6251_v61  ;;  %v1398_v5 = vpop.f32.mrb[27].mxu0 }
 0x195   : > { %v6327_v21 = vpack.c.bf16 %v1797_v16, %v1796_v8  ;;  %1829 = vst.msk [vmem:[#allocation2 + $0x58] sm:$0xff] %vm437_vm0, %v1812_v50  ;;  %5533 = vmatpush1.bf16.msra.mxu1 %v5702_v52  ;;  %v1450_v6 = vmax.f32 %v1396_v1, 0.0  ;;  %v1399_v7 = vadd.f32 %v6251_v61, %v1398_v5 }
 0x196   : > { %v6331_v25 = vpack.c.bf16 %v1795_v18, %v1794_v13  ;;  %v5470_v26 = vpop.f32.mrb[28].mxu1  ;;  %5522 = vmatprep.subr.bf16.mxu1 %v5885_v53  ;;  %v1453_v8 = vmax.f32 %v1407_v4, 0.0 }
 0x197   : > { %v1764_v29 = vadd.f32 %v5470_v26, %v6237_v36  ;;  %v1755_v30 = vpop.f32.mrb[29].mxu1  ;;  %v1451_v9 = vmax.f32 %v1399_v7, 0.0 }
 0x198   : > { %v1756_v34 = vadd.f32 %v6237_v36, %v1755_v30  ;;  %v5471_v35 = vpop.f32.mrb[30].mxu1  ;;  %v1815_v10 = vpack.c.bf16 %v1453_v8, %v1452_v3  ;;  %v5310_v3 = vld [vmem:[%s8396_s7] ss:$0 sm:$0xff] }
 0x199   : > { %v1800_v39 = vmax.f32 %v1764_v29, 0.0  ;;  %v1767_v40 = vadd.f32 %v5471_v35, %v6237_v36  ;;  %v1758_v41 = vpop.f32.mrb[31].mxu1  ;;  %v5434_v12 = vpop.f32.mrb[28].mxu0 }
 0x19a   : > { %v1798_v44 = vmax.f32 %v1756_v34, 0.0  ;;  %v1759_v45 = vadd.f32 %v6237_v36, %v1758_v41  ;;  %v5703_v36 = vld [vmem:[#allocation9 + $0x30] sm:$0xff]   ;;  %1832 = vst.msk [vmem:[#allocation2 + $0x70] sm:$0xff] %vm437_vm0, %v1815_v10  ;;  %v1420_v13 = vadd.f32 %v5434_v12, %v6251_v61  ;;  %v1411_v14 = vpop.f32.mrb[29].mxu0 }
 0x19b   : > { %v1801_v47 = vmax.f32 %v1767_v40, 0.0  ;;  %2250 = vmatpush1.bf16.msra.mxu0 %v5703_v36  ;;  %5534 = vmatpush1.bf16.msra.mxu1 %v5703_v36  ;;  %v1412_v15 = vadd.f32 %v6251_v61, %v1411_v14  ;;  %v5435_v16 = vpop.f32.mrb[30].mxu0 }
 0x19c   : > { %v1799_v49 = vmax.f32 %v1759_v45, 0.0  ;;  %2251 = vmatprep.subr.bf16.mxu0 %v5885_v53  ;;  %5523 = vmatprep.subr.bf16.mxu1 %v5885_v53  ;;  %v1456_v18 = vmax.f32 %v1420_v13, 0.0  ;;  %v1423_v19 = vadd.f32 %v5435_v16, %v6251_v61  ;;  %v1414_v20 = vpop.f32.mrb[31].mxu0 }
 0x19d   : > { %v6345_v51 = vpack.c.bf16 %v1801_v47, %v1800_v39  ;;  %v1454_v22 = vmax.f32 %v1412_v15, 0.0  ;;  %v1415_v23 = vadd.f32 %v6251_v61, %v1414_v20 }
 0x19e   : > { %v6348_v55 = vpack.c.bf16 %v1799_v49, %v1798_v44  ;;  %v1457_v24 = vmax.f32 %v1423_v19, 0.0 }
 0x19f   : > { %2252 = vmatpush1.bf16.msra.mxu0 %v5704_v56  ;;  %5535 = vmatpush1.bf16.msra.mxu1 %v5704_v56  ;;  %v1455_v26 = vmax.f32 %v1415_v23, 0.0 }
 0x1a0   : > { %2253 = vmatprep.subr.bf16.mxu0 %v5885_v53  ;;  %5524 = vmatprep.subr.bf16.mxu1 %v5885_v53  ;;  %v1817_v29 = vpack.c.bf16 %v1457_v24, %v1456_v18 }
 0x1a1   : > { %v1816_v30 = vpack.c.bf16 %v1455_v26, %v1454_v22  ;;  %v1980_v26 = vld [vmem:[#allocation2 + $0x88] sm:$0xff] }
 0x1a2   : > { %1834 = vst.msk [vmem:[#allocation2 + $0x80] sm:$0xff] %vm437_vm0, %v1817_v29 }
 0x1a3   : > { %2254 = vmatpush1.bf16.msra.mxu0 %v5705_v57  ;;  %5536 = vmatpush1.bf16.msra.mxu1 %v5705_v57  ;;  %1833 = vst.msk [vmem:[#allocation2 + $0x78] sm:$0xff] %vm437_vm0, %v1816_v30  ;;  %v441_v30 = vlaneseq }
 0x1a4   : > { %2255 = vmatprep.subr.bf16.mxu0 %v5885_v53  ;;  %5525 = vmatprep.subr.bf16.mxu1 %v5885_v53 }
 0x1a7   : > { %2256 = vmatpush1.bf16.msra.mxu0 %v5706_v58  ;;  %5537 = vmatpush1.bf16.msra.mxu1 %v5706_v58 }
 0x1a8   : > { %2257 = vmatprep.subr.bf16.mxu0 %v5885_v53  ;;  %5526 = vmatprep.subr.bf16.mxu1 %v5885_v53 }
 0x1ab   : > { %2258 = vmatpush1.bf16.msra.mxu0 %v5707_v59  ;;  %5538 = vmatpush1.bf16.msra.mxu1 %v5707_v59 }
 0x1ac   : > { %2259 = vmatprep.subr.bf16.mxu0 %v5885_v53  ;;  %5527 = vmatprep.subr.bf16.mxu1 %v5885_v53  ;;  %v1814_v53 = vpack.c.bf16 %v1451_v9, %v1450_v6 }
 0x1ae   : > { %1831 = vst.msk [vmem:[#allocation2 + $0x68] sm:$0xff] %vm437_vm0, %v1814_v53 }
 0x1af   : > { %2260 = vmatpush1.bf16.msra.mxu0 %v5708_v60  ;;  %5539 = vmatpush1.bf16.msra.mxu1 %v5708_v60 }
 0x1da   : > { %v1868_v11 = vpop.permute.xlu0 %1867 }
 0x1db   : > { %1916 = vst.msk [vmem:[#allocation2 + $0x8] sm:$0xff] %vm1915_vm2, %v1868_v11 }
 0x1de   : > { %v1870_v17 = vpop.permute.xlu0 %1869 }
 0x1df   : > { %1917 = vst.msk [vmem:[#allocation2 + $0x10] sm:$0xff] %vm1915_vm2, %v1870_v17 }
 0x1e2   : > { %v1872_v27 = vpop.permute.xlu1 %1871  ;;  %v1948_v28 = vld [vmem:[#allocation2 + $0x8] sm:$0xff] }
 0x1e3   : > { %1918 = vst.msk [vmem:[#allocation2 + $0x18] sm:$0xff] %vm1915_vm2, %v1872_v27  ;;  %1997 = vrot.lane.b32.xlu1 %v1948_v28, %s5886_s20 }
 0x1e6   : > { %v1874_v31 = vpop.permute.xlu1 %1873  ;;  %v1965_v32 = vld [vmem:[#allocation2 + $0x10] sm:$0xff] }
 0x1e7   : > { %1919 = vst.msk [vmem:[#allocation2 + $0x20] sm:$0xff] %vm1915_vm2, %v1874_v31  ;;  %5294 = vmatprep.mubr.msk.bf16.mxu0 %vm433_vm1, %v1965_v32  ;;  %1999 = vrot.lane.b32.xlu1 %v1965_v32, %s5886_s20  ;;  %v6500_v31 = vshrl.u32 %v441_v30, 7 }
 0x1e9   : > { %vm2430_vm3 = vcmp.lt.s32.totalorder %v6500_v31, 1 }
 0x1ea   : > { %v6384_v61 = vld [vmem:[#allocation2 + $0x18] sm:$0xff]  ;;  %v1876_v33 = vpop.permute.xlu0 %1875  ;;  %v1878_v34 = vpop.permute.xlu1 %1877 }
 0x1eb   : > { %2001 = vrot.lane.b32.xlu0 %v6384_v61, %s5886_s20  ;;  %1891 = vrot.lane.b32.xlu1 %v6331_v25, %s5884_s23  ;;  %1920 = vst.msk [vmem:[#allocation2 + $0x28] sm:$0xff] %vm1915_vm2, %v1876_v33  ;;  %1921 = vst.msk [vmem:[#allocation2 + $0x30] sm:$0xff] %vm1915_vm2, %v1878_v34 }
 0x1ee   : > { %v6396_v38 = vld [vmem:[#allocation2 + $0x20] sm:$0xff] }
 0x1ef   : > { %1893 = vrot.lane.b32.xlu0 %v6327_v21, %s5884_s23  ;;  %1889 = vrot.lane.b32.xlu1 %v6309_v54, %s5884_s23 }
 0x1f1   : > { %v1882_v35 = vpop.permute.xlu1 %1881 }
 0x1f2   : > { %v1880_v37 = vpop.permute.xlu0 %1879  ;;  %1923 = vst.msk [vmem:[#allocation2 + $0x40] sm:$0xff] %vm1915_vm2, %v1882_v35  ;;  %v6404_v25 = vld [vmem:[#allocation2 + $0x28] sm:$0xff]  ;;  %v6410_v54 = vld [vmem:[#allocation2 + $0x30] sm:$0xff] }
 0x1f3   : > { %1922 = vst.msk [vmem:[#allocation2 + $0x38] sm:$0xff] %vm1915_vm2, %v1880_v37  ;;  %1895 = vrot.lane.b32.xlu0 %v6348_v55, %s5884_s23  ;;  %2003 = vrot.lane.b32.xlu1 %v6396_v38, %s5886_s20 }
 0x1f7   : > { %1897 = vrot.lane.b32.xlu0 %v6345_v51, %s5884_s23  ;;  %2005 = vrot.lane.b32.xlu1 %v6404_v25, %s5886_s20 }
 0x1f9   : > { %v6419_v40 = vld [vmem:[#allocation2 + $0x40] sm:$0xff] }
 0x1fa   : > { %v1884_v21 = vpop.permute.xlu0 %1883  ;;  %v6412_v39 = vld [vmem:[#allocation2 + $0x38] sm:$0xff] }
 0x1fb   : > { %1924 = vst.msk [vmem:[#allocation2 + $0x48] sm:$0xff] %vm1915_vm2, %v1884_v21  ;;  %2009 = vrot.lane.b32.xlu0 %v6412_v39, %s5886_s20  ;;  %2007 = vrot.lane.b32.xlu1 %v6410_v54, %s5886_s20  ;;  %v446_v21 = vadd.s32 32, %v6500_v31 }
 0x1fe   : > { %v1886_v41 = vpop.permute.xlu0 %1885 }
 0x1ff   : > { %1925 = vst.msk [vmem:[#allocation2 + $0x50] sm:$0xff] %vm1915_vm2, %v1886_v41  ;;  %2011 = vrot.lane.b32.xlu1 %v6419_v40, %s5886_s20 }
 0x202   : > { %v1888_v42 = vpop.permute.xlu0 %1887  ;;  %v6424_v43 = vld [vmem:[#allocation2 + $0x48] sm:$0xff] }
 0x203   : > { %1926 = vst.msk [vmem:[#allocation2 + $0x58] sm:$0xff] %vm1915_vm2, %v1888_v42  ;;  %2013 = vrot.lane.b32.xlu0 %v6424_v43, %s5886_s20  ;;  %v8416_v42 = vmov 0.0  }
 0x206   : > { %v6429_v44 = vld [vmem:[#allocation2 + $0x50] sm:$0xff] }
 0x207   : > { %2015 = vrot.lane.b32.xlu1 %v6429_v44, %s5886_s20 }
 0x20a   : > { %v6433_v45 = vld [vmem:[#allocation2 + $0x58] sm:$0xff] }
 0x20b   : > { %2017 = vrot.lane.b32.xlu0 %v6433_v45, %s5886_s20 }
 0x255   : > { %v1998_v47 = vpop.permute.xlu1 %1997 }
 0x256   : > { %v2031_v48 = vsel %vm433_vm1, %v1932_v46, %v1998_v47 }
 0x257   : > { %2270 = vmatmul.mubr.bf16.vlgmr.msra.gmra.mrb[32].mxu0 %v2031_v48 }
 0x258   : > { %5295 = vmatprep.mubr.msk.bf16.mxu0 %vm433_vm1, %v6384_v61 }
 0x259   : > { %v2000_v49 = vpop.permute.xlu1 %1999 }
 0x25a   : > { %v2035_v52 = vsel %vm433_vm1, %v1948_v28, %v2000_v49 }
 0x25d   : > { %v2002_v50 = vpop.permute.xlu0 %2001  ;;  %v1892_v51 = vpop.permute.xlu1 %1891 }
 0x25e   : > { %1928 = vst.msk [vmem:[#allocation2 + $0x68] sm:$0xff] %vm1915_vm2, %v1892_v51  ;;  %v2039_v58 = vsel %vm433_vm1, %v1965_v32, %v2002_v50  ;;  %v444_v32 = vadd.s32 16, %v6500_v31  ;;  %v448_v51 = vadd.s32 48, %v6500_v31 }
 0x25f   : > { %2278 = vmatmul.mubr.bf16.gmra.mrb[36].mxu0 %v2035_v52 }
 0x260   : > { %5296 = vmatprep.mubr.msk.bf16.mxu0 %vm433_vm1, %v6396_v38  ;;  %v492_v35 = vand.u32 15, %v444_v32 }
 0x261   : > { %v1894_v55 = vpop.permute.xlu0 %1893  ;;  %v1890_v36 = vpop.permute.xlu1 %1889 }
 0x262   : > { %1929 = vst.msk [vmem:[#allocation2 + $0x70] sm:$0xff] %vm1915_vm2, %v1894_v55  ;;  %1927 = vst.msk [vmem:[#allocation2 + $0x60] sm:$0xff] %vm1915_vm2, %v1890_v36  ;;  %vm860_vm4 = vcmp.gt.s32.totalorder %v492_v35, 0 }
 0x265   : > { %v1896_v56 = vpop.permute.xlu0 %1895  ;;  %v1960_v57 = vld [vmem:[#allocation2 + $0x68] sm:$0xff]  ;;  %v2004_v63 = vpop.permute.xlu1 %2003 }
 0x266   : > { %1930 = vst.msk [vmem:[#allocation2 + $0x78] sm:$0xff] %vm1915_vm2, %v1896_v56  ;;  %2021 = vrot.lane.b32.xlu1 %v1960_v57, %s5886_s20  ;;  %v2043_v1 = vsel %vm433_vm1, %v6384_v61, %v2004_v63 }
 0x267   : > { %2286 = vmatmul.mubr.bf16.gmra.mrb[40].mxu0 %v2039_v58  ;;  %v520_v58 = vand.u32 15, %v448_v51 }
 0x268   : > { %5297 = vmatprep.mubr.msk.bf16.mxu0 %vm433_vm1, %v6404_v25 }
 0x269   : > { %v1898_v59 = vpop.permute.xlu0 %1897  ;;  %v1977_v60 = vld [vmem:[#allocation2 + $0x70] sm:$0xff]  ;;  %v1959_v62 = vld [vmem:[#allocation2 + $0x60] sm:$0xff]  ;;  %v2006_v4 = vpop.permute.xlu1 %2005  ;;  %vm864_vm6 = vcmp.gt.s32.totalorder %v520_v58, 0 }
 0x26a   : > { %1931 = vst.msk [vmem:[#allocation2 + $0x80] sm:$0xff] %vm1915_vm2, %v1898_v59  ;;  %5306 = vmatprep.mubr.msk.bf16.mxu1 %vm433_vm1, %v1977_v60  ;;  %2023 = vrot.lane.b32.xlu1 %v1977_v60, %s5886_s20  ;;  %v2047_v5 = vsel %vm433_vm1, %v6396_v38, %v2006_v4 }
 0x26b   : > { %2019 = vrot.lane.b32.xlu0 %v1959_v62, %s5886_s20 }
 0x26d   : > { %v1962_v0 = vld [vmem:[#allocation2 + $0x78] sm:$0xff]  ;;  %v2008_v6 = vpop.permute.xlu1 %2007  ;;  %v2010_v8 = vpop.permute.xlu0 %2009 }
 0x26e   : > { %v2051_v7 = vsel %vm433_vm1, %v6404_v25, %v2008_v6  ;;  %v2055_v9 = vsel %vm433_vm1, %v6410_v54, %v2010_v8 }
 0x26f   : > { %2025 = vrot.lane.b32.xlu0 %v1962_v0, %s5886_s20  ;;  %2294 = vmatmul.mubr.bf16.gmra.mrb[44].mxu0 %v2043_v1  ;;  %v450_v1 = vadd.s32 64, %v6500_v31 }
 0x270   : > { %5298 = vmatprep.mubr.msk.bf16.mxu0 %vm433_vm1, %v6410_v54 }
 0x271   : > { %v1963_v2 = vld [vmem:[#allocation2 + $0x80] sm:$0xff]  ;;  %v2012_v10 = vpop.permute.xlu1 %2011 }
 0x272   : > { %2027 = vrot.lane.b32.xlu1 %v1963_v2, %s5886_s20  ;;  %v2059_v53 = vsel %vm433_vm1, %v6412_v39, %v2012_v10 }
 0x273   : > { %3046 = vrot.lane.b32.xlu0 %v5310_v3, %s5884_s23 }
 0x275   : > { %v2014_v11 = vpop.permute.xlu0 %2013 }
 0x276   : > { %v2063_v12 = vsel %vm433_vm1, %v6419_v40, %v2014_v11 }
 0x277   : > { %2302 = vmatmul.mubr.bf16.gmra.mrb[48].mxu0 %v2047_v5  ;;  %v6566_v5 = vsel %vm864_vm6, 1.0, %v8416_v42  ;;  %vm2655_vm6 = vcmp.lt.s32.totalorder %v6500_v31, 7 }
 0x278   : > { %5299 = vmatprep.mubr.msk.bf16.mxu0 %vm433_vm1, %v6412_v39  ;;  %8502 = vst [vmem:[#allocation23_spill] sm:$0xff] %v6566_v5 }
 0x279   : > { %v2016_v13 = vpop.permute.xlu1 %2015 }
 0x27a   : > { %v2067_v14 = vsel %vm433_vm1, %v6424_v43, %v2016_v13 }
 0x27d   : > { %v2018_v15 = vpop.permute.xlu0 %2017 }
 0x27e   : > { %v2071_v16 = vsel %vm433_vm1, %v6429_v44, %v2018_v15 }
 0x27f   : > { %2310 = vmatmul.mubr.bf16.gmra.mrb[52].mxu0 %v2051_v7  ;;  %v534_v7 = vand.u32 15, %v450_v1 }
 0x280   : > { %5300 = vmatprep.mubr.msk.bf16.mxu0 %vm433_vm1, %v6419_v40 }
 0x281   : > { %vm866_vm7 = vcmp.gt.s32.totalorder %v534_v7, 0 }
 0x287   : > { %2318 = vmatmul.mubr.bf16.gmra.mrb[56].mxu0 %v2055_v9 }
 0x288   : > { %5301 = vmatprep.mubr.msk.bf16.mxu0 %vm433_vm1, %v6424_v43  ;;  %v6526_v43 = vsel %vm860_vm4, 1.0, %v8416_v42 }
 0x289   : > { %8500 = vst [vmem:[#allocation21_spill] sm:$0xff] %v6526_v43 }
 0x28f   : > { %2326 = vmatmul.mubr.bf16.gmra.mrb[60].mxu0 %v2059_v53 }
 0x290   : > { %5302 = vmatprep.mubr.msk.bf16.mxu0 %vm433_vm1, %v6429_v44 }
 0x297   : > { %2334 = vmatmul.mubr.bf16.gmra.mrb[64].mxu0 %v2063_v12  ;;  %v452_v12 = vadd.s32 80, %v6500_v31 }
 0x298   : > { %5303 = vmatprep.mubr.msk.bf16.mxu0 %vm433_vm1, %v6433_v45 }
 0x29f   : > { %2342 = vmatmul.mubr.bf16.gmra.mrb[68].mxu0 %v2067_v14 }
 0x2a0   : > { %5304 = vmatprep.mubr.msk.bf16.mxu0 %vm433_vm1, %v1959_v62 }
 0x2a7   : > { %2350 = vmatmul.mubr.bf16.gmra.mrb[72].mxu0 %v2071_v16  ;;  %v6587_v16 = vsel %vm866_vm7, 1.0, %v8416_v42 }
 0x2a8   : > { %5305 = vmatprep.mubr.msk.bf16.mxu0 %vm433_vm1, %v1960_v57  ;;  %8503 = vst [vmem:[#allocation24_spill] sm:$0xff] %v6587_v16 }
 0x2d8   : > { %v2022_v17 = vpop.permute.xlu1 %2021 }
 0x2d9   : > { %v2079_v18 = vsel %vm433_vm1, %v1959_v62, %v2022_v17 }
 0x2da   : > { %2366 = vmatmul.mubr.bf16.vlgmr.msra.gmra.mrb[32].mxu1 %v2079_v18  ;;  %v548_v18 = vand.u32 15, %v452_v12 }
 0x2db   : > { %5307 = vmatprep.mubr.msk.bf16.mxu1 %vm433_vm1, %v1962_v0 }
 0x2dc   : > { %v2024_v20 = vpop.permute.xlu1 %2023  ;;  %vm868_vm8 = vcmp.gt.s32.totalorder %v548_v18, 0 }
 0x2dd   : > { %v2020_v19 = vpop.permute.xlu0 %2019  ;;  %v2083_v23 = vsel %vm433_vm1, %v1960_v57, %v2024_v20 }
 0x2de   : > { %v2075_v22 = vsel %vm433_vm1, %v6433_v45, %v2020_v19  ;;  %v506_v45 = vand.u32 15, %v446_v21 }
 0x2df   : > { %2358 = vmatmul.mubr.bf16.gmra.mrb[76].mxu0 %v2075_v22 }
 0x2e0   : > { %vm862_vm5 = vcmp.gt.s32.totalorder %v506_v45, 0 }
 0x2e1   : > { %v2026_v24 = vpop.permute.xlu0 %2025  ;;  %v6545_v56 = vsel %vm862_vm5, 1.0, %v8416_v42 }
 0x2e2   : > { %2374 = vmatmul.mubr.bf16.gmra.mrb[36].mxu1 %v2083_v23  ;;  %v2087_v27 = vsel %vm433_vm1, %v1977_v60, %v2026_v24  ;;  %8501 = vst [vmem:[#allocation22_spill] sm:$0xff] %v6545_v56 }
 0x2e3   : > { %5308 = vmatprep.mubr.msk.bf16.mxu1 %vm433_vm1, %v1963_v2 }
 0x2e4   : > { %v2028_v28 = vpop.permute.xlu1 %2027 }
 0x2e5   : > { %v2091_v29 = vsel %vm433_vm1, %v1962_v0, %v2028_v28 }
 0x2ea   : > { %2382 = vmatmul.mubr.bf16.gmra.mrb[40].mxu1 %v2087_v27 }
 0x2eb   : > { %5309 = vmatprep.mubr.msk.bf16.mxu1 %vm433_vm1, %v1980_v26 }
 0x2f2   : > { %2390 = vmatmul.mubr.bf16.gmra.mrb[44].mxu1 %v2091_v29  ;;  %v6607_v29 = vsel %vm868_vm8, 1.0, %v8416_v42 }
 0x2f3   : > { %8504 = vst [vmem:[#allocation25_spill] sm:$0xff] %v6607_v29 }
 0x32a   : > { %v6503_v61 = vpop.f32.mrb[32].mxu0 }
 0x32b   : > { %2527 = vrot.lane.b32.xlu0 %v6503_v61, %s5886_s20  ;;  %v2273_v33 = vpop.f32.mrb[33].mxu0  ;;  %v8415_v37 = vrot.slane %v6503_v61, 7 }
 0x32c   : > { %v6507_v34 = vpop.f32.mrb[34].mxu0 }
 0x32d   : > { %v2399_v38 = vrot.slane %v6507_v34, 7  ;;  %2529 = vrot.lane.b32.xlu1 %v6507_v34, %s5886_s20  ;;  %v2276_v25 = vpop.f32.mrb[35].mxu0 }
 0x32f   : > { %v2461_v54 = vsel %vm2430_vm3, %v8415_v37, %v2399_v38 }
 0x331   : > { %2754 = vrot.lane.b32.xlu1 %v2461_v54, %s5884_s23 }
 0x332   : > { %v6520_v39 = vpop.f32.mrb[36].mxu0 }
 0x333   : > { %v2400_v40 = vrot.slane %v6520_v39, 7  ;;  %2531 = vrot.lane.b32.xlu0 %v6520_v39, %s5886_s20  ;;  %v2281_v41 = vpop.f32.mrb[37].mxu0 }
 0x334   : > { %v6528_v44 = vpop.f32.mrb[38].mxu0 }
 0x335   : > { %v2401_v46 = vrot.slane %v6528_v44, 7  ;;  %2533 = vrot.lane.b32.xlu1 %v6528_v44, %s5886_s20  ;;  %v2284_v47 = vpop.f32.mrb[39].mxu0  ;;  %v2460_v48 = vsel %vm2430_vm3, %v2399_v38, %v2400_v40 }
 0x336   : > { %v2465_v49 = vmul.f32 %v6526_v43, %v2460_v48 }
 0x337   : > { %v2459_v50 = vsel %vm2430_vm3, %v2400_v40, %v2401_v46 }
 0x338   : > { %2756 = vrot.lane.b32.xlu0 %v2465_v49, %s5884_s23 }
 0x339   : > { %2758 = vrot.lane.b32.xlu1 %v2459_v50, %s5884_s23 }
 0x33a   : > { %v6541_v52 = vpop.f32.mrb[40].mxu0 }
 0x33b   : > { %v2402_v55 = vrot.slane %v6541_v52, 7  ;;  %v2289_v36 = vpop.f32.mrb[41].mxu0 }
 0x33c   : > { %2535 = vrot.lane.b32.xlu0 %v6541_v52, %s5886_s20  ;;  %v6549_v57 = vpop.f32.mrb[42].mxu0 }
 0x33d   : > { %v2403_v59 = vrot.slane %v6549_v57, 7  ;;  %2537 = vrot.lane.b32.xlu1 %v6549_v57, %s5886_s20  ;;  %v2292_v60 = vpop.f32.mrb[43].mxu0  ;;  %v2458_v62 = vsel %vm2430_vm3, %v2401_v46, %v2402_v55 }
 0x33e   : > { %v2467_v63 = vmul.f32 %v6545_v56, %v2458_v62 }
 0x33f   : > { %v2457_v0 = vsel %vm2430_vm3, %v2402_v55, %v2403_v59 }
 0x340   : > { %2760 = vrot.lane.b32.xlu0 %v2467_v63, %s5884_s23 }
 0x341   : > { %2762 = vrot.lane.b32.xlu1 %v2457_v0, %s5884_s23 }
 0x342   : > { %v6562_v2 = vpop.f32.mrb[44].mxu0 }
 0x343   : > { %v2404_v3 = vrot.slane %v6562_v2, 7  ;;  %v2297_v4 = vpop.f32.mrb[45].mxu0 }
 0x344   : > { %2539 = vrot.lane.b32.xlu0 %v6562_v2, %s5886_s20  ;;  %v6570_v6 = vpop.f32.mrb[46].mxu0 }
 0x345   : > { %v2405_v8 = vrot.slane %v6570_v6, 7  ;;  %2541 = vrot.lane.b32.xlu1 %v6570_v6, %s5886_s20  ;;  %v2300_v9 = vpop.f32.mrb[47].mxu0  ;;  %v2456_v10 = vsel %vm2430_vm3, %v2403_v59, %v2404_v3 }
 0x346   : > { %v2469_v53 = vmul.f32 %v6566_v5, %v2456_v10 }
 0x347   : > { %v2455_v11 = vsel %vm2430_vm3, %v2404_v3, %v2405_v8 }
 0x348   : > { %2764 = vrot.lane.b32.xlu0 %v2469_v53, %s5884_s23 }
 0x349   : > { %2766 = vrot.lane.b32.xlu1 %v2455_v11, %s5884_s23 }
 0x34a   : > { %v6583_v13 = vpop.f32.mrb[48].mxu0 }
 0x34b   : > { %v2406_v14 = vrot.slane %v6583_v13, 7  ;;  %v2305_v15 = vpop.f32.mrb[49].mxu0 }
 0x34c   : > { %2543 = vrot.lane.b32.xlu0 %v6583_v13, %s5886_s20  ;;  %v6591_v17 = vpop.f32.mrb[50].mxu0 }
 0x34d   : > { %v2407_v19 = vrot.slane %v6591_v17, 7  ;;  %2545 = vrot.lane.b32.xlu1 %v6591_v17, %s5886_s20  ;;  %v2308_v20 = vpop.f32.mrb[51].mxu0  ;;  %v2454_v22 = vsel %vm2430_vm3, %v2405_v8, %v2406_v14 }
 0x34e   : > { %v2471_v23 = vmul.f32 %v6587_v16, %v2454_v22 }
 0x34f   : > { %v2453_v24 = vsel %vm2430_vm3, %v2406_v14, %v2407_v19 }
 0x350   : > { %2768 = vrot.lane.b32.xlu0 %v2471_v23, %s5884_s23 }
 0x351   : > { %2770 = vrot.lane.b32.xlu1 %v2453_v24, %s5884_s23 }
 0x352   : > { %v6603_v26 = vpop.f32.mrb[52].mxu0 }
 0x353   : > { %v2408_v27 = vrot.slane %v6603_v26, 7  ;;  %v2313_v28 = vpop.f32.mrb[53].mxu0 }
 0x354   : > { %2547 = vrot.lane.b32.xlu0 %v6603_v26, %s5886_s20  ;;  %v6611_v30 = vpop.f32.mrb[54].mxu0 }
 0x355   : > { %v2409_v32 = vrot.slane %v6611_v30, 7  ;;  %2549 = vrot.lane.b32.xlu1 %v6611_v30, %s5886_s20  ;;  %v2316_v33 = vpop.f32.mrb[55].mxu0  ;;  %v2452_v35 = vsel %vm2430_vm3, %v2407_v19, %v2408_v27 }
 0x356   : > { %v2473_v38 = vmul.f32 %v6607_v29, %v2452_v35  ;;  %v454_v33 = vadd.s32 96, %v6500_v31 }
 0x357   : > { %v2451_v25 = vsel %vm2430_vm3, %v2408_v27, %v2409_v32 }
 0x358   : > { %2774 = vrot.lane.b32.xlu0 %v2451_v25, %s5884_s23  ;;  %v562_v35 = vand.u32 15, %v454_v33 }
 0x359   : > { %2772 = vrot.lane.b32.xlu1 %v2473_v38, %s5884_s23 }
 0x35a   : > { %v6623_v54 = vpop.f32.mrb[56].mxu0  ;;  %vm870_vm9 = vcmp.gt.s32.totalorder %v562_v35, 0  ;;  %v6740_v35 = vpop.permute.xlu0 %3046 }
 0x35b   : > { %v2410_v21 = vrot.slane %v6623_v54, 7  ;;  %v2321_v40 = vpop.f32.mrb[57].mxu0 }
 0x35c   : > { %2551 = vrot.lane.b32.xlu0 %v6623_v54, %s5886_s20  ;;  %v6628_v41 = vpop.f32.mrb[58].mxu0  ;;  %v6701_v40 = vsel %vm870_vm9, 1.0, %v8416_v42 }
 0x35d   : > { %v2411_v45 = vrot.slane %v6628_v41, 7  ;;  %2553 = vrot.lane.b32.xlu1 %v6628_v41, %s5886_s20  ;;  %v2324_v46 = vpop.f32.mrb[59].mxu0  ;;  %v2450_v47 = vsel %vm2430_vm3, %v2409_v32, %v2410_v21  ;;  %8511 = vst [vmem:[#allocation32_spill] sm:$0xff] %v6701_v40 }
 0x35f   : > { %v2449_v48 = vsel %vm2430_vm3, %v2410_v21, %v2411_v45 }
 0x362   : > { %v6637_v49 = vpop.f32.mrb[60].mxu0 }
 0x363   : > { %v2412_v50 = vrot.slane %v6637_v49, 7  ;;  %v2329_v51 = vpop.f32.mrb[61].mxu0 }
 0x364   : > { %v6640_v55 = vpop.f32.mrb[62].mxu0  ;;  %v456_v51 = vadd.s32 112, %v6500_v31 }
 0x365   : > { %v2413_v36 = vrot.slane %v6640_v55, 7  ;;  %v2332_v58 = vpop.f32.mrb[63].mxu0  ;;  %v6645_v59 = vsel %vm2430_vm3, %v2411_v45, %v2412_v50 }
 0x366   : > { %v2475_v58 = vmul.f32 %v6701_v40, %v2450_v47 }
 0x367   : > { %v6649_v60 = vsel %vm2430_vm3, %v2412_v50, %v2413_v36 }
 0x36a   : > { %v6651_v62 = vpop.f32.mrb[64].mxu0 }
 0x36b   : > { %8505 = vst [vmem:[#allocation26_spill] sm:$0xff] %v6651_v62  ;;  %v2414_v63 = vrot.slane %v6651_v62, 7  ;;  %v2337_v0 = vpop.f32.mrb[65].mxu0 }
 0x36c   : > { %v6654_v1 = vpop.f32.mrb[66].mxu0 }
 0x36d   : > { %8506 = vst [vmem:[#allocation27_spill] sm:$0xff] %v6654_v1  ;;  %v2415_v3 = vrot.slane %v6654_v1, 7  ;;  %v2340_v4 = vpop.f32.mrb[67].mxu0  ;;  %v6659_v7 = vsel %vm2430_vm3, %v2413_v36, %v2414_v63 }
 0x36f   : > { %v6663_v8 = vsel %vm2430_vm3, %v2414_v63, %v2415_v3 }
 0x372   : > { %v6665_v9 = vpop.f32.mrb[68].mxu0 }
 0x373   : > { %8507 = vst [vmem:[#allocation28_spill] sm:$0xff] %v6665_v9  ;;  %v2416_v10 = vrot.slane %v6665_v9, 7  ;;  %v2345_v53 = vpop.f32.mrb[69].mxu0 }
 0x374   : > { %v6668_v11 = vpop.f32.mrb[70].mxu0 }
 0x375   : > { %8508 = vst [vmem:[#allocation29_spill] sm:$0xff] %v6668_v11  ;;  %v2417_v12 = vrot.slane %v6668_v11, 7  ;;  %v2348_v14 = vpop.f32.mrb[71].mxu0  ;;  %v6673_v15 = vsel %vm2430_vm3, %v2415_v3, %v2416_v10 }
 0x377   : > { %v6677_v18 = vsel %vm2430_vm3, %v2416_v10, %v2417_v12  ;;  %v576_v10 = vand.u32 15, %v456_v51 }
 0x379   : > { %vm872_vm10 = vcmp.gt.s32.totalorder %v576_v10, 0 }
 0x37a   : > { %v6679_v19 = vpop.f32.mrb[72].mxu0 }
 0x37b   : > { %8509 = vst [vmem:[#allocation30_spill] sm:$0xff] %v6679_v19  ;;  %v2418_v20 = vrot.slane %v6679_v19, 7  ;;  %v2353_v22 = vpop.f32.mrb[73].mxu0 }
 0x37c   : > { %v6682_v23 = vpop.f32.mrb[74].mxu0 }
 0x37d   : > { %8510 = vst [vmem:[#allocation31_spill] sm:$0xff] %v6682_v23  ;;  %v2419_v24 = vrot.slane %v6682_v23, 7  ;;  %v2356_v27 = vpop.f32.mrb[75].mxu0  ;;  %v6687_v28 = vsel %vm2430_vm3, %v2417_v12, %v2418_v20 }
 0x37f   : > { %v6691_v32 = vsel %vm2430_vm3, %v2418_v20, %v2419_v24 }
 0x39f   : > { %v6755_v51 = vpop.permute.xlu1 %2529 }
 0x3a3   : > { %v6780_v40 = vpop.permute.xlu1 %2754 }
 0x3ad   : > { %v6694_v38 = vpop.f32.mrb[32].mxu1 }
 0x3ae   : > { %v2369_v25 = vpop.f32.mrb[33].mxu1  ;;  %2575 = vrot.lane.b32.xlu0 %v6694_v38, %s5886_s20  ;;  %v2422_v45 = vrot.slane %v6694_v38, 7 }
 0x3af   : > { %v6698_v21 = vpop.f32.mrb[34].mxu1 }
 0x3b0   : > { %v2423_v46 = vrot.slane %v6698_v21, 7  ;;  %v2372_v50 = vpop.f32.mrb[35].mxu1  ;;  %2577 = vrot.lane.b32.xlu1 %v6698_v21, %s5886_s20 }
 0x3b2   : > { %v6708_v36 = vpop.f32.mrb[76].mxu0  ;;  %2778 = vrot.lane.b32.xlu0 %v2449_v48, %s5884_s23  ;;  %v6714_v63 = vsel %vm2430_vm3, %v2422_v45, %v2423_v46 }
 0x3b3   : > { %8512 = vst [vmem:[#allocation33_spill] sm:$0xff] %v6708_v36  ;;  %v2420_v0 = vrot.slane %v6708_v36, 7  ;;  %v2361_v3 = vpop.f32.mrb[77].mxu0 }
 0x3b4   : > { %v6717_v4 = vpop.f32.mrb[78].mxu0  ;;  %2776 = vrot.lane.b32.xlu1 %v2475_v58, %s5884_s23  ;;  %v6758_v58 = vsel %vm872_vm10, 1.0, %v8416_v42 }
 0x3b5   : > { %8513 = vst [vmem:[#allocation34_spill] sm:$0xff] %v6717_v4  ;;  %v2421_v53 = vrot.slane %v6717_v4, 7  ;;  %v2364_v12 = vpop.f32.mrb[79].mxu0  ;;  %v6721_v14 = vpop.f32.mrb[36].mxu1  ;;  %v6725_v47 = vsel %vm2430_vm3, %v2419_v24, %v2420_v0  ;;  %8516 = vst [vmem:[#allocation37_spill] sm:$0xff] %v6758_v58 }
 0x3b6   : > { %8514 = vst [vmem:[#allocation35_spill] sm:$0xff] %v6721_v14  ;;  %v2424_v48 = vrot.slane %v6721_v14, 7  ;;  %v2377_v20 = vpop.f32.mrb[37].mxu1  ;;  %2555 = vrot.lane.b32.xlu0 %v6637_v49, %s5886_s20  ;;  %v2477_v12 = vmul.f32 %v6758_v58, %v6645_v59  ;;  %v8521_v58 = vmov 0.0  }
 0x3b7   : > { %v6730_v22 = vpop.f32.mrb[38].mxu1  ;;  %v6734_v27 = vsel %vm2430_vm3, %v2421_v53, %v2422_v45  ;;  %v6738_v33 = vsel %vm2430_vm3, %v2420_v0, %v2421_v53  ;;  %v458_v0 = vadd.s32 128, %v6500_v31 }
 0x3b8   : > { %8515 = vst [vmem:[#allocation36_spill] sm:$0xff] %v6730_v22  ;;  %v2425_v24 = vrot.slane %v6730_v22, 7  ;;  %v2380_v25 = vpop.f32.mrb[39].mxu1  ;;  %2557 = vrot.lane.b32.xlu1 %v6640_v55, %s5886_s20  ;;  %v6747_v50 = vsel %vm2430_vm3, %v2423_v46, %v2424_v48  ;;  %v6765_v46 = vpop.permute.xlu0 %2527 }
 0x3b9   : > { %v590_v42 = vand.u32 15, %v458_v0  ;;  %v6797_v0 = vpop.permute.xlu1 %2533 }
 0x3ba   : > { %2579 = vrot.lane.b32.xlu0 %v6721_v14, %s5886_s20  ;;  %v6753_v45 = vsel %vm2430_vm3, %v2424_v48, %v2425_v24 }
 0x3bb   : > { %vm874_vm11 = vcmp.gt.s32.totalorder %v590_v42, 0 }
 0x3bc   : > { %2581 = vrot.lane.b32.xlu1 %v6730_v22, %s5886_s20  ;;  %v6802_v29 = vsel %vm874_vm11, 1.0, %v8521_v58  ;;  %v8525_v22 = vrot.slane %v6503_v61, 7 }
 0x3bd   : > { %v6763_v3 = vpop.f32.mrb[40].mxu1  ;;  %8522 = vst [vmem:[#allocation42_spill] sm:$0xff] %v6802_v29  ;;  %v2479_v56 = vmul.f32 %v6802_v29, %v6659_v7  ;;  %v462_v7 = vadd.s32 160, %v6500_v31  ;;  %v468_v29 = vadd.s32 208, %v6500_v31 }
 0x3be   : > { %8517 = vst [vmem:[#allocation38_spill] sm:$0xff] %v6763_v3  ;;  %v2426_v10 = vrot.slane %v6763_v3, 7  ;;  %v2385_v53 = vpop.f32.mrb[41].mxu1  ;;  %2782 = vrot.lane.b32.xlu0 %v6649_v60, %s5884_s23 }
 0x3bf   : > { %v6772_v48 = vpop.f32.mrb[42].mxu1  ;;  %v6782_v53 = vpop.permute.xlu0 %2531 }
 0x3c0   : > { %8518 = vst [vmem:[#allocation39_spill] sm:$0xff] %v6772_v48  ;;  %v6776_v20 = vsel %vm2430_vm3, %v2425_v24, %v2426_v10  ;;  %v2427_v25 = vrot.slane %v6772_v48, 7  ;;  %v2388_v37 = vpop.f32.mrb[43].mxu1  ;;  %2780 = vrot.lane.b32.xlu1 %v2477_v12, %s5884_s23 }
 0x3c2   : > { %2559 = vrot.lane.b32.xlu0 %v6651_v62, %s5886_s20  ;;  %v6788_v59 = vsel %vm2430_vm3, %v2426_v10, %v2427_v25 }
 0x3c3   : > { %v6804_v10 = vpop.permute.xlu0 %2756 }
 0x3c4   : > { %2561 = vrot.lane.b32.xlu1 %v6654_v1, %s5886_s20 }
 0x3c5   : > { %v6792_v60 = vpop.f32.mrb[44].mxu1 }
 0x3c6   : > { %8519 = vst [vmem:[#allocation40_spill] sm:$0xff] %v6792_v60  ;;  %v2428_v37 = vrot.slane %v6792_v60, 7  ;;  %v2393_v24 = vpop.f32.mrb[45].mxu1  ;;  %2583 = vrot.lane.b32.xlu0 %v6763_v3, %s5886_s20  ;;  %v6823_v3 = vpop.permute.xlu1 %2758 }
 0x3c7   : > { %v6799_v12 = vpop.f32.mrb[46].mxu1  ;;  %v460_v24 = vadd.s32 144, %v6500_v31 }
 0x3c8   : > { %8520 = vst [vmem:[#allocation41_spill] sm:$0xff] %v6799_v12  ;;  %v6808_v42 = vsel %vm2430_vm3, %v2427_v25, %v2428_v37  ;;  %v2429_v16 = vrot.slane %v6799_v12, 7  ;;  %v2396_v5 = vpop.f32.mrb[47].mxu1  ;;  %2585 = vrot.lane.b32.xlu1 %v6772_v48, %s5886_s20  ;;  %v478_v48 = vand.u32 15, %v6500_v31 }
 0x3c9   : > { %v604_v25 = vand.u32 15, %v460_v24  ;;  %v6825_v5 = vpop.permute.xlu0 %2535  ;;  %v618_v24 = vand.u32 15, %v462_v7 }
 0x3ca   : > { %2786 = vrot.lane.b32.xlu0 %v6663_v8, %s5884_s23  ;;  %v6820_v43 = vsel %vm2430_vm3, %v2428_v37, %v2429_v16  ;;  %vm858_vm13 = vcmp.gt.s32.totalorder %v478_v48, 0  ;;  %v6838_v8 = vpop.permute.xlu1 %2537  ;;  %v2462_v48 = vsel %vm2430_vm3, %v2429_v16, %v8525_v22 }
 0x3cb   : > { %vm876_vm12 = vcmp.gt.s32.totalorder %v604_v25, 0  ;;  %v6846_v25 = vsel %vm858_vm13, 1.0, %v8521_v58  ;;  %vm878_vm14 = vcmp.gt.s32.totalorder %v618_v24, 0 }
 0x3cc   : > { %2784 = vrot.lane.b32.xlu1 %v2479_v56, %s5884_s23  ;;  %v6836_v56 = vsel %vm876_vm12, 1.0, %v8521_v58  ;;  %8524 = vst [vmem:[#allocation44_spill] sm:$0xff] %v6846_v25  ;;  %v2463_v7 = vmul.f32 %v6846_v25, %v2462_v48  ;;  %v6864_v16 = vsel %vm878_vm14, 1.0, %v8521_v58 }
 0x3cd   : > { %8523 = vst [vmem:[#allocation43_spill] sm:$0xff] %v6836_v56  ;;  %v6840_v37 = vpop.permute.xlu0 %2760  ;;  %8526 = vst [vmem:[#allocation45_spill] sm:$0xff] %v6864_v16 }
 0x3ce   : > { %2563 = vrot.lane.b32.xlu0 %v6665_v9, %s5886_s20  ;;  %v6858_v14 = vpop.permute.xlu1 %2762 }
 0x3d0   : > { %2565 = vrot.lane.b32.xlu1 %v6668_v11, %s5886_s20 }
 0x3d1   : > { %v6860_v11 = vpop.permute.xlu0 %2539 }
 0x3d2   : > { %2587 = vrot.lane.b32.xlu0 %v6792_v60, %s5886_s20  ;;  %v2481_v60 = vmul.f32 %v6836_v56, %v6673_v15  ;;  %v464_v15 = vadd.s32 176, %v6500_v31  ;;  %v6876_v22 = vpop.permute.xlu1 %2541 }
 0x3d4   : > { %2589 = vrot.lane.b32.xlu1 %v6799_v12, %s5886_s20  ;;  %v660_v12 = vand.u32 15, %v468_v29  ;;  %v2483_v29 = vmul.f32 %v6864_v16, %v6687_v28  ;;  %v632_v24 = vand.u32 15, %v464_v15 }
 0x3d6   : > { %2790 = vrot.lane.b32.xlu0 %v6677_v18, %s5884_s23  ;;  %vm884_vm15 = vcmp.gt.s32.totalorder %v660_v12, 0  ;;  %v466_v12 = vadd.s32 192, %v6500_v31  ;;  %vm880_vm2 = vcmp.gt.s32.totalorder %v632_v24, 0  ;;  %v6888_v25 = vpop.permute.xlu1 %2766 }
 0x3d7   : > { %v6874_v18 = vsel %vm884_vm15, 1.0, %v8521_v58  ;;  %v6895_v15 = vsel %vm880_vm2, 1.0, %v8521_v58 }
 0x3d8   : > { %2788 = vrot.lane.b32.xlu1 %v2481_v60, %s5884_s23  ;;  %8527 = vst [vmem:[#allocation46_spill] sm:$0xff] %v6874_v18  ;;  %v6878_v60 = vpop.permute.xlu0 %2764  ;;  %v2489_v48 = vmul.f32 %v6874_v18, %v6747_v50  ;;  %v646_v28 = vand.u32 15, %v466_v12  ;;  %8528 = vst [vmem:[#allocation47_spill] sm:$0xff] %v6895_v15  ;;  %v2485_v24 = vmul.f32 %v6895_v15, %v6725_v47  ;;  %v2625_v12 = vrot.slane %v6782_v53, 1 }
 0x3d9   : > { %v2627_v53 = vrot.slane %v6825_v5, 1  ;;  %v8440_v5 = vrot.slane %v6765_v46, 1 }
 0x3da   : > { %2752 = vrot.lane.b32.xlu0 %v2463_v7, %s5884_s23  ;;  %v443_v7 = vadd.s32 8, %v6500_v31  ;;  %vm882_vm4 = vcmp.gt.s32.totalorder %v646_v28, 0 }
 0x3dc   : > { %2569 = vrot.lane.b32.xlu1 %v6682_v23, %s5886_s20  ;;  %v6890_v16 = vpop.permute.xlu0 %2543  ;;  %v485_v50 = vand.u32 15, %v443_v7  ;;  %v447_v7 = vadd.s32 40, %v6500_v31 }
 0x3de   : > { %2567 = vrot.lane.b32.xlu0 %v6679_v19, %s5886_s20  ;;  %vm955_vm5 = vcmp.lt.s32.totalorder %v485_v50, 15 }
 0x3df   : > { %v6922_v15 = vsel %vm955_vm5, 1.0, %v8521_v58 }
 0x3e0   : > { %2792 = vrot.lane.b32.xlu1 %v2483_v29, %s5884_s23  ;;  %v445_v29 = vadd.s32 24, %v6500_v31  ;;  %v6910_v18 = vpop.permute.xlu0 %2768  ;;  %8530 = vst [vmem:[#allocation49_spill] sm:$0xff] %v6922_v15 }
 0x3e2   : > { %2571 = vrot.lane.b32.xlu0 %v6708_v36, %s5886_s20  ;;  %v499_v28 = vand.u32 15, %v445_v29  ;;  %v2626_v29 = vrot.slane %v6797_v0, 1 }
 0x3e4   : > { %2804 = vrot.lane.b32.xlu1 %v2489_v48, %s5884_s23  ;;  %v6908_v48 = vpop.permute.xlu1 %2545  ;;  %vm957_vm7 = vcmp.lt.s32.totalorder %v499_v28, 15  ;;  %v2548_v56 = vpop.permute.xlu0 %2547  ;;  %v2683_v0 = vsel %vm2655_vm6, %v2626_v29, %v2627_v53  ;;  %v2628_v28 = vrot.slane %v6838_v8, 1 }
 0x3e6   : > { %2794 = vrot.lane.b32.xlu0 %v6691_v32, %s5884_s23  ;;  %v6906_v32 = vsel %vm882_vm4, 1.0, %v8521_v58 }
 0x3e7   : > { %8529 = vst [vmem:[#allocation48_spill] sm:$0xff] %v6906_v32  ;;  %v2487_v47 = vmul.f32 %v6906_v32, %v6734_v27  ;;  %v2629_v32 = vrot.slane %v6860_v11, 1 }
 0x3e8   : > { %2573 = vrot.lane.b32.xlu1 %v6717_v4, %s5886_s20  ;;  %v6955_v8 = vpop.permute.xlu0 %2774 }
 0x3ea   : > { %2802 = vrot.lane.b32.xlu0 %v6714_v63, %s5884_s23  ;;  %v2624_v63 = vrot.slane %v6755_v51, 1  ;;  %v513_v51 = vand.u32 15, %v447_v7 }
 0x3ec   : > { %2796 = vrot.lane.b32.xlu1 %v2485_v24, %s5884_s23  ;;  %v2685_v50 = vsel %vm2655_vm6, %v2624_v63, %v2625_v12  ;;  %v449_v24 = vadd.s32 56, %v6500_v31  ;;  %vm959_vm8 = vcmp.lt.s32.totalorder %v513_v51, 15  ;;  %v2681_v51 = vsel %vm2655_vm6, %v2628_v28, %v2629_v32 }
 0x3ed   : > { %v2689_v27 = vmul.f32 %v6922_v15, %v2685_v50  ;;  %v451_v50 = vadd.s32 72, %v6500_v31  ;;  %v6951_v15 = vsel %vm959_vm8, 1.0, %v8521_v58 }
 0x3ee   : > { %2806 = vrot.lane.b32.xlu0 %v6753_v45, %s5884_s23  ;;  %v6929_v45 = vpop.permute.xlu1 %2770  ;;  %v527_v7 = vand.u32 15, %v449_v24  ;;  %8532 = vst [vmem:[#allocation51_spill] sm:$0xff] %v6951_v15  ;;  %v2684_v24 = vsel %vm2655_vm6, %v2625_v12, %v2626_v29  ;;  %v2682_v12 = vsel %vm2655_vm6, %v2627_v53, %v2628_v28 }
 0x3f0   : > { %2800 = vrot.lane.b32.xlu1 %v2487_v47, %s5884_s23  ;;  %v6937_v47 = vsel %vm957_vm7, 1.0, %v8521_v58  ;;  %vm961_vm9 = vcmp.lt.s32.totalorder %v527_v7, 15 }
 0x3f1   : > { %8531 = vst [vmem:[#allocation50_spill] sm:$0xff] %v6937_v47  ;;  %v2691_v11 = vmul.f32 %v6937_v47, %v2683_v0  ;;  %v453_v0 = vadd.s32 88, %v6500_v31  ;;  %v2630_v47 = vrot.slane %v6876_v22, 1  ;;  %v6967_v4 = vsel %vm961_vm9, 1.0, %v8521_v58 }
 0x3f2   : > { %2798 = vrot.lane.b32.xlu0 %v6738_v33, %s5884_s23  ;;  %v2686_v33 = vsel %vm2655_vm6, %v8440_v5, %v2624_v63  ;;  %v2631_v63 = vrot.slane %v6890_v16, 1  ;;  %v2693_v5 = vmul.f32 %v6951_v15, %v2681_v51  ;;  %8533 = vst [vmem:[#allocation52_spill] sm:$0xff] %v6967_v4  ;;  %v2632_v22 = vrot.slane %v6908_v48, 1 }
 0x3f3   : > { %v555_v7 = vand.u32 15, %v453_v0 }
 0x3f4   : > { %2914 = vrot.lane.b32.xlu1 %v2689_v27, %s5884_s23  ;;  %v2550_v27 = vpop.permute.xlu1 %2549  ;;  %v2679_v16 = vsel %vm2655_vm6, %v2630_v47, %v2631_v63  ;;  %v2678_v48 = vsel %vm2655_vm6, %v2631_v63, %v2632_v22 }
 0x3f5   : > { %v2695_v51 = vmul.f32 %v6967_v4, %v2679_v16  ;;  %vm965_vm11 = vcmp.lt.s32.totalorder %v555_v7, 15  ;;  %v455_v7 = vadd.s32 104, %v6500_v31 }
 0x3f6   : > { %2912 = vrot.lane.b32.xlu0 %v2686_v33, %s5884_s23  ;;  %v541_v33 = vand.u32 15, %v451_v50  ;;  %v2552_v50 = vpop.permute.xlu0 %2551 }
 0x3f7   : > { %v2635_v28 = vrot.slane %v2552_v50, 1 }
 0x3f8   : > { %2918 = vrot.lane.b32.xlu1 %v2691_v11, %s5884_s23  ;;  %v2633_v11 = vrot.slane %v2548_v56, 1  ;;  %vm963_vm10 = vcmp.lt.s32.totalorder %v541_v33, 15  ;;  %v6973_v29 = vpop.permute.xlu1 %2772  ;;  %v6992_v33 = vsel %vm965_vm11, 1.0, %v8521_v58 }
 0x3f9   : > { %v6982_v56 = vsel %vm963_vm10, 1.0, %v8521_v58  ;;  %8535 = vst [vmem:[#allocation54_spill] sm:$0xff] %v6992_v33 }
 0x3fa   : > { %2916 = vrot.lane.b32.xlu0 %v2684_v24, %s5884_s23  ;;  %8534 = vst [vmem:[#allocation53_spill] sm:$0xff] %v6982_v56  ;;  %v2677_v53 = vsel %vm2655_vm6, %v2632_v22, %v2633_v11  ;;  %v2634_v24 = vrot.slane %v2550_v27, 1 }
 0x3fc   : > { %2922 = vrot.lane.b32.xlu1 %v2693_v5, %s5884_s23  ;;  %v2680_v5 = vsel %vm2655_vm6, %v2629_v32, %v2630_v47  ;;  %v2697_v32 = vmul.f32 %v6982_v56, %v2677_v53  ;;  %v2554_v47 = vpop.permute.xlu1 %2553  ;;  %v2675_v0 = vsel %vm2655_vm6, %v2634_v24, %v2635_v28  ;;  %v2676_v27 = vsel %vm2655_vm6, %v2633_v11, %v2634_v24 }
 0x3fd   : > { %v2636_v16 = vrot.slane %v2554_v47, 1  ;;  %v459_v56 = vadd.s32 136, %v6500_v31 }
 0x3fe   : > { %2920 = vrot.lane.b32.xlu0 %v2682_v12, %s5884_s23  ;;  %v2699_v12 = vmul.f32 %v6992_v33, %v2675_v0 }
 0x3ff   : > { %v2674_v63 = vsel %vm2655_vm6, %v2635_v28, %v2636_v16 }
 0x400   : > { %2924 = vrot.lane.b32.xlu1 %v2680_v5, %s5884_s23  ;;  %v569_v5 = vand.u32 15, %v455_v7 }
 0x402   : > { %2926 = vrot.lane.b32.xlu0 %v2695_v51, %s5884_s23  ;;  %v467_v51 = vadd.s32 200, %v6500_v31  ;;  %vm967_vm12 = vcmp.lt.s32.totalorder %v569_v5, 15 }
 0x403   : > { %v7020_v0 = vsel %vm967_vm12, 1.0, %v8521_v58  ;;  %vm3483_vm12 = vcmask 785408  }
 0x404   : > { %2928 = vrot.lane.b32.xlu1 %v2678_v48, %s5884_s23  ;;  %8536 = vst [vmem:[#allocation55_spill] sm:$0xff] %v7020_v0 }
 0x406   : > { %2930 = vrot.lane.b32.xlu0 %v2697_v32, %s5884_s23  ;;  %v653_v32 = vand.u32 15, %v467_v51 }
 0x408   : > { %2932 = vrot.lane.b32.xlu1 %v2676_v27, %s5884_s23  ;;  %vm979_vm13 = vcmp.lt.s32.totalorder %v653_v32, 15 }
 0x409   : > { %v7029_v5 = vsel %vm979_vm13, 1.0, %v8521_v58 }
 0x40a   : > { %2934 = vrot.lane.b32.xlu0 %v2699_v12, %s5884_s23  ;;  %8537 = vst [vmem:[#allocation56_spill] sm:$0xff] %v7029_v5 }
 0x40c   : > { %2936 = vrot.lane.b32.xlu1 %v2674_v63, %s5884_s23  ;;  %v457_v63 = vadd.s32 120, %v6500_v31 }
 0x420   : > { %v7006_v50 = vpop.permute.xlu0 %2575 }
 0x421   : > { %v8443_v11 = vrot.slane %v7006_v50, 1 }
 0x422   : > { %v2578_v22 = vpop.permute.xlu1 %2577 }
 0x423   : > { %v2648_v53 = vrot.slane %v2578_v22, 1 }
 0x424   : > { %v7010_v24 = vpop.permute.xlu0 %2778 }
 0x425   : > { %v2662_v28 = vsel %vm2655_vm6, %v8443_v11, %v2648_v53 }
 0x426   : > { %v7016_v48 = vpop.permute.xlu1 %2776  ;;  %2960 = vrot.lane.b32.xlu1 %v2662_v28, %s5884_s23 }
 0x428   : > { %v2556_v47 = vpop.permute.xlu0 %2555 }
 0x429   : > { %v2637_v27 = vrot.slane %v2556_v47, 1 }
 0x42a   : > { %v2558_v12 = vpop.permute.xlu1 %2557 }
 0x42b   : > { %v2673_v7 = vsel %vm2655_vm6, %v2636_v16, %v2637_v27  ;;  %v2638_v22 = vrot.slane %v2558_v12, 1  ;;  %v583_v16 = vand.u32 15, %v457_v63 }
 0x42c   : > { %v2701_v11 = vmul.f32 %v7020_v0, %v2673_v7  ;;  %v7026_v33 = vpop.permute.xlu0 %2579 }
 0x42d   : > { %v8447_v51 = vrot.slane %v7026_v33, 1  ;;  %v2672_v28 = vsel %vm2655_vm6, %v2637_v27, %v2638_v22  ;;  %vm969_vm14 = vcmp.lt.s32.totalorder %v583_v16, 15 }
 0x42e   : > { %v7034_v47 = vpop.permute.xlu1 %2581  ;;  %2938 = vrot.lane.b32.xlu0 %v2701_v11, %s5884_s23  ;;  %2940 = vrot.lane.b32.xlu1 %v2672_v28, %s5884_s23  ;;  %v7049_v11 = vsel %vm969_vm14, 1.0, %v8521_v58 }
 0x42f   : > { %v2661_v32 = vsel %vm2655_vm6, %v2648_v53, %v8447_v51  ;;  %8539 = vst [vmem:[#allocation58_spill] sm:$0xff] %v7049_v11 }
 0x430   : > { %v2713_v12 = vmul.f32 %v7029_v5, %v2661_v32  ;;  %v7043_v7 = vpop.permute.xlu0 %2782 }
 0x431   : > { %8538 = vst [vmem:[#allocation57_spill] sm:$0xff] %v7043_v7 }
 0x432   : > { %v7045_v0 = vpop.permute.xlu1 %2780  ;;  %2962 = vrot.lane.b32.xlu0 %v2713_v12, %s5884_s23 }
 0x434   : > { %v2560_v27 = vpop.permute.xlu0 %2559 }
 0x435   : > { %v2639_v28 = vrot.slane %v2560_v27, 1  ;;  %v597_v27 = vand.u32 15, %v459_v56 }
 0x436   : > { %v2562_v63 = vpop.permute.xlu1 %2561 }
 0x437   : > { %v2671_v53 = vsel %vm2655_vm6, %v2638_v22, %v2639_v28  ;;  %v2640_v51 = vrot.slane %v2562_v63, 1  ;;  %vm971_vm15 = vcmp.lt.s32.totalorder %v597_v27, 15  ;;  %v461_v27 = vadd.s32 152, %v6500_v31 }
 0x438   : > { %v2703_v32 = vmul.f32 %v7049_v11, %v2671_v53  ;;  %v7055_v5 = vpop.permute.xlu0 %2583  ;;  %v7068_v63 = vsel %vm971_vm15, 1.0, %v8521_v58 }
 0x439   : > { %v2670_v12 = vsel %vm2655_vm6, %v2639_v28, %v2640_v51  ;;  %8542 = vst [vmem:[#allocation61_spill] sm:$0xff] %v7068_v63 }
 0x43a   : > { %v7059_v16 = vpop.permute.xlu1 %2585  ;;  %2942 = vrot.lane.b32.xlu0 %v2703_v32, %s5884_s23  ;;  %2944 = vrot.lane.b32.xlu1 %v2670_v12, %s5884_s23 }
 0x43c   : > { %v7063_v4 = vpop.permute.xlu0 %2786 }
 0x43d   : > { %8540 = vst [vmem:[#allocation59_spill] sm:$0xff] %v7063_v4 }
 0x43e   : > { %v7065_v15 = vpop.permute.xlu1 %2784 }
 0x43f   : > { %8541 = vst [vmem:[#allocation60_spill] sm:$0xff] %v7065_v15  ;;  %v465_v15 = vadd.s32 184, %v6500_v31 }
 0x440   : > { %v2564_v22 = vpop.permute.xlu0 %2563 }
 0x441   : > { %v2641_v53 = vrot.slane %v2564_v22, 1 }
 0x442   : > { %v2566_v11 = vpop.permute.xlu1 %2565 }
 0x443   : > { %v2669_v28 = vsel %vm2655_vm6, %v2640_v51, %v2641_v53  ;;  %v2642_v36 = vrot.slane %v2566_v11, 1  ;;  %v470_v51 = vadd.s32 224, %v6500_v31 }
 0x444   : > { %v2705_v32 = vmul.f32 %v7068_v63, %v2669_v28  ;;  %v7073_v23 = vpop.permute.xlu0 %2587  ;;  %v611_v28 = vand.u32 15, %v461_v27  ;;  %v463_v63 = vadd.s32 168, %v6500_v31 }
 0x445   : > { %v2668_v56 = vsel %vm2655_vm6, %v2641_v53, %v2642_v36  ;;  %v674_v53 = vand.u32 15, %v470_v51 }
 0x446   : > { %v7077_v12 = vpop.permute.xlu1 %2589  ;;  %2946 = vrot.lane.b32.xlu0 %v2705_v32, %s5884_s23  ;;  %2948 = vrot.lane.b32.xlu1 %v2668_v56, %s5884_s23  ;;  %vm973_vm2 = vcmp.lt.s32.totalorder %v611_v28, 15  ;;  %v625_v4 = vand.u32 15, %v463_v63 }
 0x447   : > { %vm886_vm4 = vcmp.gt.s32.totalorder %v674_v53, 0  ;;  %v7091_v1 = vsel %vm973_vm2, 1.0, %v8521_v58 }
 0x448   : > { %v7082_v22 = vpop.permute.xlu0 %2790  ;;  %8545 = vst [vmem:[#allocation64_spill] sm:$0xff] %v7091_v1  ;;  %vm975_vm5 = vcmp.lt.s32.totalorder %v625_v4, 15  ;;  %v7101_v63 = vsel %vm886_vm4, 1.0, %v8521_v58 }
 0x449   : > { %8543 = vst [vmem:[#allocation62_spill] sm:$0xff] %v7082_v22 }
 0x44a   : > { %v7085_v11 = vpop.permute.xlu1 %2788 }
 0x44b   : > { %8544 = vst [vmem:[#allocation63_spill] sm:$0xff] %v7085_v11 }
 0x44c   : > { %v7088_v19 = vpop.permute.xlu0 %2752 }
 0x44e   : > { %v2570_v9 = vpop.permute.xlu1 %2569 }
 0x44f   : > { %v2644_v56 = vrot.slane %v2570_v9, 1  ;;  %v469_v9 = vadd.s32 216, %v6500_v31 }
 0x450   : > { %v2568_v32 = vpop.permute.xlu0 %2567 }
 0x451   : > { %v2643_v22 = vrot.slane %v2568_v32, 1  ;;  %v7107_v32 = vsel %vm975_vm5, 1.0, %v8521_v58  ;;  %v667_v7 = vand.u32 15, %v469_v9 }
 0x452   : > { %v7094_v62 = vpop.permute.xlu1 %2792  ;;  %8547 = vst [vmem:[#allocation66_spill] sm:$0xff] %v7107_v32 }
 0x453   : > { %8546 = vst [vmem:[#allocation65_spill] sm:$0xff] %v7094_v62  ;;  %v2667_v27 = vsel %vm2655_vm6, %v2642_v36, %v2643_v22  ;;  %v2666_v51 = vsel %vm2655_vm6, %v2643_v22, %v2644_v56  ;;  %v639_v62 = vand.u32 15, %v465_v15  ;;  %v2491_v36 = vmul.f32 %v7101_v63, %v6776_v20 }
 0x454   : > { %v2707_v28 = vmul.f32 %v7091_v1, %v2667_v27  ;;  %v2572_v53 = vpop.permute.xlu0 %2571  ;;  %2952 = vrot.lane.b32.xlu1 %v2666_v51, %s5884_s23  ;;  %v472_v51 = vadd.s32 240, %v6500_v31  ;;  %v471_v15 = vadd.s32 232, %v6500_v31  ;;  %vm981_vm8 = vcmp.lt.s32.totalorder %v667_v7, 15 }
 0x455   : > { %v2645_v4 = vrot.slane %v2572_v53, 1  ;;  %vm977_vm7 = vcmp.lt.s32.totalorder %v639_v62, 15 }
 0x456   : > { %v7109_v11 = vpop.permute.xlu1 %2804  ;;  %2950 = vrot.lane.b32.xlu0 %v2707_v28, %s5884_s23  ;;  %v7124_v20 = vsel %vm977_vm7, 1.0, %v8521_v58  ;;  %v688_v9 = vand.u32 15, %v472_v51 }
 0x457   : > { %v2665_v22 = vsel %vm2655_vm6, %v2644_v56, %v2645_v4 }
 0x458   : > { %v2709_v27 = vmul.f32 %v7107_v32, %v2665_v22  ;;  %v7117_v1 = vpop.permute.xlu0 %2794  ;;  %2808 = vrot.lane.b32.xlu1 %v2491_v36, %s5884_s23  ;;  %v2650_v22 = vrot.slane %v7034_v47, 1  ;;  %v2651_v36 = vrot.slane %v7055_v5, 1  ;;  %v8548_v32 = vrot.slane %v7006_v50, 1 }
 0x459   : > { %v7142_v47 = vsel %vm981_vm8, 1.0, %v8521_v58  ;;  %v473_v5 = vadd.s32 248, %v6500_v31  ;;  %vm888_vm9 = vcmp.gt.s32.totalorder %v688_v9, 0  ;;  %v2849_v9 = vadd.f32 %v6780_v40, %v6507_v34 }
 0x45a   : > { %v2574_v53 = vpop.permute.xlu1 %2573  ;;  %2954 = vrot.lane.b32.xlu0 %v2709_v27, %s5884_s23  ;;  %8549 = vst [vmem:[#allocation67_spill] sm:$0xff] %v7142_v47  ;;  %v2848_v40 = vadd.f32 %v7088_v19, %v6503_v61  ;;  %v2850_v19 = vadd.f32 %v6804_v10, %v6520_v39 }
 0x45b   : > { %v2646_v28 = vrot.slane %v2574_v53, 1  ;;  %v681_v53 = vand.u32 15, %v471_v15  ;;  %v2653_v15 = vrot.slane %v7073_v23, 1  ;;  %v7166_v23 = vsel %vm888_vm9, 1.0, %v8521_v58 }
 0x45c   : > { %v7126_v56 = vpop.permute.xlu0 %2802 }
 0x45d   : > { %v2663_v62 = vsel %vm2655_vm6, %v2646_v28, %v8548_v32  ;;  %v2664_v27 = vsel %vm2655_vm6, %v2645_v4, %v2646_v28  ;;  %v2659_v32 = vsel %vm2655_vm6, %v2650_v22, %v2651_v36  ;;  %v2652_v4 = vrot.slane %v7059_v16, 1 }
 0x45e   : > { %v7136_v7 = vpop.permute.xlu1 %2796  ;;  %2810 = vrot.lane.b32.xlu0 %v6788_v59, %s5884_s23  ;;  %2956 = vrot.lane.b32.xlu1 %v2664_v27, %s5884_s23  ;;  %v2711_v50 = vmul.f32 %v7124_v20, %v2663_v62  ;;  %v8550_v59 = vrot.slane %v7026_v33, 1  ;;  %vm983_vm10 = vcmp.lt.s32.totalorder %v681_v53, 15  ;;  %v2715_v27 = vmul.f32 %v7142_v47, %v2659_v32 }
 0x45f   : > { %v7169_v33 = vsel %vm983_vm10, 1.0, %v8521_v58  ;;  %v695_v53 = vand.u32 15, %v473_v5  ;;  %v2493_v5 = vmul.f32 %v7166_v23, %v6808_v42  ;;  %v2853_v42 = vadd.f32 %v6858_v14, %v6549_v57 }
 0x460   : > { %v7146_v51 = vpop.permute.xlu0 %2806  ;;  %v2660_v28 = vsel %vm2655_vm6, %v8550_v59, %v2650_v22  ;;  %v2657_v22 = vsel %vm2655_vm6, %v2652_v4, %v2653_v15  ;;  %v2852_v14 = vadd.f32 %v6840_v37, %v6541_v52  ;;  %v2855_v37 = vadd.f32 %v6888_v25, %v6570_v6 }
 0x461   : > { %v2717_v59 = vmul.f32 %v7169_v33, %v2657_v22  ;;  %vm985_vm11 = vcmp.lt.s32.totalorder %v695_v53, 15 }
 0x462   : > { %2958 = vrot.lane.b32.xlu0 %v2711_v50, %s5884_s23  ;;  %2964 = vrot.lane.b32.xlu1 %v2660_v28, %s5884_s23  ;;  %v7158_v62 = vpop.permute.xlu1 %2800  ;;  %v2658_v50 = vsel %vm2655_vm6, %v2651_v36, %v2652_v4  ;;  %v2654_v28 = vrot.slane %v7077_v12, 1  ;;  %v2851_v36 = vadd.f32 %v6823_v3, %v6528_v44  ;;  %v7194_v44 = vsel %vm985_vm11, 1.0, %v8521_v58 }
 0x463   : > { %v8551_v3 = vrot.slane %v6765_v46, 1 }
 0x464   : > { %v7163_v16 = vpop.permute.xlu0 %2798  ;;  %v2656_v53 = vsel %vm2655_vm6, %v2653_v15, %v2654_v28  ;;  %v2854_v15 = vadd.f32 %v6878_v60, %v6562_v2 }
 0x466   : > { %2966 = vrot.lane.b32.xlu0 %v2715_v27, %s5884_s23  ;;  %2968 = vrot.lane.b32.xlu1 %v2658_v50, %s5884_s23  ;;  %v2915_v34 = vpop.permute.xlu1 %2914 }
 0x467   : > { %v3009_v32 = vadd.f32 %v2915_v34, %v2849_v9 }
 0x468   : > { %v2913_v47 = vpop.permute.xlu0 %2912 }
 0x469   : > { %v3050_v4 = vadd.f32 %v6740_v35, %v3009_v32  ;;  %v3008_v27 = vadd.f32 %v2913_v47, %v2848_v40  ;;  %v2687_v47 = vsel %vm2655_vm6, %v2654_v28, %v8551_v3 }
 0x46a   : > { %2970 = vrot.lane.b32.xlu0 %v2717_v59, %s5884_s23  ;;  %2812 = vrot.lane.b32.xlu1 %v2493_v5, %s5884_s23  ;;  %v2919_v61 = vpop.permute.xlu1 %2918  ;;  %v2719_v32 = vmul.f32 %v7194_v44, %v2687_v47  ;;  %v2857_v47 = vadd.f32 %v6929_v45, %v6591_v17 }
 0x46b   : > { %v3049_v12 = vadd.f32 %v6740_v35, %v3008_v27  ;;  %v3011_v9 = vadd.f32 %v2919_v61, %v2851_v36  ;;  %v3082_v50 = vmax.f32 %v3050_v4, 0.0  ;;  %v2856_v27 = vadd.f32 %v6910_v18, %v6583_v13 }
 0x46c   : > { %v2917_v22 = vpop.permute.xlu0 %2916 }
 0x46d   : > { %v3081_v39 = vmax.f32 %v3049_v12, 0.0  ;;  %v3052_v10 = vadd.f32 %v6740_v35, %v3011_v9  ;;  %v3010_v34 = vadd.f32 %v2917_v22, %v2850_v19 }
 0x46e   : > { %2814 = vrot.lane.b32.xlu0 %v6820_v43, %s5884_s23  ;;  %2972 = vrot.lane.b32.xlu1 %v2656_v53, %s5884_s23  ;;  %v2923_v57 = vpop.permute.xlu1 %2922  ;;  %v2858_v53 = vadd.f32 %v6973_v29, %v6603_v26 }
 0x46f   : > { %v3113_v58 = vpack.c.bf16 %v3082_v50, %v3081_v39  ;;  %v3051_v46 = vadd.f32 %v6740_v35, %v3010_v34  ;;  %v3013_v40 = vadd.f32 %v2923_v57, %v2853_v42  ;;  %v3084_v28 = vmax.f32 %v3052_v10, 0.0 }
 0x470   : > { %v2921_v59 = vpop.permute.xlu0 %2920  ;;  %v2859_v57 = vadd.f32 %v6955_v8, %v6611_v30 }
 0x471   : > { %v3083_v5 = vmax.f32 %v3051_v46, 0.0  ;;  %v3054_v43 = vadd.f32 %v6740_v35, %v3013_v40  ;;  %v3012_v36 = vadd.f32 %v2921_v59, %v2852_v14 }
 0x472   : > { %2974 = vrot.lane.b32.xlu0 %v2719_v32, %s5884_s23  ;;  %3145 = vrot.lane.b32.xlu1 %v3113_v58, %s5888_s25  ;;  %v2925_v52 = vpop.permute.xlu1 %2924 }
 0x473   : > { %v3114_v4 = vpack.c.bf16 %v3084_v28, %v3083_v5  ;;  %v3053_v2 = vadd.f32 %v6740_v35, %v3012_v36  ;;  %v3014_v60 = vadd.f32 %v2925_v52, %v2854_v15  ;;  %v3086_v19 = vmax.f32 %v3054_v43, 0.0 }
 0x474   : > { %v2927_v61 = vpop.permute.xlu0 %2926  ;;  %v2860_v5 = vadd.f32 %v7016_v48, %v6623_v54  ;;  %v2861_v52 = vadd.f32 %v7010_v24, %v6628_v41 }
 0x475   : > { %v3085_v12 = vmax.f32 %v3053_v2, 0.0  ;;  %v3055_v9 = vadd.f32 %v6740_v35, %v3014_v60  ;;  %v3015_v42 = vadd.f32 %v2927_v61, %v2855_v37  ;;  %v2872_v37 = vadd.f32 %v7158_v62, %v6694_v38 }
 0x476   : > { %3147 = vrot.lane.b32.xlu0 %v3114_v4, %s5888_s25  ;;  %v2929_v3 = vpop.permute.xlu1 %2928  ;;  %v2873_v61 = vadd.f32 %v7126_v56, %v6698_v21  ;;  %v2862_v38 = vadd.f32 %v7045_v0, %v6637_v49  ;;  %v8552_v21 = vld [vmem:[#allocation57_spill] sm:$0xff] }
 0x477   : > { %v3115_v6 = vpack.c.bf16 %v3086_v19, %v3085_v12  ;;  %v3056_v25 = vadd.f32 %v6740_v35, %v3015_v42  ;;  %v3016_v22 = vadd.f32 %v2929_v3, %v2856_v27  ;;  %v3087_v18 = vmax.f32 %v3055_v9, 0.0 }
 0x478   : > { %v2931_v13 = vpop.permute.xlu0 %2930  ;;  %v2863_v56 = vadd.f32 %v8552_v21, %v6640_v55  ;;  %v8556_v55 = vld [vmem:[#allocation59_spill] sm:$0xff] }
 0x479   : > { %v3088_v50 = vmax.f32 %v3056_v25, 0.0  ;;  %v3057_v39 = vadd.f32 %v6740_v35, %v3016_v22  ;;  %v3017_v10 = vadd.f32 %v2931_v13, %v2857_v47  ;;  %3149 = vrot.lane.b32.xlu1 %v3115_v6, %s5888_s25 }
 0x47a   : > { %v2933_v34 = vpop.permute.xlu1 %2932 }
 0x47b   : > { %v3116_v17 = vpack.c.bf16 %v3088_v50, %v3087_v18  ;;  %v3058_v45 = vadd.f32 %v6740_v35, %v3017_v10  ;;  %v3018_v14 = vadd.f32 %v2933_v34, %v2858_v53  ;;  %v3089_v46 = vmax.f32 %v3057_v39, 0.0  ;;  %v8553_v39 = vld [vmem:[#allocation26_spill] sm:$0xff]  ;;  %v8554_v10 = vld [vmem:[#allocation60_spill] sm:$0xff] }
 0x47c   : > { %v2935_v58 = vpop.permute.xlu0 %2934  ;;  %v2864_v34 = vadd.f32 %v8554_v10, %v8553_v39 }
 0x47d   : > { %v3090_v40 = vmax.f32 %v3058_v45, 0.0  ;;  %v3059_v26 = vadd.f32 %v6740_v35, %v3018_v14  ;;  %v3019_v29 = vadd.f32 %v2935_v58, %v2859_v57  ;;  %3151 = vrot.lane.b32.xlu0 %v3116_v17, %s5888_s25  ;;  %v8555_v45 = vld [vmem:[#allocation27_spill] sm:$0xff] }
 0x47e   : > { %v2937_v8 = vpop.permute.xlu1 %2936  ;;  %v2865_v14 = vadd.f32 %v8556_v55, %v8555_v45 }
 0x47f   : > { %v3117_v15 = vpack.c.bf16 %v3090_v40, %v3089_v46  ;;  %v3060_v32 = vadd.f32 %v6740_v35, %v3019_v29  ;;  %v3091_v59 = vmax.f32 %v3059_v26, 0.0  ;;  %v3020_v43 = vadd.f32 %v2937_v8, %v2860_v5 }
 0x481   : > { %v3092_v28 = vmax.f32 %v3060_v32, 0.0  ;;  %3153 = vrot.lane.b32.xlu1 %v3117_v15, %s5888_s25  ;;  %v3061_v2 = vadd.f32 %v6740_v35, %v3020_v43 }
 0x483   : > { %v3118_v30 = vpack.c.bf16 %v3092_v28, %v3091_v59  ;;  %v3093_v54 = vmax.f32 %v3061_v2, 0.0  ;;  %v8557_v28 = vld [vmem:[#allocation28_spill] sm:$0xff]  ;;  %v8562_v2 = vld [vmem:[#allocation65_spill] sm:$0xff] }
 0x485   : > { %3155 = vrot.lane.b32.xlu0 %v3118_v30, %s5888_s25  ;;  %v8558_v30 = vld [vmem:[#allocation63_spill] sm:$0xff] }
 0x486   : > { %v2866_v8 = vadd.f32 %v8558_v30, %v8557_v28 }
 0x498   : > { %v2961_v36 = vpop.permute.xlu1 %2960 }
 0x499   : > { %v3032_v60 = vadd.f32 %v2961_v36, %v2872_v37  ;;  %v8559_v36 = vld [vmem:[#allocation29_spill] sm:$0xff] }
 0x49b   : > { %v3073_v48 = vadd.f32 %v6740_v35, %v3032_v60 }
 0x49d   : > { %v3105_v3 = vmax.f32 %v3073_v48, 0.0 }
 0x4a0   : > { %v2939_v4 = vpop.permute.xlu0 %2938  ;;  %v2941_v41 = vpop.permute.xlu1 %2940 }
 0x4a1   : > { %v3021_v27 = vadd.f32 %v2939_v4, %v2861_v52  ;;  %v3022_v47 = vadd.f32 %v2941_v41, %v2862_v38  ;;  %v8560_v52 = vld [vmem:[#allocation62_spill] sm:$0xff] }
 0x4a2   : > { %v2867_v37 = vadd.f32 %v8560_v52, %v8559_v36  ;;  %v8561_v4 = vld [vmem:[#allocation30_spill] sm:$0xff] }
 0x4a3   : > { %v3062_v19 = vadd.f32 %v6740_v35, %v3021_v27  ;;  %v3063_v53 = vadd.f32 %v6740_v35, %v3022_v47  ;;  %v2868_v60 = vadd.f32 %v8562_v2, %v8561_v4  ;;  %v8564_v47 = vld [vmem:[#allocation33_spill] sm:$0xff] }
 0x4a4   : > { %v2963_v12 = vpop.permute.xlu0 %2962 }
 0x4a5   : > { %v3094_v9 = vmax.f32 %v3062_v19, 0.0  ;;  %v3033_v42 = vadd.f32 %v2963_v12, %v2873_v61  ;;  %v3095_v49 = vmax.f32 %v3063_v53, 0.0 }
 0x4a7   : > { %v3119_v24 = vpack.c.bf16 %v3094_v9, %v3093_v54  ;;  %v3074_v62 = vadd.f32 %v6740_v35, %v3033_v42  ;;  %v8563_v54 = vld [vmem:[#allocation31_spill] sm:$0xff] }
 0x4a8   : > { %v2869_v48 = vadd.f32 %v7117_v1, %v8563_v54 }
 0x4a9   : > { %v3106_v6 = vmax.f32 %v3074_v62, 0.0  ;;  %3157 = vrot.lane.b32.xlu1 %v3119_v24, %s5888_s25 }
 0x4ab   : > { %v7254_v25 = vpack.c.bf16 %v3106_v6, %v3105_v3  ;;  %v2870_v6 = vadd.f32 %v7136_v7, %v8564_v47 }
 0x4ac   : > { %v2943_v22 = vpop.permute.xlu0 %2942  ;;  %v2945_v50 = vpop.permute.xlu1 %2944 }
 0x4ad   : > { %v3023_v13 = vadd.f32 %v2943_v22, %v2863_v56  ;;  %v3024_v17 = vadd.f32 %v2945_v50, %v2864_v34  ;;  %v8566_v50 = vld [vmem:[#allocation34_spill] sm:$0xff] }
 0x4ae   : > { %v2871_v39 = vadd.f32 %v7163_v16, %v8566_v50 }
 0x4af   : > { %v3064_v18 = vadd.f32 %v6740_v35, %v3023_v13  ;;  %v3065_v46 = vadd.f32 %v6740_v35, %v3024_v17  ;;  %v5709_v17 = vld [vmem:[%s8397_s8] sm:$0xff]  }
 0x4b0   : > { %5472 = vmatprep.subr.bf16.mxu1 %v5709_v17 }
 0x4b1   : > { %v3096_v0 = vmax.f32 %v3064_v18, 0.0  ;;  %v3097_v29 = vmax.f32 %v3065_v46, 0.0  ;;  %5473 = vmatpush3.bf16.msra.mxu1 %v5709_v17 }
 0x4b3   : > { %v3120_v57 = vpack.c.bf16 %v3096_v0, %v3095_v49  ;;  %v8565_v49 = vld [vmem:[#allocation35_spill] sm:$0xff] }
 0x4b4   : > { %v2874_v0 = vadd.f32 %v7109_v11, %v8565_v49 }
 0x4b5   : > { %3159 = vrot.lane.b32.xlu0 %v3120_v57, %s5888_s25 }
 0x4b8   : > { %v2947_v58 = vpop.permute.xlu0 %2946  ;;  %v2949_v59 = vpop.permute.xlu1 %2948 }
 0x4b9   : > { %v3025_v40 = vadd.f32 %v2947_v58, %v2865_v14  ;;  %v3026_v5 = vadd.f32 %v2949_v59, %v2866_v8  ;;  %v8567_v14 = vld [vmem:[#allocation36_spill] sm:$0xff]  ;;  %v8568_v58 = vld [vmem:[#allocation38_spill] sm:$0xff] }
 0x4ba   : > { %v2875_v11 = vadd.f32 %v7146_v51, %v8567_v14  ;;  %v8569_v51 = vld [vmem:[#allocation39_spill] sm:$0xff] }
 0x4bb   : > { %v3066_v26 = vadd.f32 %v6740_v35, %v3025_v40  ;;  %v3067_v61 = vadd.f32 %v6740_v35, %v3026_v5 }
 0x4bd   : > { %v3098_v15 = vmax.f32 %v3066_v26, 0.0  ;;  %v3099_v38 = vmax.f32 %v3067_v61, 0.0 }
 0x4bf   : > { %v3121_v32 = vpack.c.bf16 %v3098_v15, %v3097_v29  ;;  %v5710_v15 = vld [vmem:[%s8397_s8 + $0x8] sm:$0xff]  }
 0x4c0   : > { %5474 = vmatprep.subr.bf16.mxu1 %v5710_v15 }
 0x4c1   : > { %3161 = vrot.lane.b32.xlu1 %v3121_v32, %s5888_s25  ;;  %5475 = vmatpush3.bf16.msra.mxu1 %v5710_v15 }
 0x4c6   : > { %v2953_v43 = vpop.permute.xlu1 %2952 }
 0x4c7   : > { %v3028_v19 = vadd.f32 %v2953_v43, %v2868_v60 }
 0x4c8   : > { %v2951_v27 = vpop.permute.xlu0 %2950 }
 0x4c9   : > { %v3027_v12 = vadd.f32 %v2951_v27, %v2867_v37  ;;  %v3069_v24 = vadd.f32 %v6740_v35, %v3028_v19  ;;  %v5711_v37 = vld [vmem:[%s8397_s8 + $0x10] sm:$0xff]   ;;  %v8570_v19 = vld [vmem:[#allocation40_spill] sm:$0xff] }
 0x4ca   : > { %v2809_v42 = vpop.permute.xlu1 %2808  ;;  %5476 = vmatprep.subr.bf16.mxu1 %v5711_v37 }
 0x4cb   : > { %v3068_v9 = vadd.f32 %v6740_v35, %v3027_v12  ;;  %v3101_v13 = vmax.f32 %v3069_v24, 0.0  ;;  %v2876_v46 = vadd.f32 %v2809_v42, %v8568_v58  ;;  %5477 = vmatpush3.bf16.msra.mxu1 %v5711_v37 }
 0x4cc   : > { %v2955_v41 = vpop.permute.xlu0 %2954 }
 0x4cd   : > { %v3100_v62 = vmax.f32 %v3068_v9, 0.0  ;;  %v3029_v3 = vadd.f32 %v2955_v41, %v2869_v48  ;;  %v5712_v9 = vld [vmem:[%s8397_s8 + $0x18] sm:$0xff]  }
 0x4ce   : > { %5478 = vmatprep.subr.bf16.mxu1 %v5712_v9 }
 0x4cf   : > { %v3122_v21 = vpack.c.bf16 %v3100_v62, %v3099_v38  ;;  %v3070_v56 = vadd.f32 %v6740_v35, %v3029_v3  ;;  %v8571_v62 = vld [vmem:[#allocation41_spill] sm:$0xff]  ;;  %5479 = vmatpush3.bf16.msra.mxu1 %v5712_v9 }
 0x4d0   : > { %v2811_v22 = vpop.permute.xlu0 %2810  ;;  %v2957_v53 = vpop.permute.xlu1 %2956 }
 0x4d1   : > { %v3102_v18 = vmax.f32 %v3070_v56, 0.0  ;;  %v3030_v1 = vadd.f32 %v2957_v53, %v2870_v6  ;;  %3163 = vrot.lane.b32.xlu0 %v3122_v21, %s5888_s25  ;;  %v2877_v8 = vadd.f32 %v2811_v22, %v8569_v51  ;;  %v5713_v21 = vld [vmem:[%s8397_s8 + $0x20] sm:$0xff]  }
 0x4d2   : > { %5480 = vmatprep.subr.bf16.mxu1 %v5713_v21 }
 0x4d3   : > { %v3123_v10 = vpack.c.bf16 %v3102_v18, %v3101_v13  ;;  %v3071_v34 = vadd.f32 %v6740_v35, %v3030_v1  ;;  %5481 = vmatpush3.bf16.msra.mxu1 %v5713_v21  ;;  %v5714_v18 = vld [vmem:[%s8397_s8 + $0x28] sm:$0xff]  }
 0x4d4   : > { %v2959_v7 = vpop.permute.xlu0 %2958  ;;  %v2965_v57 = vpop.permute.xlu1 %2964  ;;  %5482 = vmatprep.subr.bf16.mxu1 %v5714_v18 }
 0x4d5   : > { %v3031_v45 = vadd.f32 %v2959_v7, %v2871_v39  ;;  %v3034_v55 = vadd.f32 %v2965_v57, %v2874_v0  ;;  %3165 = vrot.lane.b32.xlu1 %v3123_v10, %s5888_s25  ;;  %v3103_v40 = vmax.f32 %v3071_v34, 0.0 }
 0x4d7   : > { %v3072_v16 = vadd.f32 %v6740_v35, %v3031_v45  ;;  %v3075_v59 = vadd.f32 %v6740_v35, %v3034_v55  ;;  %5483 = vmatpush3.bf16.msra.mxu1 %v5714_v18 }
 0x4d8   : > { %v2967_v26 = vpop.permute.xlu0 %2966  ;;  %v2969_v29 = vpop.permute.xlu1 %2968 }
 0x4d9   : > { %v3104_v32 = vmax.f32 %v3072_v16, 0.0  ;;  %v3035_v28 = vadd.f32 %v2967_v26, %v2875_v11  ;;  %v3036_v30 = vadd.f32 %v2969_v29, %v2876_v46  ;;  %3169 = vrot.lane.b32.xlu1 %v7254_v25, %s5888_s25  ;;  %v3107_v4 = vmax.f32 %v3075_v59, 0.0 }
 0x4db   : > { %v3124_v5 = vpack.c.bf16 %v3104_v32, %v3103_v40  ;;  %v3076_v43 = vadd.f32 %v6740_v35, %v3035_v28  ;;  %v3077_v60 = vadd.f32 %v6740_v35, %v3036_v30 }
 0x4dc   : > { %v2971_v36 = vpop.permute.xlu0 %2970  ;;  %v2813_v52 = vpop.permute.xlu1 %2812 }
 0x4dd   : > { %v3108_v2 = vmax.f32 %v3076_v43, 0.0  ;;  %v3037_v27 = vadd.f32 %v2971_v36, %v2877_v8  ;;  %v2878_v12 = vadd.f32 %v2813_v52, %v8570_v19  ;;  %v3109_v42 = vmax.f32 %v3077_v60, 0.0  ;;  %v3210_v43 = vld [vmem:[#allocation3] sm:$0xff] }
 0x4df   : > { %v3126_v25 = vpack.c.bf16 %v3108_v2, %v3107_v4  ;;  %v3078_v61 = vadd.f32 %v6740_v35, %v3037_v27 }
 0x4e0   : > { %v2815_v54 = vpop.permute.xlu0 %2814  ;;  %v2973_v48 = vpop.permute.xlu1 %2972 }
 0x4e1   : > { %v3110_v41 = vmax.f32 %v3078_v61, 0.0  ;;  %v3038_v38 = vadd.f32 %v2973_v48, %v2878_v12  ;;  %3171 = vrot.lane.b32.xlu0 %v3126_v25, %s5888_s25  ;;  %v2879_v3 = vadd.f32 %v2815_v54, %v8571_v62 }
 0x4e3   : > { %v3127_v24 = vpack.c.bf16 %v3110_v41, %v3109_v42  ;;  %v3079_v56 = vadd.f32 %v6740_v35, %v3038_v38 }
 0x4e4   : > { %v2975_v47 = vpop.permute.xlu0 %2974  ;;  %v3146_v6 = vpop.permute.xlu1 %3145 }
 0x4e5   : > { %v3039_v22 = vadd.f32 %v2975_v47, %v2879_v3  ;;  %3194 = vst.msk [vmem:[#allocation3 + $0x8] sm:$0xff] %vm437_vm0, %v3146_v6  ;;  %3173 = vrot.lane.b32.xlu1 %v3127_v24, %s5888_s25  ;;  %v3111_v1 = vmax.f32 %v3079_v56, 0.0 }
 0x4e7   : > { %v3080_v53 = vadd.f32 %v6740_v35, %v3039_v22  ;;  %v3258_v22 = vld [vmem:[#allocation3 + $0x88] sm:$0xff] }
 0x4e8   : > { %v3148_v13 = vpop.permute.xlu0 %3147 }
 0x4e9   : > { %v3112_v49 = vmax.f32 %v3080_v53, 0.0  ;;  %3195 = vst.msk [vmem:[#allocation3 + $0x10] sm:$0xff] %vm437_vm0, %v3148_v13  ;;  %v5333_v53 = vld [vmem:[%s8398_s9] ss:$0 sm:$0xff] }
 0x4eb   : > { %v3128_v0 = vpack.c.bf16 %v3112_v49, %v3111_v1  ;;  %v3150_v50 = vpop.permute.xlu1 %3149 }
 0x4ec   : > { %3196 = vst.msk [vmem:[#allocation3 + $0x18] sm:$0xff] %vm437_vm0, %v3150_v50  ;;  %v7325_v39 = vld [vmem:[#allocation3 + $0x8] sm:$0xff] }
 0x4ed   : > { %3175 = vrot.lane.b32.xlu0 %v3128_v0, %s5888_s25  ;;  %3275 = vrot.lane.b32.xlu1 %v7325_v39, %s5884_s23 }
 0x4ef   : > { %v3152_v35 = vpop.permute.xlu0 %3151 }
 0x4f0   : > { %3197 = vst.msk [vmem:[#allocation3 + $0x20] sm:$0xff] %vm437_vm0, %v3152_v35  ;;  %v7331_v10 = vld [vmem:[#allocation3 + $0x10] sm:$0xff] }
 0x4f1   : > { %3167 = vrot.lane.b32.xlu0 %v3124_v5, %s5888_s25  ;;  %3323 = vrot.lane.b32.xlu1 %v7331_v10, %s5886_s20 }
 0x4f3   : > { %v3154_v34 = vpop.permute.xlu1 %3153  ;;  %v7336_v7 = vld [vmem:[#allocation3 + $0x18] sm:$0xff] }
 0x4f4   : > { %3198 = vst.msk [vmem:[#allocation3 + $0x28] sm:$0xff] %vm437_vm0, %v3154_v34 }
 0x4f5   : > { %3277 = vrot.lane.b32.xlu0 %v7331_v10, %s5884_s23  ;;  %3279 = vrot.lane.b32.xlu1 %v7336_v7, %s5884_s23 }
 0x4f7   : > { %v3156_v57 = vpop.permute.xlu0 %3155  ;;  %v7343_v17 = vld [vmem:[#allocation3 + $0x20] sm:$0xff] }
 0x4f8   : > { %3199 = vst.msk [vmem:[#allocation3 + $0x30] sm:$0xff] %vm437_vm0, %v3156_v57 }
 0x4f9   : > { %3325 = vrot.lane.b32.xlu0 %v7336_v7, %s5886_s20  ;;  %3327 = vrot.lane.b32.xlu1 %v7343_v17, %s5886_s20 }
 0x4fb   : > { %v7350_v45 = vld [vmem:[#allocation3 + $0x28] sm:$0xff] }
 0x4fd   : > { %3281 = vrot.lane.b32.xlu0 %v7343_v17, %s5884_s23  ;;  %3283 = vrot.lane.b32.xlu1 %v7350_v45, %s5884_s23 }
 0x4ff   : > { %v7356_v55 = vld [vmem:[#allocation3 + $0x30] sm:$0xff] }
 0x501   : > { %3329 = vrot.lane.b32.xlu0 %v7350_v45, %s5886_s20  ;;  %3331 = vrot.lane.b32.xlu1 %v7356_v55, %s5886_s20 }
 0x505   : > { %3285 = vrot.lane.b32.xlu0 %v7356_v55, %s5884_s23 }
 0x51b   : > { %v3158_v14 = vpop.permute.xlu1 %3157 }
 0x51c   : > { %3200 = vst.msk [vmem:[#allocation3 + $0x38] sm:$0xff] %vm437_vm0, %v3158_v14 }
 0x523   : > { %v7365_v11 = vld [vmem:[#allocation3 + $0x38] sm:$0xff] }
 0x524   : > { %3333 = vrot.lane.b32.xlu0 %v7365_v11, %s5886_s20  ;;  %3287 = vrot.lane.b32.xlu1 %v7365_v11, %s5884_s23 }
 0x527   : > { %v3160_v58 = vpop.permute.xlu0 %3159 }
 0x528   : > { %3201 = vst.msk [vmem:[#allocation3 + $0x40] sm:$0xff] %vm437_vm0, %v3160_v58 }
 0x52f   : > { %v7372_v46 = vld [vmem:[#allocation3 + $0x40] sm:$0xff] }
 0x530   : > { %3335 = vrot.lane.b32.xlu1 %v7372_v46, %s5886_s20 }
 0x533   : > { %v3162_v16 = vpop.permute.xlu1 %3161 }
 0x534   : > { %3202 = vst.msk [vmem:[#allocation3 + $0x48] sm:$0xff] %vm437_vm0, %v3162_v16 }
 0x53b   : > { %v7377_v40 = vld [vmem:[#allocation3 + $0x48] sm:$0xff] }
 0x53c   : > { %3291 = vrot.lane.b32.xlu1 %v7377_v40, %s5884_s23 }
 0x543   : > { %v3164_v26 = vpop.permute.xlu0 %3163 }
 0x544   : > { %3203 = vst.msk [vmem:[#allocation3 + $0x50] sm:$0xff] %vm437_vm0, %v3164_v26 }
 0x547   : > { %v3166_v29 = vpop.permute.xlu1 %3165 }
 0x548   : > { %3204 = vst.msk [vmem:[#allocation3 + $0x58] sm:$0xff] %vm437_vm0, %v3166_v29 }
 0x54b   : > { %v3170_v15 = vpop.permute.xlu1 %3169  ;;  %v7383_v32 = vld [vmem:[#allocation3 + $0x50] sm:$0xff] }
 0x54c   : > { %3206 = vst.msk [vmem:[#allocation3 + $0x68] sm:$0xff] %vm437_vm0, %v3170_v15  ;;  %3339 = vrot.lane.b32.xlu1 %v7383_v32, %s5886_s20 }
 0x54f   : > { %v7388_v59 = vld [vmem:[#allocation3 + $0x58] sm:$0xff] }
 0x550   : > { %3295 = vrot.lane.b32.xlu1 %v7388_v59, %s5884_s23 }
 0x553   : > { %v3172_v28 = vpop.permute.xlu0 %3171  ;;  %v7392_v30 = vld [vmem:[#allocation3 + $0x68] sm:$0xff] }
 0x554   : > { %3207 = vst.msk [vmem:[#allocation3 + $0x70] sm:$0xff] %vm437_vm0, %v3172_v28  ;;  %3345 = vrot.lane.b32.xlu0 %v7392_v30, %s5886_s20 }
 0x557   : > { %v3174_v51 = vpop.permute.xlu1 %3173 }
 0x558   : > { %3208 = vst.msk [vmem:[#allocation3 + $0x78] sm:$0xff] %vm437_vm0, %v3174_v51  ;;  %3289 = vrot.lane.b32.xlu0 %v7372_v46, %s5884_s23 }
 0x55b   : > { %v7425_v41 = vld [vmem:[#allocation3 + $0x70] sm:$0xff] }
 0x55c   : > { %3337 = vrot.lane.b32.xlu0 %v7377_v40, %s5886_s20 }
 0x55f   : > { %v3176_v8 = vpop.permute.xlu0 %3175  ;;  %v3276_v5 = vpop.permute.xlu1 %3275  ;;  %v7435_v47 = vld [vmem:[#allocation3 + $0x78] sm:$0xff] }
 0x560   : > { %3209 = vst.msk [vmem:[#allocation3 + $0x80] sm:$0xff] %vm437_vm0, %v3176_v8  ;;  %3293 = vrot.lane.b32.xlu0 %v7383_v32, %s5884_s23  ;;  %v3357_v36 = vsel %vm437_vm0, %v3210_v43, %v3276_v5 }
 0x563   : > { %v3168_v52 = vpop.permute.xlu0 %3167  ;;  %v3324_v37 = vpop.permute.xlu1 %3323 }
 0x564   : > { %3205 = vst.msk [vmem:[#allocation3 + $0x60] sm:$0xff] %vm437_vm0, %v3168_v52  ;;  %v3404_v4 = vsel %vm433_vm1, %v3357_v36, %v3324_v37  ;;  %3341 = vrot.lane.b32.xlu0 %v7388_v59, %s5886_s20 }
 0x565   : > { %5484 = vmatprep.mubr.msk.bf16.mxu1 %vm3483_vm12, %v3404_v4 }
 0x567   : > { %v3278_v2 = vpop.permute.xlu0 %3277  ;;  %v3280_v60 = vpop.permute.xlu1 %3279  ;;  %v3241_v56 = vld [vmem:[#allocation3 + $0x80] sm:$0xff] }
 0x568   : > { %v3360_v27 = vsel %vm437_vm0, %v7325_v39, %v3278_v2  ;;  %v3363_v25 = vsel %vm437_vm0, %v7331_v10, %v3280_v60 }
 0x56b   : > { %v3326_v61 = vpop.permute.xlu0 %3325  ;;  %v3328_v19 = vpop.permute.xlu1 %3327  ;;  %v7415_v12 = vld [vmem:[#allocation3 + $0x60] sm:$0xff] }
 0x56c   : > { %v3406_v54 = vsel %vm433_vm1, %v3360_v27, %v3326_v61  ;;  %v3408_v48 = vsel %vm433_vm1, %v3363_v25, %v3328_v19  ;;  %3343 = vrot.lane.b32.xlu1 %v7415_v12, %s5886_s20  ;;  %3297 = vrot.lane.b32.xlu0 %v7415_v12, %s5884_s23 }
 0x56d   : > { %5485 = vmatmul.mubr.msk.bf16.vlgmr.msra.gmra.mrb[48].mxu1 %vm3483_vm12, %v3406_v54 }
 0x56e   : > { %5488 = vmatprep.mubr.msk.bf16.mxu1 %vm3483_vm12, %v3408_v48 }
 0x56f   : > { %v3282_v9 = vpop.permute.xlu0 %3281  ;;  %v3284_v42 = vpop.permute.xlu1 %3283 }
 0x570   : > { %3301 = vrot.lane.b32.xlu0 %v7425_v41, %s5884_s23  ;;  %3299 = vrot.lane.b32.xlu1 %v7392_v30, %s5884_s23  ;;  %v3366_v38 = vsel %vm437_vm0, %v7336_v7, %v3282_v9  ;;  %v3369_v24 = vsel %vm437_vm0, %v7343_v17, %v3284_v42 }
 0x573   : > { %v3330_v62 = vpop.permute.xlu0 %3329  ;;  %v3332_v3 = vpop.permute.xlu1 %3331 }
 0x574   : > { %v3410_v6 = vsel %vm433_vm1, %v3366_v38, %v3330_v62  ;;  %v3412_v21 = vsel %vm433_vm1, %v3369_v24, %v3332_v3  ;;  %3347 = vrot.lane.b32.xlu1 %v7425_v41, %s5886_s20  ;;  %3349 = vrot.lane.b32.xlu0 %v7435_v47, %s5886_s20 }
 0x575   : > { %5489 = vmatmul.mubr.msk.bf16.gmra.mrb[52].mxu1 %vm3483_vm12, %v3410_v6  ;;  %v8572_v6 = vld [vmem:[#allocation21_spill] sm:$0xff] }
 0x576   : > { %5492 = vmatprep.mubr.msk.bf16.mxu1 %vm3483_vm12, %v3412_v21 }
 0x577   : > { %v3286_v13 = vpop.permute.xlu0 %3285 }
 0x578   : > { %3305 = vrot.lane.b32.xlu0 %v3241_v56, %s5884_s23  ;;  %3303 = vrot.lane.b32.xlu1 %v7435_v47, %s5884_s23  ;;  %v3372_v18 = vsel %vm437_vm0, %v7350_v45, %v3286_v13  ;;  %s5890_s23 = smov 124  }
 0x57c   : > { %3353 = vrot.lane.b32.xlu0 %v3258_v22, %s5886_s20  ;;  %3351 = vrot.lane.b32.xlu1 %v3241_v56, %s5886_s20  ;;  %s5179_s20 = sshll.u32 %s6137_s12, 8 }
 0x57d   : > { %s8208_s30 = scalar_lea.vmem [#allocation10], %s5179_s20 }
 0x57e   : > { %s5060_s13 = sshll.u32 %s8208_s30, 4  ;;  %s8343_s13 = int_to_ptr.vmem [resolvable:$true] %s5060_s13 }
 0x57f   : > { %s5803_s19 = scalar_lea.vmem %s8343_s13, 4096  ;;  %p5810_p1 = scmp.lt.s32.totalorder %s8343_s13, %s5808_s6 }
 0x580   : > { %4323 = vrot.lane.b32.xlu1 %v5333_v53, %s5889_s11  ;;  %p5804_p3 = scmp.ne.s32.totalorder %s8343_s13, %s5803_s19  ;;  %p5811_p5 = scmp.lt.s32.totalorder %s5809_s24, %s5803_s19 }
 0x582   : > { %p5805_p7 = pnand %p5804_p3, %p6045_p12  ;;  %p5812_p2 = por %p5811_p5, %p5810_p1 }
 0x584   : > { %p5806_p9 = pneg %p5805_p7 }
 0x586   : > { %p5813_p6 = pnand %p5812_p2, %p5806_p9 }
 0x596   : > { %v3334_v1 = vpop.permute.xlu0 %3333  ;;  %v3288_v0 = vpop.permute.xlu1 %3287 }
 0x597   : > { %v3414_v49 = vsel %vm433_vm1, %v3372_v18, %v3334_v1  ;;  %v3375_v50 = vsel %vm437_vm0, %v7356_v55, %v3288_v0 }
 0x598   : > { %5493 = vmatmul.mubr.msk.bf16.gmra.mrb[56].mxu1 %vm3483_vm12, %v3414_v49 }
 0x5a2   : > { %v3336_v39 = vpop.permute.xlu1 %3335 }
 0x5a3   : > { %v3416_v35 = vsel %vm433_vm1, %v3375_v50, %v3336_v39 }
 0x5a4   : > { %5496 = vmatprep.mubr.msk.bf16.mxu1 %vm3483_vm12, %v3416_v35 }
 0x5ae   : > { %v3292_v34 = vpop.permute.xlu1 %3291 }
 0x5af   : > { %v3381_v14 = vsel %vm437_vm0, %v7372_v46, %v3292_v34 }
 0x5be   : > { %v3340_v57 = vpop.permute.xlu1 %3339 }
 0x5bf   : > { %v3420_v55 = vsel %vm433_vm1, %v3381_v14, %v3340_v57  ;;  %v8573_v57 = vld [vmem:[#allocation22_spill] sm:$0xff] }
 0x5c6   : > { %v3346_v10 = vpop.permute.xlu0 %3345 }
 0x5ca   : > { %v3290_v7 = vpop.permute.xlu0 %3289 }
 0x5cb   : > { %v3378_v17 = vsel %vm437_vm0, %v7365_v11, %v3290_v7  ;;  %v3296_v11 = vpop.permute.xlu1 %3295 }
 0x5cc   : > { %v3387_v46 = vsel %vm437_vm0, %v7383_v32, %v3296_v11 }
 0x5ce   : > { %v3338_v45 = vpop.permute.xlu0 %3337 }
 0x5cf   : > { %v3418_v58 = vsel %vm433_vm1, %v3378_v17, %v3338_v45  ;;  %v8574_v45 = vld [vmem:[#allocation23_spill] sm:$0xff] }
 0x5d0   : > { %5497 = vmatmul.mubr.msk.bf16.gmra.mrb[60].mxu1 %vm3483_vm12, %v3418_v58 }
 0x5d1   : > { %5500 = vmatprep.mubr.msk.bf16.mxu1 %vm3483_vm12, %v3420_v55 }
 0x5d2   : > { %v3294_v16 = vpop.permute.xlu0 %3293 }
 0x5d3   : > { %v3384_v26 = vsel %vm437_vm0, %v7377_v40, %v3294_v16 }
 0x5d6   : > { %v3342_v29 = vpop.permute.xlu0 %3341 }
 0x5d7   : > { %v3422_v15 = vsel %vm433_vm1, %v3384_v26, %v3342_v29 }
 0x5d8   : > { %5501 = vmatmul.mubr.msk.bf16.gmra.mrb[64].mxu1 %vm3483_vm12, %v3422_v15 }
 0x5de   : > { %v3298_v28 = vpop.permute.xlu0 %3297  ;;  %v3344_v51 = vpop.permute.xlu1 %3343 }
 0x5df   : > { %v3390_v8 = vsel %vm437_vm0, %v7388_v59, %v3298_v28  ;;  %v3424_v5 = vsel %vm433_vm1, %v3387_v46, %v3344_v51 }
 0x5e0   : > { %5504 = vmatprep.mubr.msk.bf16.mxu1 %vm3483_vm12, %v3424_v5  ;;  %v3426_v40 = vsel %vm433_vm1, %v3390_v8, %v3346_v10 }
 0x5e1   : > { %5505 = vmatmul.mubr.msk.bf16.gmra.mrb[68].mxu1 %vm3483_vm12, %v3426_v40  ;;  %v8575_v40 = vld [vmem:[#allocation24_spill] sm:$0xff] }
 0x5e2   : > { %v3302_v43 = vpop.permute.xlu0 %3301  ;;  %v3300_v36 = vpop.permute.xlu1 %3299 }
 0x5e3   : > { %v3396_v52 = vsel %vm437_vm0, %v7392_v30, %v3302_v43  ;;  %v3393_v32 = vsel %vm437_vm0, %v7415_v12, %v3300_v36  ;;  %v8576_v36 = vld [vmem:[#allocation25_spill] sm:$0xff] }
 0x5e6   : > { %v3350_v37 = vpop.permute.xlu0 %3349  ;;  %v3348_v4 = vpop.permute.xlu1 %3347 }
 0x5e7   : > { %v3430_v59 = vsel %vm433_vm1, %v3396_v52, %v3350_v37  ;;  %v3428_v2 = vsel %vm433_vm1, %v3393_v32, %v3348_v4 }
 0x5e8   : > { %5508 = vmatprep.mubr.msk.bf16.mxu1 %vm3483_vm12, %v3428_v2 }
 0x5e9   : > { %5509 = vmatmul.mubr.msk.bf16.gmra.mrb[72].mxu1 %vm3483_vm12, %v3430_v59 }
 0x5ea   : > { %v3306_v60 = vpop.permute.xlu0 %3305  ;;  %v3304_v27 = vpop.permute.xlu1 %3303 }
 0x5eb   : > { %v3402_v25 = vsel %vm437_vm0, %v7435_v47, %v3306_v60  ;;  %v3399_v30 = vsel %vm437_vm0, %v7425_v41, %v3304_v27 }
 0x5ee   : > { %v3354_v61 = vpop.permute.xlu0 %3353  ;;  %v3352_v19 = vpop.permute.xlu1 %3351 }
 0x5ef   : > { %v3434_v12 = vsel %vm433_vm1, %v3402_v25, %v3354_v61  ;;  %v3432_v54 = vsel %vm433_vm1, %v3399_v30, %v3352_v19 }
 0x5f0   : > { %5512 = vmatprep.mubr.msk.bf16.mxu1 %vm3483_vm12, %v3432_v54  ;;  %v8577_v54 = vld [vmem:[#allocation32_spill] sm:$0xff] }
 0x5f1   : > { %5513 = vmatmul.mubr.msk.bf16.gmra.mrb[76].mxu1 %vm3483_vm12, %v3434_v12 }
 0x640   : > { %v7498_v48 = vpop.f32.mrb[48].mxu1 }
 0x641   : > { %3809 = vrot.lane.b32.xlu1 %v7498_v48, %s5890_s23  ;;  %v7502_v9 = vpop.f32.mrb[49].mxu1  ;;  %v3679_v41 = vrot.slane %v7498_v48, 7 }
 0x642   : > { %v7504_v42 = vpop.f32.mrb[50].mxu1  ;;  %v8462_v0 = vrot.slane %v7502_v9, 7 }
 0x643   : > { %v3680_v38 = vrot.slane %v7504_v42, 7  ;;  %3811 = vrot.lane.b32.xlu0 %v7504_v42, %s5890_s23  ;;  %v7510_v24 = vpop.f32.mrb[51].mxu1 }
 0x644   : > { %v3678_v62 = vrot.slane %v7510_v24, 7 }
 0x645   : > { %3805 = vrot.lane.b32.xlu1 %v7502_v9, %s5890_s23  ;;  %v3737_v3 = vsel %vm2430_vm3, %v3679_v41, %v3680_v38 }
 0x646   : > { %v3738_v47 = vsel %vm2430_vm3, %v3678_v62, %v3679_v41  ;;  %v3739_v34 = vsel %vm2430_vm3, %v8462_v0, %v3678_v62 }
 0x647   : > { %3807 = vrot.lane.b32.xlu0 %v7510_v24, %s5890_s23  ;;  %v3743_v21 = vmul.f32 %v8572_v6, %v3738_v47 }
 0x648   : > { %v7522_v56 = vpop.f32.mrb[52].mxu1 }
 0x649   : > { %4033 = vrot.lane.b32.xlu1 %v3743_v21, %s5889_s11  ;;  %v7525_v22 = vpop.f32.mrb[53].mxu1  ;;  %v3683_v18 = vrot.slane %v7522_v56, 7 }
 0x64a   : > { %v3681_v53 = vrot.slane %v7525_v22, 7  ;;  %v7528_v13 = vpop.f32.mrb[54].mxu1 }
 0x64b   : > { %v3684_v1 = vrot.slane %v7528_v13, 7  ;;  %4035 = vrot.lane.b32.xlu0 %v3737_v3, %s5889_s11  ;;  %v7533_v49 = vpop.f32.mrb[55].mxu1 }
 0x64c   : > { %v3736_v50 = vsel %vm2430_vm3, %v3680_v38, %v3681_v53  ;;  %v3682_v39 = vrot.slane %v7533_v49, 7 }
 0x64d   : > { %3817 = vrot.lane.b32.xlu1 %v7522_v56, %s5890_s23  ;;  %v3733_v35 = vsel %vm2430_vm3, %v3683_v18, %v3684_v1  ;;  %v3745_v17 = vmul.f32 %v8573_v57, %v3736_v50 }
 0x64e   : > { %v3734_v10 = vsel %vm2430_vm3, %v3682_v39, %v3683_v18  ;;  %v3735_v7 = vsel %vm2430_vm3, %v3681_v53, %v3682_v39  ;;  %v8578_v18 = vld [vmem:[#allocation37_spill] sm:$0xff] }
 0x64f   : > { %4031 = vrot.lane.b32.xlu0 %v3739_v34, %s5889_s11  ;;  %v3747_v14 = vmul.f32 %v8574_v45, %v3734_v10 }
 0x651   : > { %3813 = vrot.lane.b32.xlu1 %v7525_v22, %s5890_s23 }
 0x653   : > { %3819 = vrot.lane.b32.xlu0 %v7528_v13, %s5890_s23 }
 0x655   : > { %4037 = vrot.lane.b32.xlu1 %v3745_v17, %s5889_s11 }
 0x657   : > { %3815 = vrot.lane.b32.xlu0 %v7533_v49, %s5890_s23 }
 0x659   : > { %4041 = vrot.lane.b32.xlu1 %v3747_v14, %s5889_s11 }
 0x65b   : > { %4043 = vrot.lane.b32.xlu0 %v3733_v35, %s5889_s11 }
 0x65f   : > { %4039 = vrot.lane.b32.xlu0 %v3735_v7, %s5889_s11 }
 0x66b   : > { %v7564_v58 = vpop.f32.mrb[56].mxu1 }
 0x66c   : > { %3825 = vrot.lane.b32.xlu1 %v7564_v58, %s5890_s23  ;;  %v7568_v55 = vpop.f32.mrb[57].mxu1  ;;  %v3687_v29 = vrot.slane %v7564_v58, 7 }
 0x66d   : > { %v3685_v16 = vrot.slane %v7568_v55, 7  ;;  %v7571_v26 = vpop.f32.mrb[58].mxu1 }
 0x66e   : > { %v3688_v15 = vrot.slane %v7571_v26, 7  ;;  %3827 = vrot.lane.b32.xlu0 %v7571_v26, %s5890_s23  ;;  %v7577_v11 = vpop.f32.mrb[59].mxu1 }
 0x66f   : > { %v3732_v46 = vsel %vm2430_vm3, %v3684_v1, %v3685_v16  ;;  %v3686_v28 = vrot.slane %v7577_v11, 7 }
 0x670   : > { %3821 = vrot.lane.b32.xlu1 %v7568_v55, %s5890_s23  ;;  %v3729_v51 = vsel %vm2430_vm3, %v3687_v29, %v3688_v15  ;;  %v3749_v43 = vmul.f32 %v8575_v40, %v3732_v46 }
 0x671   : > { %v3730_v8 = vsel %vm2430_vm3, %v3686_v28, %v3687_v29  ;;  %v3731_v5 = vsel %vm2430_vm3, %v3685_v16, %v3686_v28 }
 0x672   : > { %3823 = vrot.lane.b32.xlu0 %v7577_v11, %s5890_s23  ;;  %v3751_v52 = vmul.f32 %v8576_v36, %v3730_v8  ;;  %v8581_v8 = vld [vmem:[#allocation42_spill] sm:$0xff] }
 0x674   : > { %4045 = vrot.lane.b32.xlu1 %v3749_v43, %s5889_s11 }
 0x676   : > { %4051 = vrot.lane.b32.xlu0 %v3729_v51, %s5889_s11 }
 0x678   : > { %4049 = vrot.lane.b32.xlu1 %v3751_v52, %s5889_s11 }
 0x67a   : > { %4047 = vrot.lane.b32.xlu0 %v3731_v5, %s5889_s11 }
 0x6a3   : > { %v7598_v32 = vpop.f32.mrb[60].mxu1 }
 0x6a4   : > { %3833 = vrot.lane.b32.xlu1 %v7598_v32, %s5890_s23  ;;  %v7602_v37 = vpop.f32.mrb[61].mxu1  ;;  %v3691_v2 = vrot.slane %v7598_v32, 7 }
 0x6a5   : > { %v3689_v4 = vrot.slane %v7602_v37, 7  ;;  %v7605_v59 = vpop.f32.mrb[62].mxu1 }
 0x6a6   : > { %v3692_v60 = vrot.slane %v7605_v59, 7  ;;  %3835 = vrot.lane.b32.xlu0 %v7605_v59, %s5890_s23  ;;  %v7611_v27 = vpop.f32.mrb[63].mxu1 }
 0x6a7   : > { %v3728_v25 = vsel %vm2430_vm3, %v3688_v15, %v3689_v4  ;;  %v3690_v30 = vrot.slane %v7611_v27, 7 }
 0x6a8   : > { %3829 = vrot.lane.b32.xlu1 %v7602_v37, %s5890_s23  ;;  %v3725_v61 = vsel %vm2430_vm3, %v3691_v2, %v3692_v60  ;;  %v3753_v41 = vmul.f32 %v8577_v54, %v3728_v25 }
 0x6a9   : > { %v3726_v19 = vsel %vm2430_vm3, %v3690_v30, %v3691_v2  ;;  %v3727_v12 = vsel %vm2430_vm3, %v3689_v4, %v3690_v30 }
 0x6aa   : > { %3831 = vrot.lane.b32.xlu0 %v7611_v27, %s5890_s23  ;;  %v3755_v1 = vmul.f32 %v8578_v18, %v3726_v19 }
 0x6ab   : > { %v7627_v38 = vpop.f32.mrb[64].mxu1 }
 0x6ac   : > { %4053 = vrot.lane.b32.xlu1 %v3753_v41, %s5889_s11  ;;  %v7630_v62 = vpop.f32.mrb[65].mxu1  ;;  %v3695_v6 = vrot.slane %v7627_v38, 7  ;;  %v8586_v41 = vld [vmem:[#allocation43_spill] sm:$0xff] }
 0x6ad   : > { %v3693_v3 = vrot.slane %v7630_v62, 7  ;;  %v7633_v47 = vpop.f32.mrb[66].mxu1 }
 0x6ae   : > { %v3696_v21 = vrot.slane %v7633_v47, 7  ;;  %4059 = vrot.lane.b32.xlu0 %v3725_v61, %s5889_s11  ;;  %v7638_v53 = vpop.f32.mrb[67].mxu1 }
 0x6af   : > { %v3724_v50 = vsel %vm2430_vm3, %v3692_v60, %v3693_v3  ;;  %v3694_v39 = vrot.slane %v7638_v53, 7 }
 0x6b0   : > { %4057 = vrot.lane.b32.xlu1 %v3755_v1, %s5889_s11  ;;  %v3721_v35 = vsel %vm2430_vm3, %v3695_v6, %v3696_v21  ;;  %v3757_v5 = vmul.f32 %v8581_v8, %v3724_v50 }
 0x6b1   : > { %v3722_v10 = vsel %vm2430_vm3, %v3694_v39, %v3695_v6  ;;  %v3723_v34 = vsel %vm2430_vm3, %v3693_v3, %v3694_v39 }
 0x6b2   : > { %4055 = vrot.lane.b32.xlu0 %v3727_v12, %s5889_s11  ;;  %v7701_v12 = vpop.permute.xlu1 %4323  ;;  %v3759_v3 = vmul.f32 %v8586_v41, %v3722_v10 }
 0x6b4   : > { %3841 = vrot.lane.b32.xlu1 %v7627_v38, %s5890_s23  ;;  %v7654_v7 = vpop.f32.mrb[68].mxu1 }
 0x6b5   : > { %v7656_v57 = vpop.f32.mrb[69].mxu1  ;;  %v3699_v14 = vrot.slane %v7654_v7, 7  ;;  %v7714_v1 = vpop.permute.xlu0 %3811 }
 0x6b6   : > { %v3697_v17 = vrot.slane %v7656_v57, 7  ;;  %3843 = vrot.lane.b32.xlu0 %v7633_v47, %s5890_s23  ;;  %v7661_v45 = vpop.f32.mrb[70].mxu1 }
 0x6b7   : > { %8579 = vst [vmem:[#allocation57_spill] sm:$0xff] %v7661_v45  ;;  %v3700_v16 = vrot.slane %v7661_v45, 7  ;;  %v7665_v29 = vpop.f32.mrb[71].mxu1 }
 0x6b8   : > { %8580 = vst [vmem:[#allocation26_spill] sm:$0xff] %v7665_v29  ;;  %v3720_v15 = vsel %vm2430_vm3, %v3696_v21, %v3697_v17  ;;  %v3698_v46 = vrot.slane %v7665_v29, 7  ;;  %3837 = vrot.lane.b32.xlu1 %v7630_v62, %s5890_s23 }
 0x6b9   : > { %v3717_v28 = vsel %vm2430_vm3, %v3699_v14, %v3700_v16 }
 0x6ba   : > { %v3718_v51 = vsel %vm2430_vm3, %v3698_v46, %v3699_v14  ;;  %3839 = vrot.lane.b32.xlu0 %v7638_v53, %s5890_s23  ;;  %v3719_v40 = vsel %vm2430_vm3, %v3697_v17, %v3698_v46  ;;  %v7725_v17 = vpop.permute.xlu1 %3809 }
 0x6bc   : > { %4061 = vrot.lane.b32.xlu1 %v3757_v5, %s5889_s11  ;;  %v7682_v43 = vpop.f32.mrb[72].mxu1  ;;  %v8591_v5 = vld [vmem:[#allocation45_spill] sm:$0xff] }
 0x6bd   : > { %8582 = vst [vmem:[#allocation60_spill] sm:$0xff] %v7682_v43  ;;  %v7684_v36 = vpop.f32.mrb[73].mxu1  ;;  %v3703_v2 = vrot.slane %v7682_v43, 7 }
 0x6be   : > { %8583 = vst [vmem:[#allocation27_spill] sm:$0xff] %v7684_v36  ;;  %v3701_v52 = vrot.slane %v7684_v36, 7  ;;  %4067 = vrot.lane.b32.xlu0 %v3721_v35, %s5889_s11  ;;  %v7688_v4 = vpop.f32.mrb[74].mxu1 }
 0x6bf   : > { %8584 = vst [vmem:[#allocation59_spill] sm:$0xff] %v7688_v4  ;;  %v3704_v60 = vrot.slane %v7688_v4, 7  ;;  %v7692_v25 = vpop.f32.mrb[75].mxu1 }
 0x6c0   : > { %8585 = vst [vmem:[#allocation28_spill] sm:$0xff] %v7692_v25  ;;  %v3716_v30 = vsel %vm2430_vm3, %v3700_v16, %v3701_v52  ;;  %v3702_v61 = vrot.slane %v7692_v25, 7  ;;  %3849 = vrot.lane.b32.xlu1 %v7654_v7, %s5890_s23 }
 0x6c1   : > { %v3713_v19 = vsel %vm2430_vm3, %v3703_v2, %v3704_v60 }
 0x6c2   : > { %v3714_v54 = vsel %vm2430_vm3, %v3702_v61, %v3703_v2  ;;  %4063 = vrot.lane.b32.xlu0 %v3723_v34, %s5889_s11  ;;  %v3715_v6 = vsel %vm2430_vm3, %v3701_v52, %v3702_v61  ;;  %v3761_v52 = vmul.f32 %v8591_v5, %v3720_v15  ;;  %v7744_v61 = vpop.permute.xlu1 %3805 }
 0x6c4   : > { %4065 = vrot.lane.b32.xlu1 %v3759_v3, %s5889_s11  ;;  %v7710_v21 = vpop.f32.mrb[76].mxu1  ;;  %v8592_v3 = vld [vmem:[#allocation47_spill] sm:$0xff] }
 0x6c5   : > { %8587 = vst [vmem:[#allocation63_spill] sm:$0xff] %v7710_v21  ;;  %v7712_v18 = vpop.f32.mrb[77].mxu1  ;;  %v3707_v35 = vrot.slane %v7710_v21, 7  ;;  %v3763_v15 = vmul.f32 %v8592_v3, %v3718_v51 }
 0x6c6   : > { %8588 = vst [vmem:[#allocation29_spill] sm:$0xff] %v7712_v18  ;;  %v3705_v50 = vrot.slane %v7712_v18, 7  ;;  %3851 = vrot.lane.b32.xlu0 %v7661_v45, %s5890_s23  ;;  %v7719_v39 = vpop.f32.mrb[78].mxu1 }
 0x6c7   : > { %8589 = vst [vmem:[#allocation62_spill] sm:$0xff] %v7719_v39  ;;  %v3708_v10 = vrot.slane %v7719_v39, 7  ;;  %v7723_v34 = vpop.f32.mrb[79].mxu1 }
 0x6c8   : > { %8590 = vst [vmem:[#allocation30_spill] sm:$0xff] %v7723_v34  ;;  %v3712_v14 = vsel %vm2430_vm3, %v3704_v60, %v3705_v50  ;;  %v3706_v16 = vrot.slane %v7723_v34, 7  ;;  %3845 = vrot.lane.b32.xlu1 %v7656_v57, %s5890_s23  ;;  %v7741_v60 = vpop.permute.xlu0 %3807 }
 0x6c9   : > { %v3709_v46 = vsel %vm2430_vm3, %v3707_v35, %v3708_v10 }
 0x6ca   : > { %v3710_v8 = vsel %vm2430_vm3, %v3706_v16, %v3707_v35  ;;  %3847 = vrot.lane.b32.xlu0 %v7665_v29, %s5890_s23  ;;  %v3711_v2 = vsel %vm2430_vm3, %v3705_v50, %v3706_v16  ;;  %v7753_v35 = vpop.permute.xlu1 %4033  ;;  %v8593_v16 = vld [vmem:[#allocation48_spill] sm:$0xff] }
 0x6cc   : > { %4069 = vrot.lane.b32.xlu1 %v3761_v52, %s5889_s11  ;;  %v7749_v41 = vpop.permute.xlu0 %4035  ;;  %v8594_v52 = vld [vmem:[#allocation46_spill] sm:$0xff] }
 0x6cd   : > { %v3767_v3 = vmul.f32 %v8594_v52, %v3714_v54  ;;  %v8595_v54 = vrot.slane %v7502_v9, 7  ;;  %v8596_v52 = vld [vmem:[#allocation44_spill] sm:$0xff] }
 0x6ce   : > { %4075 = vrot.lane.b32.xlu0 %v3717_v28, %s5889_s11  ;;  %v3818_v28 = vpop.permute.xlu1 %3817 }
 0x6d0   : > { %3857 = vrot.lane.b32.xlu1 %v7682_v43, %s5890_s23  ;;  %v7758_v50 = vpop.permute.xlu0 %4031 }
 0x6d2   : > { %4071 = vrot.lane.b32.xlu0 %v3719_v40, %s5889_s11  ;;  %v3765_v40 = vmul.f32 %v8593_v16, %v3716_v30  ;;  %v3814_v5 = vpop.permute.xlu1 %3813 }
 0x6d4   : > { %4073 = vrot.lane.b32.xlu1 %v3763_v15, %s5889_s11  ;;  %v3820_v51 = vpop.permute.xlu0 %3819 }
 0x6d6   : > { %3859 = vrot.lane.b32.xlu0 %v7688_v4, %s5890_s23  ;;  %v7772_v0 = vpop.permute.xlu1 %4037  ;;  %v3907_v4 = vrot.slane %v3818_v28, 1 }
 0x6d8   : > { %3853 = vrot.lane.b32.xlu1 %v7684_v36, %s5890_s23  ;;  %v3816_v15 = vpop.permute.xlu0 %3815 }
 0x6da   : > { %3855 = vrot.lane.b32.xlu0 %v7692_v25, %s5890_s23  ;;  %v7787_v16 = vpop.permute.xlu1 %4041 }
 0x6dc   : > { %4077 = vrot.lane.b32.xlu1 %v3765_v40, %s5889_s11  ;;  %v7778_v30 = vpop.permute.xlu0 %4043  ;;  %v3902_v40 = vrot.slane %v7741_v60, 1  ;;  %v8597_v60 = vld [vmem:[#allocation49_spill] sm:$0xff] }
 0x6de   : > { %4083 = vrot.lane.b32.xlu0 %v3713_v19, %s5889_s11  ;;  %v3769_v19 = vmul.f32 %v7101_v63, %v3712_v14  ;;  %v3826_v63 = vpop.permute.xlu1 %3825  ;;  %v3905_v14 = vrot.slane %v3814_v5, 1  ;;  %v3906_v5 = vrot.slane %v3816_v15, 1  ;;  %v3908_v15 = vrot.slane %v3820_v51, 1  ;;  %v8600_v51 = vld [vmem:[#allocation52_spill] sm:$0xff] }
 0x6e0   : > { %3865 = vrot.lane.b32.xlu1 %v7710_v21, %s5890_s23 }
 0x6e2   : > { %4079 = vrot.lane.b32.xlu0 %v3715_v6, %s5889_s11  ;;  %v3740_v6 = vsel %vm2430_vm3, %v3708_v10, %v8595_v54  ;;  %v8466_v54 = vmov 2  }
 0x6e3   : > { %5615 = vset.pattern.permute.xlu1 %v8466_v54  ;;  %5617 = vset.pattern.permute.xlu0 %v8466_v54 }
 0x6e4   : > { %4081 = vrot.lane.b32.xlu1 %v3767_v3, %s5889_s11  ;;  %v3741_v3 = vmul.f32 %v8596_v52, %v3740_v6 }
 0x6e6   : > { %3867 = vrot.lane.b32.xlu0 %v7719_v39, %s5890_s23  ;;  %v3903_v39 = vrot.slane %v7725_v17, 1  ;;  %v3904_v17 = vrot.slane %v7714_v1, 1  ;;  %v8468_v1 = vrot.slane %v7744_v61, 1 }
 0x6e8   : > { %3861 = vrot.lane.b32.xlu1 %v7712_v18, %s5890_s23  ;;  %v3962_v10 = vsel %vm2655_vm6, %v3902_v40, %v3903_v39  ;;  %v3960_v52 = vsel %vm2655_vm6, %v3904_v17, %v3905_v14  ;;  %v3963_v28 = vsel %vm2655_vm6, %v8468_v1, %v3902_v40 }
 0x6ea   : > { %3863 = vrot.lane.b32.xlu0 %v7723_v34, %s5890_s23  ;;  %v7794_v34 = vpop.permute.xlu0 %4039 }
 0x6ec   : > { %4085 = vrot.lane.b32.xlu1 %v3769_v19, %s5889_s11  ;;  %v3966_v19 = vmul.f32 %v8597_v60, %v3962_v10  ;;  %v3958_v10 = vsel %vm2655_vm6, %v3906_v5, %v3907_v4 }
 0x6ee   : > { %4091 = vrot.lane.b32.xlu0 %v3709_v46, %s5889_s11  ;;  %v3771_v46 = vmul.f32 %v7166_v23, %v3710_v8  ;;  %v3828_v6 = vpop.permute.xlu0 %3827  ;;  %v3961_v23 = vsel %vm2655_vm6, %v3903_v39, %v3904_v17  ;;  %v8598_v8 = vld [vmem:[#allocation50_spill] sm:$0xff]  ;;  %v8599_v39 = vld [vmem:[#allocation51_spill] sm:$0xff] }
 0x6ef   : > { %v3970_v17 = vmul.f32 %v8599_v39, %v3958_v10  ;;  %v3959_v10 = vsel %vm2655_vm6, %v3905_v14, %v3906_v5 }
 0x6f0   : > { %4029 = vrot.lane.b32.xlu1 %v3741_v3, %s5889_s11  ;;  %v3822_v3 = vpop.permute.xlu1 %3821 }
 0x6f2   : > { %4087 = vrot.lane.b32.xlu0 %v3711_v2, %s5889_s11  ;;  %v3968_v2 = vmul.f32 %v8598_v8, %v3960_v52  ;;  %v3824_v60 = vpop.permute.xlu0 %3823 }
 0x6f3   : > { %v3910_v52 = vrot.slane %v3824_v60, 1  ;;  %v8601_v60 = vld [vmem:[#allocation53_spill] sm:$0xff] }
 0x6f4   : > { %4089 = vrot.lane.b32.xlu1 %v3771_v46, %s5889_s11  ;;  %v3909_v46 = vrot.slane %v3822_v3, 1  ;;  %v3911_v3 = vrot.slane %v3826_v63, 1 }
 0x6f6   : > { %4191 = vrot.lane.b32.xlu0 %v3966_v19, %s5889_s11  ;;  %v3956_v19 = vsel %vm2655_vm6, %v3908_v15, %v3909_v46  ;;  %v3954_v40 = vsel %vm2655_vm6, %v3910_v52, %v3911_v3  ;;  %v3955_v63 = vsel %vm2655_vm6, %v3909_v46, %v3910_v52 }
 0x6f7   : > { %v3972_v8 = vmul.f32 %v8600_v51, %v3956_v19 }
 0x6f8   : > { %4193 = vrot.lane.b32.xlu1 %v3961_v23, %s5889_s11  ;;  %v3957_v23 = vsel %vm2655_vm6, %v3907_v4, %v3908_v15  ;;  %v7843_v15 = vpop.permute.xlu1 %4045 }
 0x6fa   : > { %4195 = vrot.lane.b32.xlu0 %v3968_v2, %s5889_s11  ;;  %v3912_v2 = vrot.slane %v3828_v6, 1  ;;  %v7846_v6 = vpop.permute.xlu0 %4051 }
 0x6fc   : > { %4189 = vrot.lane.b32.xlu1 %v3963_v28, %s5889_s11  ;;  %v3974_v28 = vmul.f32 %v8601_v60, %v3954_v40  ;;  %v3953_v4 = vsel %vm2655_vm6, %v3911_v3, %v3912_v2  ;;  %v7848_v14 = vpop.permute.xlu1 %4049 }
 0x6fe   : > { %4199 = vrot.lane.b32.xlu0 %v3970_v17, %s5889_s11  ;;  %v7850_v5 = vpop.permute.xlu0 %4047 }
 0x700   : > { %4201 = vrot.lane.b32.xlu1 %v3957_v23, %s5889_s11 }
 0x702   : > { %4203 = vrot.lane.b32.xlu0 %v3972_v8, %s5889_s11 }
 0x704   : > { %4197 = vrot.lane.b32.xlu1 %v3959_v10, %s5889_s11  ;;  %v8602_v10 = vld [vmem:[#allocation54_spill] sm:$0xff] }
 0x706   : > { %4207 = vrot.lane.b32.xlu0 %v3974_v28, %s5889_s11 }
 0x708   : > { %4209 = vrot.lane.b32.xlu1 %v3953_v4, %s5889_s11 }
 0x70c   : > { %4205 = vrot.lane.b32.xlu1 %v3955_v63, %s5889_s11 }
 0x716   : > { %v3834_v39 = vpop.permute.xlu1 %3833 }
 0x717   : > { %v3915_v19 = vrot.slane %v3834_v39, 1 }
 0x718   : > { %v3836_v17 = vpop.permute.xlu0 %3835 }
 0x719   : > { %v3916_v23 = vrot.slane %v3836_v17, 1  ;;  %v8603_v17 = vld [vmem:[#allocation55_spill] sm:$0xff] }
 0x71a   : > { %v3830_v3 = vpop.permute.xlu1 %3829 }
 0x71b   : > { %v3913_v51 = vrot.slane %v3830_v3, 1  ;;  %v3949_v8 = vsel %vm2655_vm6, %v3915_v19, %v3916_v23 }
 0x71c   : > { %v3832_v46 = vpop.permute.xlu0 %3831  ;;  %4217 = vrot.lane.b32.xlu1 %v3949_v8, %s5889_s11 }
 0x71d   : > { %v3952_v52 = vsel %vm2655_vm6, %v3912_v2, %v3913_v51  ;;  %v3914_v40 = vrot.slane %v3832_v46, 1 }
 0x71e   : > { %v3976_v60 = vmul.f32 %v8602_v10, %v3952_v52  ;;  %v7858_v28 = vpop.permute.xlu1 %4053 }
 0x71f   : > { %v3950_v4 = vsel %vm2655_vm6, %v3914_v40, %v3915_v19  ;;  %v3951_v63 = vsel %vm2655_vm6, %v3913_v51, %v3914_v40 }
 0x720   : > { %v7864_v39 = vpop.permute.xlu0 %4059  ;;  %4211 = vrot.lane.b32.xlu0 %v3976_v60, %s5889_s11  ;;  %4213 = vrot.lane.b32.xlu1 %v3951_v63, %s5889_s11  ;;  %v3978_v3 = vmul.f32 %v8603_v17, %v3950_v4  ;;  %v8604_v17 = vld [vmem:[#allocation58_spill] sm:$0xff] }
 0x722   : > { %v7869_v2 = vpop.permute.xlu1 %4057 }
 0x724   : > { %v7871_v8 = vpop.permute.xlu0 %4055  ;;  %4215 = vrot.lane.b32.xlu0 %v3978_v3, %s5889_s11 }
 0x726   : > { %v3842_v46 = vpop.permute.xlu1 %3841 }
 0x727   : > { %v3919_v19 = vrot.slane %v3842_v46, 1 }
 0x728   : > { %v3844_v52 = vpop.permute.xlu0 %3843 }
 0x729   : > { %v3920_v10 = vrot.slane %v3844_v52, 1  ;;  %v8605_v52 = vld [vmem:[#allocation61_spill] sm:$0xff] }
 0x72a   : > { %v3838_v54 = vpop.permute.xlu1 %3837 }
 0x72b   : > { %v3917_v51 = vrot.slane %v3838_v54, 1  ;;  %v3945_v40 = vsel %vm2655_vm6, %v3919_v19, %v3920_v10 }
 0x72c   : > { %v3840_v60 = vpop.permute.xlu0 %3839  ;;  %4225 = vrot.lane.b32.xlu1 %v3945_v40, %s5889_s11 }
 0x72d   : > { %v3948_v4 = vsel %vm2655_vm6, %v3916_v23, %v3917_v51  ;;  %v3918_v63 = vrot.slane %v3840_v60, 1 }
 0x72e   : > { %v3980_v1 = vmul.f32 %v8604_v17, %v3948_v4  ;;  %v7880_v18 = vpop.permute.xlu1 %4061 }
 0x72f   : > { %v3946_v3 = vsel %vm2655_vm6, %v3918_v63, %v3919_v19  ;;  %v3947_v54 = vsel %vm2655_vm6, %v3917_v51, %v3918_v63 }
 0x730   : > { %v7886_v46 = vpop.permute.xlu0 %4067  ;;  %4219 = vrot.lane.b32.xlu0 %v3980_v1, %s5889_s11  ;;  %4221 = vrot.lane.b32.xlu1 %v3947_v54, %s5889_s11  ;;  %v3982_v40 = vmul.f32 %v8605_v52, %v3946_v3  ;;  %v8606_v52 = vld [vmem:[#allocation64_spill] sm:$0xff] }
 0x732   : > { %v3850_v23 = vpop.permute.xlu1 %3849 }
 0x733   : > { %v3923_v19 = vrot.slane %v3850_v23, 1 }
 0x734   : > { %v7891_v60 = vpop.permute.xlu0 %4063  ;;  %4223 = vrot.lane.b32.xlu0 %v3982_v40, %s5889_s11 }
 0x736   : > { %v7894_v4 = vpop.permute.xlu1 %4065 }
 0x738   : > { %v3852_v17 = vpop.permute.xlu0 %3851 }
 0x739   : > { %v3924_v21 = vrot.slane %v3852_v17, 1 }
 0x73a   : > { %v3846_v25 = vpop.permute.xlu1 %3845 }
 0x73b   : > { %v3921_v51 = vrot.slane %v3846_v25, 1  ;;  %v3941_v63 = vsel %vm2655_vm6, %v3923_v19, %v3924_v21 }
 0x73c   : > { %v3848_v1 = vpop.permute.xlu0 %3847  ;;  %4233 = vrot.lane.b32.xlu1 %v3941_v63, %s5889_s11  ;;  %v8608_v63 = vld [vmem:[#allocation66_spill] sm:$0xff] }
 0x73d   : > { %v3944_v3 = vsel %vm2655_vm6, %v3920_v10, %v3921_v51  ;;  %v3922_v54 = vrot.slane %v3848_v1, 1 }
 0x73e   : > { %v3984_v45 = vmul.f32 %v8606_v52, %v3944_v3  ;;  %v7902_v40 = vpop.permute.xlu1 %4069 }
 0x73f   : > { %v3942_v23 = vsel %vm2655_vm6, %v3922_v54, %v3923_v19  ;;  %v3943_v25 = vsel %vm2655_vm6, %v3921_v51, %v3922_v54 }
 0x740   : > { %v7908_v17 = vpop.permute.xlu0 %4075  ;;  %4227 = vrot.lane.b32.xlu0 %v3984_v45, %s5889_s11  ;;  %4229 = vrot.lane.b32.xlu1 %v3943_v25, %s5889_s11  ;;  %v3986_v36 = vmul.f32 %v8608_v63, %v3942_v23 }
 0x741   : > { %8607 = vst [vmem:[#allocation65_spill] sm:$0xff] %v7908_v17 }
 0x742   : > { %v3858_v10 = vpop.permute.xlu1 %3857 }
 0x743   : > { %v3927_v19 = vrot.slane %v3858_v10, 1 }
 0x744   : > { %v7913_v1 = vpop.permute.xlu0 %4071  ;;  %4231 = vrot.lane.b32.xlu0 %v3986_v36, %s5889_s11 }
 0x745   : > { %8609 = vst [vmem:[#allocation31_spill] sm:$0xff] %v7913_v1 }
 0x746   : > { %v7916_v3 = vpop.permute.xlu1 %4073 }
 0x748   : > { %v3860_v52 = vpop.permute.xlu0 %3859 }
 0x749   : > { %v3928_v43 = vrot.slane %v3860_v52, 1 }
 0x74a   : > { %v3854_v29 = vpop.permute.xlu1 %3853 }
 0x74b   : > { %v3925_v51 = vrot.slane %v3854_v29, 1  ;;  %v3937_v54 = vsel %vm2655_vm6, %v3927_v19, %v3928_v43 }
 0x74c   : > { %v3856_v45 = vpop.permute.xlu0 %3855  ;;  %4241 = vrot.lane.b32.xlu1 %v3937_v54, %s5889_s11  ;;  %v8612_v54 = vld [vmem:[#allocation56_spill] sm:$0xff] }
 0x74d   : > { %v3940_v23 = vsel %vm2655_vm6, %v3924_v21, %v3925_v51  ;;  %v3926_v25 = vrot.slane %v3856_v45, 1 }
 0x74e   : > { %v3988_v63 = vmul.f32 %v7124_v20, %v3940_v23  ;;  %v7924_v36 = vpop.permute.xlu1 %4077 }
 0x74f   : > { %8610 = vst [vmem:[#allocation33_spill] sm:$0xff] %v7924_v36  ;;  %v3938_v10 = vsel %vm2655_vm6, %v3926_v25, %v3927_v19  ;;  %v3939_v29 = vsel %vm2655_vm6, %v3925_v51, %v3926_v25 }
 0x750   : > { %v7930_v52 = vpop.permute.xlu0 %4083  ;;  %4235 = vrot.lane.b32.xlu0 %v3988_v63, %s5889_s11  ;;  %4237 = vrot.lane.b32.xlu1 %v3939_v29, %s5889_s11  ;;  %v3990_v17 = vmul.f32 %v8612_v54, %v3938_v10  ;;  %v8614_v54 = vld [vmem:[#allocation67_spill] sm:$0xff] }
 0x751   : > { %8611 = vst [vmem:[#allocation35_spill] sm:$0xff] %v7930_v52 }
 0x752   : > { %v3866_v21 = vpop.permute.xlu1 %3865 }
 0x753   : > { %v3931_v19 = vrot.slane %v3866_v21, 1 }
 0x754   : > { %v7935_v45 = vpop.permute.xlu0 %4079  ;;  %4239 = vrot.lane.b32.xlu0 %v3990_v17, %s5889_s11 }
 0x755   : > { %8613 = vst [vmem:[#allocation34_spill] sm:$0xff] %v7935_v45  ;;  %v8615_v45 = vrot.slane %v7744_v61, 1 }
 0x756   : > { %v7938_v20 = vpop.permute.xlu1 %4081 }
 0x758   : > { %v3868_v23 = vpop.permute.xlu0 %3867 }
 0x759   : > { %v3932_v36 = vrot.slane %v3868_v23, 1 }
 0x75a   : > { %v3862_v1 = vpop.permute.xlu1 %3861 }
 0x75b   : > { %v3929_v51 = vrot.slane %v3862_v1, 1  ;;  %v3933_v25 = vsel %vm2655_vm6, %v3931_v19, %v3932_v36  ;;  %v3964_v21 = vsel %vm2655_vm6, %v3932_v36, %v8615_v45 }
 0x75c   : > { %v3864_v63 = vpop.permute.xlu0 %3863  ;;  %4249 = vrot.lane.b32.xlu1 %v3933_v25, %s5889_s11 }
 0x75d   : > { %v3936_v10 = vsel %vm2655_vm6, %v3928_v43, %v3929_v51  ;;  %v3930_v29 = vrot.slane %v3864_v63, 1  ;;  %v3996_v43 = vmul.f32 %v7194_v44, %v3964_v21 }
 0x75e   : > { %v3992_v52 = vmul.f32 %v8614_v54, %v3936_v10  ;;  %v7946_v17 = vpop.permute.xlu1 %4085 }
 0x75f   : > { %v3935_v1 = vsel %vm2655_vm6, %v3929_v51, %v3930_v29  ;;  %v3934_v63 = vsel %vm2655_vm6, %v3930_v29, %v3931_v19  ;;  %v4126_v19 = vadd.f32 %v7758_v50, %v7510_v24  ;;  %v4128_v50 = vadd.f32 %v7504_v42, %v7749_v41 }
 0x760   : > { %4243 = vrot.lane.b32.xlu0 %v3992_v52, %s5889_s11  ;;  %4245 = vrot.lane.b32.xlu1 %v3935_v1, %s5889_s11  ;;  %v7956_v23 = vpop.permute.xlu0 %4091  ;;  %v3994_v61 = vmul.f32 %v7169_v33, %v3934_v63  ;;  %v4127_v52 = vadd.f32 %v7498_v48, %v7753_v35  ;;  %v4131_v48 = vadd.f32 %v7522_v56, %v7787_v16 }
 0x761   : > { %v4129_v16 = vadd.f32 %v7772_v0, %v7525_v22  ;;  %v4130_v41 = vadd.f32 %v7794_v34, %v7533_v49  ;;  %v4132_v34 = vadd.f32 %v7528_v13, %v7778_v30 }
 0x762   : > { %v4030_v25 = vpop.permute.xlu1 %4029 }
 0x763   : > { %v4125_v44 = vadd.f32 %v4030_v25, %v7502_v9 }
 0x764   : > { %4251 = vrot.lane.b32.xlu0 %v3996_v43, %s5889_s11  ;;  %v7965_v45 = vpop.permute.xlu0 %4087 }
 0x766   : > { %v7963_v36 = vpop.permute.xlu1 %4089 }
 0x768   : > { %4247 = vrot.lane.b32.xlu0 %v3994_v61, %s5889_s11  ;;  %v4192_v54 = vpop.permute.xlu0 %4191  ;;  %v5892_v61 = vmov 3  }
 0x769   : > { %v4286_v1 = vadd.f32 %v4192_v54, %v4126_v19  ;;  %v8616_v19 = vmov 2  }
 0x76a   : > { %v4194_v51 = vpop.permute.xlu1 %4193 }
 0x76b   : > { %v4287_v10 = vadd.f32 %v4194_v51, %v4127_v52  ;;  %v4327_v9 = vadd.f32 %v7701_v12, %v4286_v1  ;;  %v4135_v1 = vadd.f32 %v7564_v58, %v7848_v14  ;;  %v4133_v58 = vadd.f32 %v7843_v15, %v7568_v55 }
 0x76c   : > { %v4196_v24 = vpop.permute.xlu0 %4195 }
 0x76d   : > { %v4328_v31 = vadd.f32 %v7701_v12, %v4287_v10  ;;  %v4359_v52 = vmax.f32 %v4327_v9, 0.0  ;;  %v4288_v10 = vadd.f32 %v4196_v24, %v4128_v50 }
 0x76e   : > { %v4190_v33 = vpop.permute.xlu1 %4189 }
 0x76f   : > { %v4360_v29 = vmax.f32 %v4328_v31, 0.0  ;;  %v4285_v21 = vadd.f32 %v4190_v33, %v4125_v44  ;;  %v4329_v54 = vadd.f32 %v7701_v12, %v4288_v10 }
 0x770   : > { %v4200_v42 = vpop.permute.xlu0 %4199 }
 0x771   : > { %v4326_v43 = vadd.f32 %v7701_v12, %v4285_v21  ;;  %4450 = vperm.xlu1 %5615, %v4360_v29   ;;  %v4361_v33 = vmax.f32 %v4329_v54, 0.0  ;;  %v4290_v21 = vadd.f32 %v4200_v42, %v4130_v41  ;;  %v4136_v54 = vadd.f32 %v7571_v26, %v7846_v6 }
 0x772   : > { %v4202_v35 = vpop.permute.xlu1 %4201 }
 0x773   : > { %v4358_v63 = vmax.f32 %v4326_v43, 0.0  ;;  %v4291_v25 = vadd.f32 %v4202_v35, %v4131_v48  ;;  %v4331_v43 = vadd.f32 %v7701_v12, %v4290_v21 }
 0x774   : > { %v4204_v49 = vpop.permute.xlu0 %4203 }
 0x775   : > { %5616 = vset.pattern.permute.xlu1 %v5892_v61  ;;  %4440 = vperm.xlu0 %5617, %v4358_v63   ;;  %v4332_v51 = vadd.f32 %v7701_v12, %v4291_v25  ;;  %v4363_v35 = vmax.f32 %v4331_v43, 0.0  ;;  %v4292_v14 = vadd.f32 %v4204_v49, %v4132_v34 }
 0x776   : > { %4639 = vperm.xlu1 %5616, %v4360_v29   ;;  %v4198_v56 = vpop.permute.xlu1 %4197 }
 0x777   : > { %v4364_v44 = vmax.f32 %v4332_v51, 0.0  ;;  %v4289_v31 = vadd.f32 %v4198_v56, %v4129_v16  ;;  %v4333_v50 = vadd.f32 %v7701_v12, %v4292_v14  ;;  %v4139_v56 = vadd.f32 %v7598_v32, %v7869_v2 }
 0x778   : > { %v4208_v30 = vpop.permute.xlu0 %4207 }
 0x779   : > { %5619 = vset.pattern.permute.xlu0 %v5892_v61  ;;  %v4330_v29 = vadd.f32 %v7701_v12, %v4289_v31  ;;  %v4365_v51 = vmax.f32 %v4333_v50, 0.0  ;;  %v4137_v31 = vadd.f32 %v7858_v28, %v7602_v37  ;;  %v4138_v37 = vadd.f32 %v7871_v8, %v7611_v27 }
 0x77a   : > { %4631 = vperm.xlu1 %5616, %v4358_v63   ;;  %4635 = vperm.xlu0 %5619, %v4359_v52   ;;  %v4210_v0 = vpop.permute.xlu1 %4209  ;;  %v4141_v27 = vadd.f32 %v7880_v18, %v7630_v62  ;;  %v4147_v50 = vadd.f32 %v7654_v7, %v7916_v3  ;;  %v4144_v7 = vadd.f32 %v7633_v47, %v7886_v46 }
 0x77b   : > { %v4362_v22 = vmax.f32 %v4330_v29, 0.0  ;;  %v4295_v48 = vadd.f32 %v4210_v0, %v4135_v1  ;;  %v4143_v1 = vadd.f32 %v7627_v38, %v7894_v4 }
 0x77d   : > { %v4336_v63 = vadd.f32 %v7701_v12, %v4295_v48 }
 0x77e   : > { %5618 = vset.pattern.permute.xlu1 %v8616_v19  ;;  %4655 = vperm.xlu0 %5619, %v4364_v44   ;;  %v4206_v9 = vpop.permute.xlu1 %4205 }
 0x77f   : > { %4445 = vperm.xlu1 %5618, %v4359_v52   ;;  %v4293_v25 = vadd.f32 %v4206_v9, %v4133_v58  ;;  %v4368_v24 = vmax.f32 %v4336_v63, 0.0  ;;  %v4134_v52 = vadd.f32 %v7850_v5, %v7577_v11 }
 0x781   : > { %v4334_v13 = vadd.f32 %v7701_v12, %v4293_v25  ;;  %v4294_v55 = vadd.f32 %v4208_v30, %v4134_v52 }
 0x782   : > { %5620 = vset.pattern.permute.xlu0 %v8616_v19 }
 0x783   : > { %4455 = vperm.xlu0 %5620, %v4361_v33   ;;  %4470 = vperm.xlu1 %5618, %v4364_v44   ;;  %v4366_v15 = vmax.f32 %v4334_v13, 0.0  ;;  %v4335_v16 = vadd.f32 %v7701_v12, %v4294_v55 }
 0x785   : > { %v4367_v42 = vmax.f32 %v4335_v16, 0.0  ;;  %v8618_v16 = vld [vmem:[#allocation31_spill] sm:$0xff] }
 0x787   : > { %5622 = vset.pattern.permute.xlu0 %v5892_v61  ;;  %4460 = vperm.xlu1 %5618, %v4362_v22  }
 0x788   : > { %4647 = vperm.xlu0 %5622, %v4362_v22  }
 0x78b   : > { %5621 = vset.pattern.permute.xlu1 %v5892_v61 }
 0x78c   : > { %5623 = vset.pattern.permute.xlu0 %v8616_v19  ;;  %4643 = vperm.xlu1 %5621, %v4361_v33  }
 0x78d   : > { %4465 = vperm.xlu0 %5623, %v4363_v35  }
 0x78e   : > { %v4218_v10 = vpop.permute.xlu1 %4217 }
 0x78f   : > { %v4299_v44 = vadd.f32 %v4218_v10, %v4139_v56 }
 0x790   : > { %4651 = vperm.xlu1 %5621, %v4363_v35   ;;  %v4140_v35 = vadd.f32 %v7605_v59, %v7864_v39  ;;  %v4142_v59 = vadd.f32 %v7891_v60, %v7638_v53  ;;  %v4145_v53 = vadd.f32 %v7902_v40, %v7656_v57  ;;  %v8617_v40 = vld [vmem:[#allocation26_spill] sm:$0xff] }
 0x791   : > { %5625 = vset.pattern.permute.xlu0 %v5892_v61  ;;  %v4340_v32 = vadd.f32 %v7701_v12, %v4299_v44  ;;  %v4146_v44 = vadd.f32 %v8618_v16, %v8617_v40  ;;  %v4390_v40 = vld [vmem:[#allocation2 + $0x8] sm:$0xff] }
 0x792   : > { %4671 = vperm.xlu0 %5625, %v4368_v24   ;;  %v4212_v11 = vpop.permute.xlu0 %4211  ;;  %v4214_v5 = vpop.permute.xlu1 %4213 }
 0x793   : > { %v4296_v2 = vadd.f32 %v4212_v11, %v4136_v54  ;;  %v4297_v41 = vadd.f32 %v4214_v5, %v4137_v31  ;;  %v4372_v33 = vmax.f32 %v4340_v32, 0.0  ;;  %v8619_v54 = vld [vmem:[#allocation60_spill] sm:$0xff] }
 0x794   : > { %5624 = vset.pattern.permute.xlu1 %v8616_v19  ;;  %v4151_v31 = vadd.f32 %v8619_v54, %v7938_v20  ;;  %v8622_v20 = vld [vmem:[#allocation65_spill] sm:$0xff] }
 0x795   : > { %4490 = vperm.xlu1 %5624, %v4368_v24   ;;  %v4337_v29 = vadd.f32 %v7701_v12, %v4296_v2  ;;  %v4338_v21 = vadd.f32 %v7701_v12, %v4297_v41 }
 0x796   : > { %5626 = vset.pattern.permute.xlu0 %v8616_v19  ;;  %v4216_v26 = vpop.permute.xlu0 %4215 }
 0x797   : > { %4475 = vperm.xlu0 %5626, %v4365_v51   ;;  %v4369_v6 = vmax.f32 %v4337_v29, 0.0  ;;  %v4370_v28 = vmax.f32 %v4338_v21, 0.0  ;;  %v4298_v22 = vadd.f32 %v4216_v26, %v4138_v37  ;;  %v8621_v29 = vld [vmem:[#allocation33_spill] sm:$0xff] }
 0x799   : > { %4480 = vperm.xlu1 %5624, %v4366_v15   ;;  %v4339_v43 = vadd.f32 %v7701_v12, %v4298_v22  ;;  %v8623_v22 = vld [vmem:[#allocation57_spill] sm:$0xff] }
 0x79b   : > { %5628 = vset.pattern.permute.xlu0 %v5892_v61  ;;  %v4371_v8 = vmax.f32 %v4339_v43, 0.0 }
 0x79c   : > { %4663 = vperm.xlu0 %5628, %v4366_v15  }
 0x79d   : > { %5627 = vset.pattern.permute.xlu1 %v5892_v61 }
 0x79e   : > { %4659 = vperm.xlu1 %5627, %v4365_v51   ;;  %v4226_v0 = vpop.permute.xlu1 %4225 }
 0x79f   : > { %v4303_v48 = vadd.f32 %v4226_v0, %v4143_v1  ;;  %v4148_v0 = vadd.f32 %v8623_v22, %v8622_v20 }
 0x7a0   : > { %5629 = vset.pattern.permute.xlu0 %v8616_v19 }
 0x7a1   : > { %4485 = vperm.xlu0 %5629, %v4367_v42   ;;  %v4344_v38 = vadd.f32 %v7701_v12, %v4303_v48 }
 0x7a2   : > { %4667 = vperm.xlu1 %5627, %v4367_v42   ;;  %v4222_v49 = vpop.permute.xlu1 %4221  ;;  %v4220_v34 = vpop.permute.xlu0 %4219 }
 0x7a3   : > { %v4301_v4 = vadd.f32 %v4222_v49, %v4141_v27  ;;  %v4300_v63 = vadd.f32 %v4220_v34, %v4140_v35  ;;  %v4376_v9 = vmax.f32 %v4344_v38, 0.0  ;;  %v8624_v27 = vld [vmem:[#allocation28_spill] sm:$0xff] }
 0x7a5   : > { %5631 = vset.pattern.permute.xlu0 %v5892_v61  ;;  %v4342_v58 = vadd.f32 %v7701_v12, %v4301_v4  ;;  %v4341_v62 = vadd.f32 %v7701_v12, %v4300_v63 }
 0x7a6   : > { %5630 = vset.pattern.permute.xlu1 %v8616_v19  ;;  %4687 = vperm.xlu0 %5631, %v4372_v33   ;;  %v4224_v18 = vpop.permute.xlu0 %4223 }
 0x7a7   : > { %4510 = vperm.xlu1 %5630, %v4372_v33   ;;  %v4374_v39 = vmax.f32 %v4342_v58, 0.0  ;;  %v4302_v14 = vadd.f32 %v4224_v18, %v4142_v59  ;;  %v4373_v24 = vmax.f32 %v4341_v62, 0.0  ;;  %v8620_v33 = vld [vmem:[#allocation27_spill] sm:$0xff] }
 0x7a8   : > { %v4149_v21 = vadd.f32 %v8621_v29, %v8620_v33 }
 0x7a9   : > { %v4343_v13 = vadd.f32 %v7701_v12, %v4302_v14 }
 0x7aa   : > { %5632 = vset.pattern.permute.xlu0 %v8616_v19 }
 0x7ab   : > { %4495 = vperm.xlu0 %5632, %v4369_v6   ;;  %4500 = vperm.xlu1 %5630, %v4370_v28   ;;  %v4375_v60 = vmax.f32 %v4343_v13, 0.0 }
 0x7ae   : > { %v4234_v25 = vpop.permute.xlu1 %4233 }
 0x7af   : > { %5634 = vset.pattern.permute.xlu0 %v5892_v61  ;;  %5633 = vset.pattern.permute.xlu1 %v5892_v61  ;;  %v4307_v30 = vadd.f32 %v4234_v25, %v4147_v50  ;;  %v8627_v25 = vld [vmem:[#allocation29_spill] sm:$0xff] }
 0x7b0   : > { %4679 = vperm.xlu0 %5634, %v4370_v28   ;;  %4675 = vperm.xlu1 %5633, %v4369_v6  }
 0x7b1   : > { %v4348_v51 = vadd.f32 %v7701_v12, %v4307_v30 }
 0x7b2   : > { %v4230_v52 = vpop.permute.xlu1 %4229  ;;  %v4228_v55 = vpop.permute.xlu0 %4227 }
 0x7b3   : > { %v4305_v15 = vadd.f32 %v4230_v52, %v4145_v53  ;;  %v4380_v3 = vmax.f32 %v4348_v51, 0.0  ;;  %v4304_v10 = vadd.f32 %v4228_v55, %v4144_v7  ;;  %v8628_v52 = vld [vmem:[#allocation35_spill] sm:$0xff] }
 0x7b4   : > { %5635 = vset.pattern.permute.xlu0 %v8616_v19  ;;  %4683 = vperm.xlu1 %5633, %v4371_v8   ;;  %v8629_v53 = vld [vmem:[#allocation59_spill] sm:$0xff] }
 0x7b5   : > { %4505 = vperm.xlu0 %5635, %v4371_v8   ;;  %v4346_v56 = vadd.f32 %v7701_v12, %v4305_v15  ;;  %v4345_v11 = vadd.f32 %v7701_v12, %v4304_v10  ;;  %v8625_v8 = vld [vmem:[#allocation34_spill] sm:$0xff]  ;;  %v8091_v51 = vld [vmem:[#allocation2 + $0x10] sm:$0xff] }
 0x7b6   : > { %v4232_v57 = vpop.permute.xlu0 %4231  ;;  %v4150_v34 = vadd.f32 %v8625_v8, %v8624_v27  ;;  %v8630_v10 = vld [vmem:[#allocation30_spill] sm:$0xff] }
 0x7b7   : > { %v4378_v5 = vmax.f32 %v4346_v56, 0.0  ;;  %v4306_v47 = vadd.f32 %v4232_v57, %v4146_v44  ;;  %v4377_v42 = vmax.f32 %v4345_v11, 0.0  ;;  %v4154_v56 = vadd.f32 %v7965_v45, %v8630_v10 }
 0x7b8   : > { %5636 = vset.pattern.permute.xlu1 %v8616_v19 }
 0x7b9   : > { %5637 = vset.pattern.permute.xlu0 %v5892_v61  ;;  %4530 = vperm.xlu1 %5636, %v4376_v9   ;;  %v4347_v32 = vadd.f32 %v7701_v12, %v4306_v47  ;;  %v4406_v47 = vunpack.c.l.bf16 %v4390_v40 }
 0x7ba   : > { %4703 = vperm.xlu0 %5637, %v4376_v9   ;;  %v8626_v9 = vld [vmem:[#allocation63_spill] sm:$0xff] }
 0x7bb   : > { %v4379_v26 = vmax.f32 %v4347_v32, 0.0  ;;  %v4155_v58 = vadd.f32 %v8626_v9, %v7963_v36 }
 0x7bd   : > { %4520 = vperm.xlu1 %5636, %v4374_v39  }
 0x7be   : > { %5638 = vset.pattern.permute.xlu0 %v8616_v19  ;;  %v4242_v46 = vpop.permute.xlu1 %4241 }
 0x7bf   : > { %4515 = vperm.xlu0 %5638, %v4373_v24   ;;  %v4311_v2 = vadd.f32 %v4242_v46, %v4151_v31  ;;  %v8631_v46 = vld [vmem:[#allocation62_spill] sm:$0xff] }
 0x7c0   : > { %v4156_v54 = vadd.f32 %v8631_v46, %v7956_v23  ;;  %v4407_v23 = vunpack.c.h.bf16 %v4390_v40 }
 0x7c1   : > { %5639 = vset.pattern.permute.xlu1 %v5892_v61  ;;  %v4352_v37 = vadd.f32 %v7701_v12, %v4311_v2 }
 0x7c2   : > { %4691 = vperm.xlu1 %5639, %v4373_v24   ;;  %v4238_v41 = vpop.permute.xlu1 %4237  ;;  %v4236_v6 = vpop.permute.xlu0 %4235  ;;  %v4153_v24 = vadd.f32 %v7946_v17, %v8627_v25  ;;  %v4395_v25 = vld [vmem:[#allocation2 + $0x30] sm:$0xff] }
 0x7c3   : > { %5640 = vset.pattern.permute.xlu0 %v5892_v61  ;;  %v4309_v28 = vadd.f32 %v4238_v41, %v4149_v21  ;;  %v4384_v1 = vmax.f32 %v4352_v37, 0.0  ;;  %v4308_v48 = vadd.f32 %v4236_v6, %v4148_v0 }
 0x7c4   : > { %4695 = vperm.xlu0 %5640, %v4374_v39  }
 0x7c5   : > { %v4350_v43 = vadd.f32 %v7701_v12, %v4309_v28  ;;  %v4349_v38 = vadd.f32 %v7701_v12, %v4308_v48  ;;  %v4393_v28 = vld [vmem:[#allocation2 + $0x20] sm:$0xff] }
 0x7c6   : > { %4699 = vperm.xlu1 %5639, %v4375_v60   ;;  %v4240_v49 = vpop.permute.xlu0 %4239  ;;  %v4412_v0 = vunpack.c.l.bf16 %v4393_v28 }
 0x7c7   : > { %v4382_v35 = vmax.f32 %v4350_v43, 0.0  ;;  %v4310_v4 = vadd.f32 %v4240_v49, %v4150_v34  ;;  %v4381_v18 = vmax.f32 %v4349_v38, 0.0  ;;  %v4392_v49 = vld [vmem:[#allocation2 + $0x18] sm:$0xff] }
 0x7c8   : > { %5641 = vset.pattern.permute.xlu0 %v8616_v19  ;;  %v4410_v34 = vunpack.c.l.bf16 %v4392_v49 }
 0x7c9   : > { %4525 = vperm.xlu0 %5641, %v4375_v60   ;;  %v4351_v59 = vadd.f32 %v7701_v12, %v4310_v4  ;;  %v4152_v60 = vadd.f32 %v8629_v53, %v8628_v52  ;;  %v4413_v53 = vunpack.c.h.bf16 %v4393_v28 }
 0x7ca   : > { %5642 = vset.pattern.permute.xlu1 %v8616_v19 }
 0x7cb   : > { %4550 = vperm.xlu1 %5642, %v4380_v3   ;;  %v4383_v50 = vmax.f32 %v4351_v59, 0.0 }
 0x7cd   : > { %5643 = vset.pattern.permute.xlu0 %v5892_v61 }
 0x7ce   : > { %4719 = vperm.xlu0 %5643, %v4380_v3   ;;  %v4250_v63 = vpop.permute.xlu1 %4249  ;;  %v4408_v3 = vunpack.c.l.bf16 %v8091_v51 }
 0x7cf   : > { %4540 = vperm.xlu1 %5642, %v4378_v5   ;;  %v4315_v39 = vadd.f32 %v4250_v63, %v4155_v58  ;;  %v4411_v58 = vunpack.c.h.bf16 %v4392_v49  ;;  %v4399_v49 = vld [vmem:[#allocation2 + $0x50] sm:$0xff] }
 0x7d1   : > { %v4356_v13 = vadd.f32 %v7701_v12, %v4315_v39 }
 0x7d2   : > { %5644 = vset.pattern.permute.xlu0 %v8616_v19  ;;  %v4244_v62 = vpop.permute.xlu0 %4243  ;;  %v4246_v14 = vpop.permute.xlu1 %4245 }
 0x7d3   : > { %4535 = vperm.xlu0 %5644, %v4377_v42   ;;  %5645 = vset.pattern.permute.xlu1 %v5892_v61  ;;  %v4313_v30 = vadd.f32 %v4246_v14, %v4153_v24  ;;  %v4388_v55 = vmax.f32 %v4356_v13, 0.0  ;;  %v4312_v7 = vadd.f32 %v4244_v62, %v4152_v60  ;;  %v4416_v13 = vunpack.c.l.bf16 %v4395_v25 }
 0x7d4   : > { %4707 = vperm.xlu1 %5645, %v4377_v42  }
 0x7d5   : > { %v4354_v15 = vadd.f32 %v7701_v12, %v4313_v30  ;;  %v4353_v11 = vadd.f32 %v7701_v12, %v4312_v7 }
 0x7d6   : > { %v4252_v36 = vpop.permute.xlu0 %4251 }
 0x7d7   : > { %5646 = vset.pattern.permute.xlu0 %v5892_v61  ;;  %v4386_v16 = vmax.f32 %v4354_v15, 0.0  ;;  %v4385_v32 = vmax.f32 %v4353_v11, 0.0  ;;  %v4316_v2 = vadd.f32 %v4252_v36, %v4156_v54  ;;  %v4394_v36 = vld [vmem:[#allocation2 + $0x28] sm:$0xff] }
 0x7d8   : > { %4711 = vperm.xlu0 %5646, %v4378_v5   ;;  %4715 = vperm.xlu1 %5645, %v4379_v26   ;;  %v4415_v40 = vunpack.c.h.bf16 %v4394_v36 }
 0x7d9   : > { %v4357_v21 = vadd.f32 %v7701_v12, %v4316_v2  ;;  %v4396_v2 = vld [vmem:[#allocation2 + $0x38] sm:$0xff] }
 0x7da   : > { %v4248_v17 = vpop.permute.xlu0 %4247 }
 0x7db   : > { %v4314_v5 = vadd.f32 %v4248_v17, %v4154_v56  ;;  %v4389_v6 = vmax.f32 %v4357_v21, 0.0 }
 0x7dc   : > { %5647 = vset.pattern.permute.xlu0 %v8616_v19  ;;  %5648 = vset.pattern.permute.xlu1 %v8616_v19 }
 0x7dd   : > { %4545 = vperm.xlu0 %5647, %v4379_v26   ;;  %4570 = vperm.xlu1 %5648, %v4384_v1   ;;  %v4355_v41 = vadd.f32 %v7701_v12, %v4314_v5 }
 0x7df   : > { %v4387_v26 = vmax.f32 %v4355_v41, 0.0 }
 0x7e1   : > { %5649 = vset.pattern.permute.xlu0 %v5892_v61  ;;  %4560 = vperm.xlu1 %5648, %v4382_v35  }
 0x7e2   : > { %4735 = vperm.xlu0 %5649, %v4384_v1   ;;  %v4409_v1 = vunpack.c.h.bf16 %v8091_v51 }
 0x7e5   : > { %5651 = vset.pattern.permute.xlu1 %v5892_v61 }
 0x7e6   : > { %5650 = vset.pattern.permute.xlu0 %v8616_v19  ;;  %4723 = vperm.xlu1 %5651, %v4381_v18  }
 0x7e7   : > { %4555 = vperm.xlu0 %5650, %v4381_v18  }
 0x7ea   : > { %4731 = vperm.xlu1 %5651, %v4383_v50  }
 0x7eb   : > { %5652 = vset.pattern.permute.xlu0 %v5892_v61 }
 0x7ec   : > { %4727 = vperm.xlu0 %5652, %v4382_v35  }
 0x7ee   : > { %5654 = vset.pattern.permute.xlu1 %v8616_v19 }
 0x7ef   : > { %4590 = vperm.xlu1 %5654, %v4388_v55  }
 0x7f0   : > { %5653 = vset.pattern.permute.xlu0 %v8616_v19  ;;  %v4451_v57 = vpop.permute.xlu1 %4450 }
 0x7f1   : > { %v8099_v44 = vmul.f32 %v4451_v57, %v4408_v3  ;;  %4565 = vperm.xlu0 %5653, %v4383_v50  }
 0x7f3   : > { %4580 = vperm.xlu1 %5654, %v4386_v16  }
 0x7f4   : > { %v4441_v31 = vpop.permute.xlu0 %4440 }
 0x7f5   : > { %v8104_v42 = vmul.f32 %v4441_v31, %v4406_v47  ;;  %5655 = vset.pattern.permute.xlu0 %v5892_v61  ;;  %v4640_v45 = vpop.permute.xlu1 %4639 }
 0x7f6   : > { %4751 = vperm.xlu0 %5655, %v4388_v55   ;;  %v4760_v63 = vmul.f32 %v4640_v45, %v4408_v3  ;;  %v4414_v55 = vunpack.c.l.bf16 %v4394_v36 }
 0x7f7   : > { %5657 = vset.pattern.permute.xlu1 %v5892_v61 }
 0x7f8   : > { %4739 = vperm.xlu1 %5657, %v4385_v32  }
 0x7f9   : > { %v4636_v33 = vpop.permute.xlu0 %4635  ;;  %v4632_v29 = vpop.permute.xlu1 %4631 }
 0x7fa   : > { %5656 = vset.pattern.permute.xlu0 %v8616_v19  ;;  %v4759_v12 = vmul.f32 %v4636_v33, %v4407_v23  ;;  %v4417_v33 = vunpack.c.h.bf16 %v4395_v25 }
 0x7fb   : > { %4575 = vperm.xlu0 %5656, %v4385_v32  }
 0x7fc   : > { %4747 = vperm.xlu1 %5657, %v4387_v26  }
 0x7fd   : > { %v4656_v37 = vpop.permute.xlu0 %4655 }
 0x7fe   : > { %v4446_v20 = vpop.permute.xlu1 %4445  ;;  %v4764_v50 = vmul.f32 %v4656_v37, %v4412_v0 }
 0x7ff   : > { %v8111_v22 = vmul.f32 %v4446_v20, %v4407_v23  ;;  %5658 = vset.pattern.permute.xlu0 %v5892_v61 }
 0x800   : > { %4743 = vperm.xlu0 %5658, %v4386_v16   ;;  %4755 = vperm.xlu1 %5657, %v4389_v6  }
 0x802   : > { %v4456_v43 = vpop.permute.xlu0 %4455  ;;  %v4471_v48 = vpop.permute.xlu1 %4470 }
 0x803   : > { %v8115_v27 = vmul.f32 %v4456_v43, %v4409_v1  ;;  %v8117_v8 = vmul.f32 %v4471_v48, %v4412_v0 }
 0x804   : > { %5659 = vset.pattern.permute.xlu0 %v8616_v19  ;;  %4824 = vrot.lane.b32.xlu1 %v4759_v12, %s5888_s25  ;;  %v4758_v19 = vmul.f32 %v4632_v29, %v4406_v47  ;;  %v4397_v47 = vld [vmem:[#allocation2 + $0x40] sm:$0xff]  ;;  %v4418_v29 = vunpack.c.l.bf16 %v4396_v2 }
 0x805   : > { %4595 = vperm.xlu0 %5659, %v4389_v6   ;;  %v4420_v54 = vunpack.c.l.bf16 %v4397_v47 }
 0x806   : > { %v4461_v35 = vpop.permute.xlu1 %4460 }
 0x807   : > { %v8121_v38 = vmul.f32 %v4461_v35, %v4410_v34  ;;  %v4648_v4 = vpop.permute.xlu0 %4647  ;;  %v4424_v35 = vunpack.c.l.bf16 %v4399_v49 }
 0x809   : > { %4585 = vperm.xlu0 %5659, %v4387_v26  }
 0x80b   : > { %v4644_v9 = vpop.permute.xlu1 %4643 }
 0x80c   : > { %v4761_v62 = vmul.f32 %v4644_v9, %v4409_v1  ;;  %v4466_v18 = vpop.permute.xlu0 %4465  ;;  %v4419_v1 = vunpack.c.h.bf16 %v4396_v2 }
 0x80d   : > { %v8123_v59 = vmul.f32 %v4466_v18, %v4411_v58  ;;  %4826 = vrot.lane.b32.xlu0 %v4760_v63, %s5888_s25  ;;  %v4398_v63 = vld [vmem:[#allocation2 + $0x48] sm:$0xff] }
 0x80e   : > { %4828 = vrot.lane.b32.xlu1 %v4761_v62, %s5888_s25  ;;  %5660 = vset.pattern.permute.xlu0 %v5892_v61  ;;  %v4762_v61 = vmul.f32 %v4648_v4, %v4410_v34  ;;  %v4422_v18 = vunpack.c.l.bf16 %v4398_v63 }
 0x80f   : > { %v4652_v39 = vpop.permute.xlu1 %4651 }
 0x810   : > { %v4763_v14 = vmul.f32 %v4652_v39, %v4411_v58 }
 0x811   : > { %v4672_v24 = vpop.permute.xlu0 %4671  ;;  %4822 = vrot.lane.b32.xlu0 %v4758_v19, %s5888_s25 }
 0x812   : > { %4832 = vrot.lane.b32.xlu1 %v4763_v14, %s5888_s25  ;;  %v4768_v17 = vmul.f32 %v4672_v24, %v4416_v13  ;;  %v4421_v14 = vunpack.c.h.bf16 %v4397_v47 }
 0x814   : > { %v4491_v30 = vpop.permute.xlu1 %4490 }
 0x815   : > { %v8130_v52 = vmul.f32 %v4491_v30, %v4416_v13  ;;  %4834 = vrot.lane.b32.xlu0 %v4764_v50, %s5888_s25 }
 0x816   : > { %v4476_v60 = vpop.permute.xlu0 %4475 }
 0x817   : > { %v8133_v51 = vmul.f32 %v4476_v60, %v4413_v53 }
 0x818   : > { %v4481_v15 = vpop.permute.xlu1 %4480 }
 0x819   : > { %v8135_v7 = vmul.f32 %v4481_v15, %v4414_v55  ;;  %4830 = vrot.lane.b32.xlu0 %v4762_v61, %s5888_s25 }
 0x81b   : > { %v4664_v3 = vpop.permute.xlu0 %4663 }
 0x81c   : > { %v4766_v57 = vmul.f32 %v4664_v3, %v4414_v55  ;;  %v4401_v55 = vld [vmem:[#allocation2 + $0x60] sm:$0xff] }
 0x81d   : > { %4842 = vrot.lane.b32.xlu0 %v4768_v17, %s5888_s25  ;;  %v4660_v10 = vpop.permute.xlu1 %4659  ;;  %v4428_v3 = vunpack.c.l.bf16 %v4401_v55 }
 0x81e   : > { %v4765_v56 = vmul.f32 %v4660_v10, %v4413_v53  ;;  %v4423_v53 = vunpack.c.h.bf16 %v4398_v63 }
 0x820   : > { %v4486_v16 = vpop.permute.xlu0 %4485  ;;  %4836 = vrot.lane.b32.xlu1 %v4765_v56, %s5888_s25  ;;  %v4400_v56 = vld [vmem:[#allocation2 + $0x58] sm:$0xff] }
 0x821   : > { %v8140_v11 = vmul.f32 %v4486_v16, %v4415_v40  ;;  %4838 = vrot.lane.b32.xlu0 %v4766_v57, %s5888_s25  ;;  %v4668_v5 = vpop.permute.xlu1 %4667  ;;  %v4426_v16 = vunpack.c.l.bf16 %v4400_v56 }
 0x822   : > { %v4767_v46 = vmul.f32 %v4668_v5, %v4415_v40 }
 0x824   : > { %4840 = vrot.lane.b32.xlu1 %v4767_v46, %s5888_s25 }
 0x825   : > { %v4688_v31 = vpop.permute.xlu0 %4687 }
 0x826   : > { %v4772_v45 = vmul.f32 %v4688_v31, %v4420_v54  ;;  %v4511_v32 = vpop.permute.xlu1 %4510 }
 0x827   : > { %v8144_v41 = vmul.f32 %v4511_v32, %v4420_v54  ;;  %v4425_v54 = vunpack.c.h.bf16 %v4399_v49 }
 0x828   : > { %4850 = vrot.lane.b32.xlu0 %v4772_v45, %s5888_s25 }
 0x82a   : > { %v4496_v21 = vpop.permute.xlu0 %4495  ;;  %v4501_v26 = vpop.permute.xlu1 %4500 }
 0x82b   : > { %v8147_v23 = vmul.f32 %v4496_v21, %v4417_v33  ;;  %v8149_v37 = vmul.f32 %v4501_v26, %v4418_v29 }
 0x82f   : > { %v4680_v6 = vpop.permute.xlu0 %4679  ;;  %v4676_v28 = vpop.permute.xlu1 %4675 }
 0x830   : > { %v4770_v20 = vmul.f32 %v4680_v6, %v4418_v29  ;;  %v4769_v0 = vmul.f32 %v4676_v28, %v4417_v33  ;;  %v4427_v33 = vunpack.c.h.bf16 %v4400_v56  ;;  %v4403_v28 = vld [vmem:[#allocation2 + $0x70] sm:$0xff] }
 0x832   : > { %4846 = vrot.lane.b32.xlu0 %v4770_v20, %s5888_s25  ;;  %4844 = vrot.lane.b32.xlu1 %v4769_v0, %s5888_s25  ;;  %v4432_v20 = vunpack.c.l.bf16 %v4403_v28 }
 0x833   : > { %v4684_v12 = vpop.permute.xlu1 %4683 }
 0x834   : > { %v4771_v43 = vmul.f32 %v4684_v12, %v4419_v1  ;;  %v4506_v48 = vpop.permute.xlu0 %4505  ;;  %v4402_v12 = vld [vmem:[#allocation2 + $0x68] sm:$0xff] }
 0x835   : > { %v8153_v34 = vmul.f32 %v4506_v48, %v4419_v1  ;;  %v4430_v49 = vunpack.c.l.bf16 %v4402_v12 }
 0x836   : > { %4848 = vrot.lane.b32.xlu1 %v4771_v43, %s5888_s25 }
 0x838   : > { %v4531_v4 = vpop.permute.xlu1 %4530 }
 0x839   : > { %v8156_v9 = vmul.f32 %v4531_v4, %v4424_v35  ;;  %v4704_v58 = vpop.permute.xlu0 %4703 }
 0x83a   : > { %v4776_v62 = vmul.f32 %v4704_v58, %v4424_v35 }
 0x83c   : > { %4858 = vrot.lane.b32.xlu0 %v4776_v62, %s5888_s25  ;;  %v4521_v19 = vpop.permute.xlu1 %4520  ;;  %v4429_v62 = vunpack.c.h.bf16 %v4401_v55  ;;  %v4404_v55 = vld [vmem:[#allocation2 + $0x78] sm:$0xff] }
 0x83d   : > { %v8159_v39 = vmul.f32 %v4521_v19, %v4422_v18 }
 0x83e   : > { %v4516_v25 = vpop.permute.xlu0 %4515 }
 0x83f   : > { %v8161_v24 = vmul.f32 %v4516_v25, %v4421_v14 }
 0x841   : > { %v4692_v50 = vpop.permute.xlu1 %4691 }
 0x842   : > { %v4773_v13 = vmul.f32 %v4692_v50, %v4421_v14  ;;  %v4431_v50 = vunpack.c.h.bf16 %v4402_v12 }
 0x843   : > { %v4696_v30 = vpop.permute.xlu0 %4695 }
 0x844   : > { %v4774_v36 = vmul.f32 %v4696_v30, %v4422_v18  ;;  %4852 = vrot.lane.b32.xlu1 %v4773_v13, %s5888_s25 }
 0x845   : > { %v4700_v60 = vpop.permute.xlu1 %4699 }
 0x846   : > { %v4775_v61 = vmul.f32 %v4700_v60, %v4423_v53  ;;  %4854 = vrot.lane.b32.xlu0 %v4774_v36, %s5888_s25  ;;  %v4405_v36 = vld [vmem:[#allocation2 + $0x80] sm:$0xff] }
 0x848   : > { %v4526_v15 = vpop.permute.xlu0 %4525  ;;  %4856 = vrot.lane.b32.xlu1 %v4775_v61, %s5888_s25  ;;  %v4436_v61 = vunpack.c.l.bf16 %v4405_v36 }
 0x849   : > { %v8166_v17 = vmul.f32 %v4526_v15, %v4423_v53 }
 0x84a   : > { %v4551_v10 = vpop.permute.xlu1 %4550 }
 0x84b   : > { %v8168_v57 = vmul.f32 %v4551_v10, %v4428_v3 }
 0x84d   : > { %v4720_v40 = vpop.permute.xlu0 %4719 }
 0x84e   : > { %v4780_v5 = vmul.f32 %v4720_v40, %v4428_v3  ;;  %v4541_v47 = vpop.permute.xlu1 %4540  ;;  %v4434_v40 = vunpack.c.l.bf16 %v4404_v55 }
 0x84f   : > { %v8170_v46 = vmul.f32 %v4541_v47, %v4426_v16 }
 0x850   : > { %4866 = vrot.lane.b32.xlu0 %v4780_v5, %s5888_s25 }
 0x852   : > { %v4536_v31 = vpop.permute.xlu0 %4535 }
 0x853   : > { %v8173_v45 = vmul.f32 %v4536_v31, %v4425_v54  ;;  %v4708_v32 = vpop.permute.xlu1 %4707 }
 0x854   : > { %v4777_v2 = vmul.f32 %v4708_v32, %v4425_v54  ;;  %v4433_v54 = vunpack.c.h.bf16 %v4403_v28 }
 0x856   : > { %4860 = vrot.lane.b32.xlu1 %v4777_v2, %s5888_s25 }
 0x857   : > { %v4712_v29 = vpop.permute.xlu0 %4711  ;;  %v4716_v21 = vpop.permute.xlu1 %4715 }
 0x858   : > { %v4778_v26 = vmul.f32 %v4712_v29, %v4426_v16  ;;  %v4779_v6 = vmul.f32 %v4716_v21, %v4427_v33 }
 0x85a   : > { %4862 = vrot.lane.b32.xlu0 %v4778_v26, %s5888_s25  ;;  %4864 = vrot.lane.b32.xlu1 %v4779_v6, %s5888_s25  ;;  %v4437_v6 = vunpack.c.h.bf16 %v4405_v36 }
 0x85c   : > { %v4546_v0 = vpop.permute.xlu0 %4545  ;;  %v4571_v1 = vpop.permute.xlu1 %4570 }
 0x85d   : > { %v8178_v43 = vmul.f32 %v4546_v0, %v4427_v33  ;;  %v8180_v48 = vmul.f32 %v4571_v1, %v4432_v20  ;;  %v4435_v33 = vunpack.c.h.bf16 %v4404_v55 }
 0x860   : > { %v4561_v35 = vpop.permute.xlu1 %4560 }
 0x861   : > { %v8182_v4 = vmul.f32 %v4561_v35, %v4430_v49  ;;  %v4736_v63 = vpop.permute.xlu0 %4735 }
 0x862   : > { %v4784_v58 = vmul.f32 %v4736_v63, %v4432_v20 }
 0x864   : > { %4874 = vrot.lane.b32.xlu0 %v4784_v58, %s5888_s25 }
 0x865   : > { %v4724_v18 = vpop.permute.xlu1 %4723 }
 0x866   : > { %v4781_v19 = vmul.f32 %v4724_v18, %v4429_v62  ;;  %v4556_v14 = vpop.permute.xlu0 %4555 }
 0x867   : > { %v8185_v25 = vmul.f32 %v4556_v14, %v4429_v62 }
 0x868   : > { %4868 = vrot.lane.b32.xlu1 %v4781_v19, %s5888_s25 }
 0x869   : > { %v4732_v13 = vpop.permute.xlu1 %4731 }
 0x86a   : > { %v4783_v30 = vmul.f32 %v4732_v13, %v4431_v50 }
 0x86b   : > { %v4728_v53 = vpop.permute.xlu0 %4727 }
 0x86c   : > { %v4782_v60 = vmul.f32 %v4728_v53, %v4430_v49  ;;  %4872 = vrot.lane.b32.xlu1 %v4783_v30, %s5888_s25 }
 0x86e   : > { %4870 = vrot.lane.b32.xlu0 %v4782_v60, %s5888_s25  ;;  %v4591_v15 = vpop.permute.xlu1 %4590 }
 0x86f   : > { %v8190_v3 = vmul.f32 %v4591_v15, %v4436_v61 }
 0x870   : > { %v4566_v10 = vpop.permute.xlu0 %4565 }
 0x871   : > { %v8192_v56 = vmul.f32 %v4566_v10, %v4431_v50 }
 0x872   : > { %v4581_v16 = vpop.permute.xlu1 %4580 }
 0x873   : > { %v8194_v5 = vmul.f32 %v4581_v16, %v4434_v40 }
 0x875   : > { %v4752_v47 = vpop.permute.xlu0 %4751 }
 0x876   : > { %v4788_v49 = vmul.f32 %v4752_v47, %v4436_v61 }
 0x877   : > { %v4740_v31 = vpop.permute.xlu1 %4739 }
 0x878   : > { %v4785_v32 = vmul.f32 %v4740_v31, %v4433_v54 }
 0x87a   : > { %v4576_v2 = vpop.permute.xlu0 %4575  ;;  %4876 = vrot.lane.b32.xlu1 %v4785_v32, %s5888_s25 }
 0x87b   : > { %v8197_v29 = vmul.f32 %v4576_v2, %v4433_v54  ;;  %v4748_v21 = vpop.permute.xlu1 %4747 }
 0x87c   : > { %v4787_v26 = vmul.f32 %v4748_v21, %v4435_v33 }
 0x87e   : > { %4880 = vrot.lane.b32.xlu1 %v4787_v26, %s5888_s25 }
 0x87f   : > { %v4744_v20 = vpop.permute.xlu0 %4743  ;;  %v4756_v0 = vpop.permute.xlu1 %4755 }
 0x880   : > { %v4786_v1 = vmul.f32 %v4744_v20, %v4434_v40  ;;  %v4789_v12 = vmul.f32 %v4756_v0, %v4437_v6 }
 0x882   : > { %4878 = vrot.lane.b32.xlu0 %v4786_v1, %s5888_s25  ;;  %4884 = vrot.lane.b32.xlu1 %v4789_v12, %s5888_s25 }
 0x883   : > { %v4825_v28 = vpop.permute.xlu1 %4824 }
 0x884   : > { %v4919_v35 = vadd.f32 %v4825_v28, %v8111_v22  ;;  %v4951_v63 = vmul.f32 %v4825_v28, %v8111_v22  ;;  %v4596_v58 = vpop.permute.xlu0 %4595 }
 0x885   : > { %v8205_v62 = vmul.f32 %v4596_v58, %v4437_v6 }
 0x886   : > { %v4983_v18 = vadd.f32 %v4951_v63, %v4919_v35  ;;  %4882 = vrot.lane.b32.xlu0 %v4788_v49, %s5888_s25 }
 0x887   : > { %v4829_v19 = vpop.permute.xlu1 %4828 }
 0x888   : > { %5015 = vst.msk [vmem:[%s8208_s30 + $0x8] sm:$0xff] %vm437_vm0, %v4983_v18  ;;  %v4921_v14 = vadd.f32 %v4829_v19, %v8115_v27  ;;  %v4953_v50 = vmul.f32 %v4829_v19, %v8115_v27  ;;  %v4586_v22 = vpop.permute.xlu0 %4585 }
 0x889   : > { %v8214_v13 = vmul.f32 %v4586_v22, %v4435_v33 }
 0x88a   : > { %v4985_v30 = vadd.f32 %v4953_v50, %v4921_v14 }
 0x88b   : > { %v4833_v36 = vpop.permute.xlu1 %4832 }
 0x88c   : > { %5017 = vst.msk [vmem:[%s8208_s30 + $0x18] sm:$0xff] %vm437_vm0, %v4985_v30  ;;  %v4923_v53 = vadd.f32 %v4833_v36, %v8123_v59  ;;  %v4955_v60 = vmul.f32 %v4833_v36, %v8123_v59  ;;  %v4827_v61 = vpop.permute.xlu0 %4826 }
 0x88d   : > { %v4920_v15 = vadd.f32 %v4827_v61, %v8099_v44  ;;  %v4952_v55 = vmul.f32 %v4827_v61, %v8099_v44 }
 0x88e   : > { %v4987_v10 = vadd.f32 %v4955_v60, %v4923_v53 }
 0x88f   : > { %v4984_v40 = vadd.f32 %v4952_v55, %v4920_v15 }
 0x890   : > { %5019 = vst.msk [vmem:[%s8208_s30 + $0x28] sm:$0xff] %vm437_vm0, %v4987_v10  ;;  %v4823_v27 = vpop.permute.xlu0 %4822 }
 0x891   : > { %5016 = vst.msk [vmem:[%s8208_s30 + $0x10] sm:$0xff] %vm437_vm0, %v4984_v40  ;;  %v4918_v16 = vadd.f32 %v4823_v27, %v8104_v42  ;;  %v4950_v47 = vmul.f32 %v4823_v27, %v8104_v42 }
 0x892   : > { %v4837_v59 = vpop.permute.xlu1 %4836 }
 0x893   : > { %v4982_v54 = vadd.f32 %v4950_v47, %v4918_v16  ;;  %v4925_v31 = vadd.f32 %v4837_v59, %v8133_v51  ;;  %v4957_v32 = vmul.f32 %v4837_v59, %v8133_v51 }
 0x894   : > { %v4835_v44 = vpop.permute.xlu0 %4834 }
 0x895   : > { %5014 = vst.msk [vmem:[%s8208_s30] sm:$0xff] %vm437_vm0, %v4982_v54  ;;  %v4989_v2 = vadd.f32 %v4957_v32, %v4925_v31  ;;  %v4924_v33 = vadd.f32 %v4835_v44, %v8117_v8  ;;  %v4956_v21 = vmul.f32 %v4835_v44, %v8117_v8 }
 0x896   : > { %v4841_v26 = vpop.permute.xlu1 %4840 }
 0x897   : > { %5021 = vst.msk [vmem:[%s8208_s30 + $0x38] sm:$0xff] %vm437_vm0, %v4989_v2  ;;  %v4988_v42 = vadd.f32 %v4956_v21, %v4924_v33  ;;  %v4927_v6 = vadd.f32 %v4841_v26, %v8140_v11  ;;  %v4959_v20 = vmul.f32 %v4841_v26, %v8140_v11 }
 0x898   : > { %v4831_v51 = vpop.permute.xlu0 %4830 }
 0x899   : > { %5020 = vst.msk [vmem:[%s8208_s30 + $0x30] sm:$0xff] %vm437_vm0, %v4988_v42  ;;  %v4991_v0 = vadd.f32 %v4959_v20, %v4927_v6  ;;  %v4922_v1 = vadd.f32 %v4831_v51, %v8121_v38  ;;  %v4954_v12 = vmul.f32 %v4831_v51, %v8121_v38 }
 0x89b   : > { %5023 = vst.msk [vmem:[%s8208_s30 + $0x48] sm:$0xff] %vm437_vm0, %v4991_v0  ;;  %v4986_v8 = vadd.f32 %v4954_v12, %v4922_v1 }
 0x89c   : > { %v4843_v28 = vpop.permute.xlu0 %4842 }
 0x89d   : > { %5018 = vst.msk [vmem:[%s8208_s30 + $0x20] sm:$0xff] %vm437_vm0, %v4986_v8  ;;  %v4928_v49 = vadd.f32 %v4843_v28, %v8130_v52  ;;  %v4960_v35 = vmul.f32 %v4843_v28, %v8130_v52 }
 0x89f   : > { %v4992_v11 = vadd.f32 %v4960_v35, %v4928_v49 }
 0x8a0   : > { %v4839_v63 = vpop.permute.xlu0 %4838 }
 0x8a1   : > { %5024 = vst.msk [vmem:[%s8208_s30 + $0x50] sm:$0xff] %vm437_vm0, %v4992_v11  ;;  %v4926_v58 = vadd.f32 %v4839_v63, %v8135_v7  ;;  %v4958_v38 = vmul.f32 %v4839_v63, %v8135_v7 }
 0x8a3   : > { %v4990_v18 = vadd.f32 %v4958_v38, %v4926_v58 }
 0x8a4   : > { %v4851_v19 = vpop.permute.xlu0 %4850  ;;  %v4845_v14 = vpop.permute.xlu1 %4844 }
 0x8a5   : > { %5022 = vst.msk [vmem:[%s8208_s30 + $0x40] sm:$0xff] %vm437_vm0, %v4990_v18  ;;  %v4932_v50 = vadd.f32 %v4851_v19, %v8144_v41  ;;  %v4964_v52 = vmul.f32 %v4851_v19, %v8144_v41  ;;  %v4929_v22 = vadd.f32 %v4845_v14, %v8147_v23  ;;  %v4961_v30 = vmul.f32 %v4845_v14, %v8147_v23 }
 0x8a7   : > { %v4996_v36 = vadd.f32 %v4964_v52, %v4932_v50  ;;  %v4993_v53 = vadd.f32 %v4961_v30, %v4929_v22 }
 0x8a8   : > { %v4847_v60 = vpop.permute.xlu0 %4846  ;;  %v4849_v7 = vpop.permute.xlu1 %4848 }
 0x8a9   : > { %5028 = vst.msk [vmem:[%s8208_s30 + $0x70] sm:$0xff] %vm437_vm0, %v4996_v36  ;;  %5025 = vst.msk [vmem:[%s8208_s30 + $0x58] sm:$0xff] %vm437_vm0, %v4993_v53  ;;  %v4930_v61 = vadd.f32 %v4847_v60, %v8149_v37  ;;  %v4962_v15 = vmul.f32 %v4847_v60, %v8149_v37  ;;  %v4931_v41 = vadd.f32 %v4849_v7, %v8153_v34 }
 0x8aa   : > { %v4963_v55 = vmul.f32 %v4849_v7, %v8153_v34 }
 0x8ab   : > { %v4994_v10 = vadd.f32 %v4962_v15, %v4930_v61 }
 0x8ac   : > { %v4995_v40 = vadd.f32 %v4963_v55, %v4931_v41 }
 0x8ad   : > { %5026 = vst.msk [vmem:[%s8208_s30 + $0x60] sm:$0xff] %vm437_vm0, %v4994_v10 }
 0x8ae   : > { %5027 = vst.msk [vmem:[%s8208_s30 + $0x68] sm:$0xff] %vm437_vm0, %v4995_v40  ;;  %v4859_v23 = vpop.permute.xlu0 %4858 }
 0x8af   : > { %v4936_v27 = vadd.f32 %v4859_v23, %v8156_v9  ;;  %v4968_v16 = vmul.f32 %v4859_v23, %v8156_v9 }
 0x8b1   : > { %v5000_v47 = vadd.f32 %v4968_v16, %v4936_v27 }
 0x8b3   : > { %5032 = vst.msk [vmem:[%s8208_s30 + $0x90] sm:$0xff] %vm437_vm0, %v5000_v47 }
 0x8b6   : > { %v4853_v37 = vpop.permute.xlu1 %4852 }
 0x8b7   : > { %v4933_v34 = vadd.f32 %v4853_v37, %v8161_v24  ;;  %v4965_v59 = vmul.f32 %v4853_v37, %v8161_v24 }
 0x8b8   : > { %v4855_v54 = vpop.permute.xlu0 %4854 }
 0x8b9   : > { %v4997_v31 = vadd.f32 %v4965_v59, %v4933_v34  ;;  %v4934_v32 = vadd.f32 %v4855_v54, %v8159_v39  ;;  %v4966_v44 = vmul.f32 %v4855_v54, %v8159_v39 }
 0x8ba   : > { %v4857_v2 = vpop.permute.xlu1 %4856 }
 0x8bb   : > { %5029 = vst.msk [vmem:[%s8208_s30 + $0x78] sm:$0xff] %vm437_vm0, %v4997_v31  ;;  %v4998_v9 = vadd.f32 %v4966_v44, %v4934_v32  ;;  %v4935_v33 = vadd.f32 %v4857_v2, %v8166_v17  ;;  %v4967_v21 = vmul.f32 %v4857_v2, %v8166_v17 }
 0x8bd   : > { %5030 = vst.msk [vmem:[%s8208_s30 + $0x80] sm:$0xff] %vm437_vm0, %v4998_v9  ;;  %v4999_v26 = vadd.f32 %v4967_v21, %v4935_v33 }
 0x8bf   : > { %5031 = vst.msk [vmem:[%s8208_s30 + $0x88] sm:$0xff] %vm437_vm0, %v4999_v26 }
 0x8c2   : > { %v4867_v24 = vpop.permute.xlu0 %4866 }
 0x8c3   : > { %v4940_v42 = vadd.f32 %v4867_v24, %v8168_v57  ;;  %v4972_v6 = vmul.f32 %v4867_v24, %v8168_v57 }
 0x8c5   : > { %v5004_v39 = vadd.f32 %v4972_v6, %v4940_v42 }
 0x8c7   : > { %5036 = vst.msk [vmem:[%s8208_s30 + $0xb0] sm:$0xff] %vm437_vm0, %v5004_v39 }
 0x8c8   : > { %v4861_v20 = vpop.permute.xlu1 %4860 }
 0x8c9   : > { %v4937_v51 = vadd.f32 %v4861_v20, %v8173_v45  ;;  %v4969_v17 = vmul.f32 %v4861_v20, %v8173_v45 }
 0x8cb   : > { %v5001_v0 = vadd.f32 %v4969_v17, %v4937_v51 }
 0x8cc   : > { %v4863_v1 = vpop.permute.xlu0 %4862  ;;  %v4865_v12 = vpop.permute.xlu1 %4864 }
 0x8cd   : > { %5033 = vst.msk [vmem:[%s8208_s30 + $0x98] sm:$0xff] %vm437_vm0, %v5001_v0  ;;  %v4938_v8 = vadd.f32 %v4863_v1, %v8170_v46  ;;  %v4970_v57 = vmul.f32 %v4863_v1, %v8170_v46  ;;  %v4939_v28 = vadd.f32 %v4865_v12, %v8178_v43  ;;  %v4971_v49 = vmul.f32 %v4865_v12, %v8178_v43 }
 0x8cf   : > { %v5002_v35 = vadd.f32 %v4970_v57, %v4938_v8  ;;  %v5003_v11 = vadd.f32 %v4971_v49, %v4939_v28 }
 0x8d1   : > { %5034 = vst.msk [vmem:[%s8208_s30 + $0xa0] sm:$0xff] %vm437_vm0, %v5002_v35  ;;  %5035 = vst.msk [vmem:[%s8208_s30 + $0xa8] sm:$0xff] %vm437_vm0, %v5003_v11 }
 0x8d6   : > { %v4875_v45 = vpop.permute.xlu0 %4874 }
 0x8d7   : > { %v4944_v63 = vadd.f32 %v4875_v45, %v8180_v48  ;;  %v4976_v58 = vmul.f32 %v4875_v45, %v8180_v48 }
 0x8d9   : > { %v5008_v38 = vadd.f32 %v4976_v58, %v4944_v63 }
 0x8da   : > { %v4869_v46 = vpop.permute.xlu1 %4868 }
 0x8db   : > { %5040 = vst.msk [vmem:[%s8208_s30 + $0xd0] sm:$0xff] %vm437_vm0, %v5008_v38  ;;  %v4941_v18 = vadd.f32 %v4869_v46, %v8185_v25  ;;  %v4973_v43 = vmul.f32 %v4869_v46, %v8185_v25 }
 0x8dd   : > { %v5005_v19 = vadd.f32 %v4973_v43, %v4941_v18 }
 0x8de   : > { %v4873_v14 = vpop.permute.xlu1 %4872 }
 0x8df   : > { %5037 = vst.msk [vmem:[%s8208_s30 + $0xb8] sm:$0xff] %vm437_vm0, %v5005_v19  ;;  %v4943_v50 = vadd.f32 %v4873_v14, %v8192_v56  ;;  %v4975_v52 = vmul.f32 %v4873_v14, %v8192_v56 }
 0x8e0   : > { %v4871_v22 = vpop.permute.xlu0 %4870 }
 0x8e1   : > { %v5007_v48 = vadd.f32 %v4975_v52, %v4943_v50  ;;  %v4942_v30 = vadd.f32 %v4871_v22, %v8182_v4  ;;  %v4974_v36 = vmul.f32 %v4871_v22, %v8182_v4 }
 0x8e3   : > { %5039 = vst.msk [vmem:[%s8208_s30 + $0xc8] sm:$0xff] %vm437_vm0, %v5007_v48  ;;  %v5006_v53 = vadd.f32 %v4974_v36, %v4942_v30 }
 0x8e5   : > { %5038 = vst.msk [vmem:[%s8208_s30 + $0xc0] sm:$0xff] %vm437_vm0, %v5006_v53 }
 0x8ec   : > { %v4877_v25 = vpop.permute.xlu1 %4876 }
 0x8ed   : > { %v4945_v60 = vadd.f32 %v4877_v25, %v8197_v29  ;;  %v4977_v7 = vmul.f32 %v4877_v25, %v8197_v29 }
 0x8ef   : > { %v5009_v61 = vadd.f32 %v4977_v7, %v4945_v60 }
 0x8f0   : > { %v4881_v56 = vpop.permute.xlu1 %4880 }
 0x8f1   : > { %5041 = vst.msk [vmem:[%s8208_s30 + $0xd8] sm:$0xff] %vm437_vm0, %v5009_v61  ;;  %v4947_v15 = vadd.f32 %v4881_v56, %v8214_v13  ;;  %v4979_v4 = vmul.f32 %v4881_v56, %v8214_v13 }
 0x8f3   : > { %v5011_v41 = vadd.f32 %v4979_v4, %v4947_v15 }
 0x8f4   : > { %v4879_v55 = vpop.permute.xlu0 %4878  ;;  %v4885_v10 = vpop.permute.xlu1 %4884 }
 0x8f5   : > { %5043 = vst.msk [vmem:[%s8208_s30 + $0xe8] sm:$0xff] %vm437_vm0, %v5011_v41  ;;  %v4946_v40 = vadd.f32 %v4879_v55, %v8194_v5  ;;  %v4978_v29 = vmul.f32 %v4879_v55, %v8194_v5  ;;  %v4949_v23 = vadd.f32 %v4885_v10, %v8205_v62  ;;  %v4981_v27 = vmul.f32 %v4885_v10, %v8205_v62 }
 0x8f7   : > { %v5010_v16 = vadd.f32 %v4978_v29, %v4946_v40  ;;  %v5013_v47 = vadd.f32 %v4981_v27, %v4949_v23 }
 0x8f8   : > { %v4883_v13 = vpop.permute.xlu0 %4882 }
 0x8f9   : > { %5042 = vst.msk [vmem:[%s8208_s30 + $0xe0] sm:$0xff] %vm437_vm0, %v5010_v16  ;;  %5045 = vst.msk [vmem:[%s8208_s30 + $0xf8] sm:$0xff] %vm437_vm0, %v5013_v47  ;;  %v4948_v37 = vadd.f32 %v4883_v13, %v8190_v3  ;;  %v4980_v34 = vmul.f32 %v4883_v13, %v8190_v3 }
 0x8fb   : > { %v5012_v5 = vadd.f32 %v4980_v34, %v4948_v37 }
 0x8fd   : > { %5044 = vst.msk [vmem:[%s8208_s30 + $0xf0] sm:$0xff] %vm437_vm0, %v5012_v5 }
 0x8fe   : > { %5816 = shalt.err (!%p5813_p6)
}
 0x8ff   : > { %s5817_s10 = scalar_lea.hbm %s8341_s26, 4096  ;;  %s5821_s0 = scalar_lea.hbm %s8633_s18, 8192 }
 0x900   : > { %p5818_p8 = scmp.ne.s32.totalorder %s8341_s26, %s5817_s10  ;;  %p5822_p4 = scmp.lt.u32.totalorder %s8341_s26, %s8633_s18 }
 0x901   : > { %p5823_p11 = scmp.lt.u32.totalorder %s5821_s0, %s5817_s10  ;;  %p5825_p3 = scmp.lt.u32.totalorder %s5817_s10, %s8341_s26 }
 0x902   : > { %p5819_p10 = pnand %p5818_p8, %p6045_p12 }
 0x903   : > { %p5824_p13 = por %p5823_p11, %p5822_p4 }
 0x904   : > { %p5820_p0 = pneg %p5819_p10 }
 0x905   : > { %p5826_p7 = por %p5825_p3, %p5824_p13 }
 0x907   : > { %p5827_p9 = pnand %p5826_p7, %p5820_p0 }
 0x909   : > { %5830 = shalt.err (!%p5827_p9)
}
 0x90a   : > { %s5894_s20 = smov 128   ;;  %s5895_s30 = smov 8  }
 0x90b   : > { %5548 = dma.vmem_to_hbm [thread:$0]  (%p6045_p12), %s8343_s13, 4096, %s8341_s26, %s5047_s17, %s5894_s20, %s5894_s20, %s5895_s30  }
 0x90c PF: > { %s8634_s21 = sld [smem:[#allocation15_spill]]  ;;  %s8635_s15 = sld [smem:[#allocation17_spill]] }
 0x90d   : > { %p8637_p5 = scmp.ge.s32.totalorder %s5877_s16, 2 }
 0x912   : > { %s5075_s29 = sand.u32 1, %s8634_s21   ;;  %p8636_p1 = scmp.ne.s32.totalorder %s8635_s15, 0 }
 0x913   : > { %s5076_s19 = scalar_lea.sflag [#allocation6], %s5075_s29 }
 0x914   : > { %p5562_p2 = pnand %p8637_p5, %p8636_p1 }
 0x916   : > { %5860 = dma.done.wait (!%p5562_p2), %s5076_s19, 4096  }
 0x917   : > { %5862 = vsyncadd (!%p5562_p2), %s5076_s19, 4294963200  ;;  %s8638_s16 = sld [smem:[#allocation18_spill]]  ;;  %s8639_s28 = sld [smem:[#allocation16_spill]] }
 0x918   : > { %s8640_s15 = sld [smem:[#allocation19_spill]]  ;;  %s8641_s13 = smov %s5869_s14 }
 0x91d   : > { %p26_p6 = scmp.ge.s32.totalorder %s8638_s16, 4   ;;  %s8642_s14 = smov %s8639_s28 }
 0x91f   :  { %28 = sbr.rel (!%p26_p6) target bundleno = 11 (0xb), region = 128 }
 0x926   :  { %5081 = vsyncpa [#allocation5], 1 }
 0x927   :  { %5083 = vsyncpa [#allocation5 + $0x1], 1 }
 0x928   :  { %5084 = vsyncpa [#allocation8], 1 }
 0x929   :  { %5086 = vsyncpa [#allocation8 + $0x1], 1 }
 0x92a   :  { %5087 = vsyncpa [#allocation6], 1 }
 0x92b   :  { %5089 = vsyncpa [#allocation6 + $0x1], 1 }

</bundles_post_ra>
